<compile_context>
chip_gen: v6e
topology: v6e:2x2x1
jax: 0.10.0
libtpu: 0.0.40
codegen_flags: <defaults>
</compile_context>

<pallas_src>
import functools

import numpy as np
import jax
import jax.numpy as jnp
from jax.experimental import pallas as pl
from jax.experimental.pallas import tpu as pltpu


# ---------------------------------------------------------------------------
# Host-side layout helpers (pure numpy, baked at trace time)
#
# Padded coords: pixel (h, w) of an HxW plane sits at lane q = (h+1)*Wp+(w+1),
# Wp = W+2; "core" = Hp*Wp lanes (conv outputs), conv inputs get a (Wp+1)-lane
# zero halo on each side ("full" = core + 2*Wp + 2 lanes).
# ---------------------------------------------------------------------------
def _geom(H, W):
    Hp, Wp = H + 2, W + 2
    core = Hp * Wp
    return Hp, Wp, core, core + 2 * Wp + 2


def _pool_select_mat(H, W, k, Hn, Wn):
    """(n2, Ln) one-hot: pooled-window anchors -> next conv's padded+halo input."""
    _, Wp, core, _ = _geom(H, W)
    _, Wpn, _, Ln = _geom(Hn, Wn)
    n2 = core - (k - 1) - (k - 1) * Wp
    S = np.zeros((n2, Ln), np.float32)
    for ho in range(Hn):
        for wo in range(Wn):
            q = (k * ho + 1) * Wp + (k * wo + 1)        # window anchor (src)
            d = (Wpn + 1) + (ho + 1) * Wpn + (wo + 1)   # dst padded+halo lane
            S[q, d] = 1.0
    return S


def _upsample_mat(Hs, Ws, s):
    """(core_src, Ln_dst) one-hot nearest-neighbour upsample by factor s,
    re-embedded into the next conv's padded+halo layout (borders stay zero)."""
    _, Wps, core_s, _ = _geom(Hs, Ws)
    Hd, Wd = Hs * s, Ws * s
    _, Wpd, _, Ld = _geom(Hd, Wd)
    U = np.zeros((core_s, Ld), np.float32)
    for h in range(Hd):
        for w in range(Wd):
            q = (h // s + 1) * Wps + (w // s + 1)
            d = (Wpd + 1) + (h + 1) * Wpd + (w + 1)
            U[q, d] = 1.0
    return U


# ---------------------------------------------------------------------------
# In-kernel building blocks (operate on values; no scratch refs needed)
# ---------------------------------------------------------------------------
def _conv3x3(a, wt, b, Wp, core):
    """3x3 'same' conv (no activation): a (Cin, core + 2*Wp + 2) -> (Cout, core).

    The 9 taps are contiguous lane slices of the halo'd input; they are fused
    into one (Cout, 9*Cin) @ (9*Cin, core) MXU matmul."""
    off = Wp + 1
    taps = [a[:, off + dy * Wp + dx: off + dy * Wp + dx + core]
            for dy in (-1, 0, 1) for dx in (-1, 0, 1)]
    t = jnp.concatenate(taps, axis=0)                            # (9*Cin, core)
    return jnp.dot(wt, t, preferred_element_type=jnp.float32) + b


def _maxpool_embed(a, k, Wp, sel):
    """MaxPool2d(k, k) of a (C, core) slab, then one one-hot matmul that picks
    the valid window anchors and drops them into the next conv's padded+halo
    layout (zero borders by construction)."""
    n1 = a.shape[1] - (k - 1)
    m = a[:, :n1]                           # stage 1: max along w
    for j in range(1, k):
        m = jnp.maximum(m, a[:, j:j + n1])
    n2 = n1 - (k - 1) * Wp
    p = m[:, :n2]                           # stage 2: max along h
    for i in range(1, k):
        p = jnp.maximum(p, m[:, i * Wp:i * Wp + n2])
    return jnp.dot(p, sel, preferred_element_type=jnp.float32)


# ---------------------------------------------------------------------------
# The fused autoencoder kernel (b_tile images per grid step)
# ---------------------------------------------------------------------------
def _autoencoder_kernel(x_ref, s1_ref, s2_ref, um_ref, uh_ref,
                        w1_ref, b1_ref, w2_ref, b2_ref, w3_ref, b3_ref,
                        w4_ref, b4_ref, w5_ref, b5_ref,
                        o_ref, *, H, W, b_tile):
    H2, W2 = H // 5, W // 5
    H3, W3 = H2 // 2, W2 // 2
    _, Wp1, core1, _ = _geom(H, W)
    _, Wp2, core2, _ = _geom(H2, W2)
    _, Wp3, core3, _ = _geom(H3, W3)

    # hoist all constant reads out of the per-image loop
    s1, s2 = s1_ref[...], s2_ref[...]
    um, uh = um_ref[...], uh_ref[...]
    w1, b1 = w1_ref[...], b1_ref[...]
    w2, b2 = w2_ref[...], b2_ref[...]
    w3, b3 = w3_ref[...], b3_ref[...]
    w4, b4 = w4_ref[...], b4_ref[...]
    w5, b5 = w5_ref[...], b5_ref[...]

    for b in range(b_tile):
        x = x_ref[b]                                                 # (1, L1)
        # ------------------------------ encoder ------------------------------
        a1 = jnp.maximum(_conv3x3(x, w1, b1, Wp1, core1), 0.0)       # (32, core1)
        p1 = _maxpool_embed(a1, 5, Wp1, s1)                          # (32, L2)
        a2 = jnp.maximum(_conv3x3(p1, w2, b2, Wp2, core2), 0.0)      # (16, core2)
        p2 = _maxpool_embed(a2, 2, Wp2, s2)                          # (16, L3)
        # ------------------------------ decoder ------------------------------
        a3 = jnp.maximum(_conv3x3(p2, w3, b3, Wp3, core3), 0.0)      # (16, core3)
        u1 = jnp.dot(a3, um, preferred_element_type=jnp.float32)     # (16, L2)
        a4 = jnp.maximum(_conv3x3(u1, w4, b4, Wp2, core2), 0.0)      # (32, core2)
        u2 = jnp.dot(a4, uh, preferred_element_type=jnp.float32)     # (32, L1)
        z = _conv3x3(u2, w5, b5, Wp1, core1)                         # (1, core1)
        o_ref[b] = jax.nn.sigmoid(z)


# ---------------------------------------------------------------------------
# Public forward (NCHW in / NCHW out, like the PyTorch module)
# ---------------------------------------------------------------------------
def autoencoder_forward(x_nchw, params, b_tile=None):
    N, cin, H, W = x_nchw.shape
    assert cin == 1 and H % 10 == 0 and W % 10 == 0
    H2, W2 = H // 5, W // 5
    H3, W3 = H2 // 2, W2 // 2
    Hp, Wp, core1, L1 = _geom(H, W)

    # batch blocking: amortize per-grid-step overhead but keep grid >= 2 so the
    # batch still shards across both TensorCores on v7x.
    if b_tile is None:
        b_tile = 1
        for cand in (8, 4, 2):
            if N % cand == 0 and N // cand >= 2:
                b_tile = cand
                break
    assert N % b_tile == 0
    grid = (N // b_tile,)

    # ---- lane-dense, zero-padded HBM layout (wrapper-side layout plumbing) ----
    xp = jnp.pad(x_nchw.reshape(N, H, W).astype(jnp.float32),
                 ((0, 0), (1, 1), (1, 1))).reshape(N, core1)
    xp = jnp.pad(xp, ((0, 0), (Wp + 1, Wp + 1))).reshape(N, 1, L1)

    # ---- constant structural matrices (trace-time numpy) ----
    s1 = jnp.asarray(_pool_select_mat(H, W, 5, H2, W2))      # pool 5x5 -> conv2 in
    s2 = jnp.asarray(_pool_select_mat(H2, W2, 2, H3, W3))    # pool 2x2 -> d1 in
    um = jnp.asarray(_upsample_mat(H3, W3, 2))               # x2  -> d2 in
    uh = jnp.asarray(_upsample_mat(H2, W2, 5))               # x5  -> d3 in

    # ---- weights: HWIO (3,3,Cin,Cout) -> (Cout, 9*Cin); bias -> (Cout, 1) ----
    def wmat(w):
        cin_, cout = w.shape[2], w.shape[3]
        return jnp.transpose(w.reshape(9 * cin_, cout))

    w1, b1 = wmat(params["e1_w"]), params["e1_b"].reshape(-1, 1)
    w2, b2 = wmat(params["e2_w"]), params["e2_b"].reshape(-1, 1)
    w3, b3 = wmat(params["d1_w"]), params["d1_b"].reshape(-1, 1)
    w4, b4 = wmat(params["d2_w"]), params["d2_b"].reshape(-1, 1)
    w5, b5 = wmat(params["d3_w"]), params["d3_b"].reshape(-1, 1)

    def const_spec(a):
        nd = a.ndim
        return pl.BlockSpec(tuple(a.shape), lambda n, _nd=nd: (0,) * _nd)

    kernel = functools.partial(_autoencoder_kernel, H=H, W=W, b_tile=b_tile)
    out = pl.pallas_call(
        kernel,
        out_shape=jax.ShapeDtypeStruct((N, 1, core1), jnp.float32),
        grid=grid,
        in_specs=[pl.BlockSpec((b_tile, 1, L1), lambda n: (n, 0, 0))]
        + [const_spec(a) for a in
           (s1, s2, um, uh, w1, b1, w2, b2, w3, b3, w4, b4, w5, b5)],
        out_specs=pl.BlockSpec((b_tile, 1, core1), lambda n: (n, 0, 0)),
        compiler_params=pltpu.CompilerParams(
            dimension_semantics=("parallel",),     # batch across cores on v7x
            vmem_limit_bytes=32 * 1024 * 1024,
        ),
    )(xp, s1, s2, um, uh, w1, b1, w2, b2, w3, b3, w4, b4, w5, b5)

    # drop the zero-padding frame (borders were never valid outputs)
    y = out.reshape(N, Hp, Wp)[:, 1:H + 1, 1:W + 1]
    return y.reshape(N, 1, H, W)


# ---------------------------------------------------------------------------
# Pure-JAX reference (same semantics as the PyTorch module) + init
# ---------------------------------------------------------------------------
def _reference_forward(x_nchw, p):
    dn = ("NHWC", "HWIO", "NHWC")

    def conv(x, w, b):
        y = jax.lax.conv_general_dilated(
            x, w, window_strides=(1, 1), padding="SAME", dimension_numbers=dn,
            precision=jax.lax.Precision.HIGHEST)
        return y + b.reshape(1, 1, 1, -1)

    def pool(x, k):
        return jax.lax.reduce_window(
            x, -jnp.inf, jax.lax.max, (1, k, k, 1), (1, k, k, 1), "VALID")

    def up(x, s):
        return jnp.repeat(jnp.repeat(x, s, axis=1), s, axis=2)

    x = jnp.transpose(x_nchw, (0, 2, 3, 1))
    x = pool(jax.nn.relu(conv(x, p["e1_w"], p["e1_b"])), 5)
    x = pool(jax.nn.relu(conv(x, p["e2_w"], p["e2_b"])), 2)
    x = up(jax.nn.relu(conv(x, p["d1_w"], p["d1_b"])), 2)
    x = up(jax.nn.relu(conv(x, p["d2_w"], p["d2_b"])), 5)
    x = jax.nn.sigmoid(conv(x, p["d3_w"], p["d3_b"]))
    return jnp.transpose(x, (0, 3, 1, 2))


def init_params(key):
    """Deterministic init; weights stored HWIO (3, 3, Cin, Cout)."""
    def conv_init(k, cin, cout):
        kw, kb = jax.random.split(k)
        bound = 1.0 / jnp.sqrt(9 * cin)
        w = jax.random.uniform(kw, (3, 3, cin, cout), jnp.float32, -bound, bound)
        b = jax.random.uniform(kb, (cout,), jnp.float32, -bound, bound)
        return w, b

    keys = jax.random.split(key, 5)
    p = {}
    p["e1_w"], p["e1_b"] = conv_init(keys[0], 1, 32)
    p["e2_w"], p["e2_b"] = conv_init(keys[1], 32, 16)
    p["d1_w"], p["d1_b"] = conv_init(keys[2], 16, 16)
    p["d2_w"], p["d2_b"] = conv_init(keys[3], 16, 32)
    p["d3_w"], p["d3_b"] = conv_init(keys[4], 32, 1)
    return p


if __name__ == "__main__":
    key = jax.random.PRNGKey(0)
    k_x, k_p = jax.random.split(key)
    # spatial must be divisible by 5 then 2 (encoder pools / decoder upsamples)
    x = jax.random.normal(k_x, (2, 1, 20, 20), dtype=jnp.float32)   # NCHW
    params = init_params(k_p)

    fwd = jax.jit(autoencoder_forward)
    out = jax.block_until_ready(fwd(x, params))

    assert out.shape == (2, 1, 20, 20), out.shape
    assert out.dtype == jnp.float32
    assert bool(jnp.all((out >= 0.0) & (out <= 1.0)))               # sigmoid output

    ref = jax.block_until_ready(jax.jit(_reference_forward)(x, params))
    err = float(jnp.max(jnp.abs(out - ref)))
    assert err < 1e-4, f"mismatch vs pure-JAX reference: max|diff|={err}"
    print("KERNEL_OK")
</pallas_src>

<mosaic_0001>
module attributes {stable_mosaic.version = 11 : i64} {
  func.func @_autoencoder_kernel(%arg0: i32, %arg1: memref<1x1x530xf32, #tpu.memory_space<vmem>>, %arg2: memref<392x50xf32, #tpu.memory_space<vmem>>, %arg3: memref<29x26xf32, #tpu.memory_space<vmem>>, %arg4: memref<16x50xf32, #tpu.memory_space<vmem>>, %arg5: memref<36x530xf32, #tpu.memory_space<vmem>>, %arg6: memref<32x9xf32, #tpu.memory_space<vmem>>, %arg7: memref<32x1xf32, #tpu.memory_space<vmem>>, %arg8: memref<16x288xf32, #tpu.memory_space<vmem>>, %arg9: memref<16x1xf32, #tpu.memory_space<vmem>>, %arg10: memref<16x144xf32, #tpu.memory_space<vmem>>, %arg11: memref<16x1xf32, #tpu.memory_space<vmem>>, %arg12: memref<32x144xf32, #tpu.memory_space<vmem>>, %arg13: memref<32x1xf32, #tpu.memory_space<vmem>>, %arg14: memref<1x288xf32, #tpu.memory_space<vmem>>, %arg15: memref<1x1xf32, #tpu.memory_space<vmem>>, %arg16: memref<1x1x484xf32, #tpu.memory_space<vmem>>) attributes {dimension_semantics = [#tpu.dimension_semantics<parallel>], iteration_bounds = array<i64: 2>, scalar_prefetch = 0 : i64, scratch_operands = 0 : i64, tpu.core_type = #tpu.core_type<tc>, window_params = [{transform_indices = @transform_0, window_bounds = array<i64: 1, 1, 530>}, {pipeline_mode = #tpu.pipeline_mode<synchronous>, transform_indices = @transform_1, window_bounds = array<i64: 392, 50>}, {pipeline_mode = #tpu.pipeline_mode<synchronous>, transform_indices = @transform_2, window_bounds = array<i64: 29, 26>}, {pipeline_mode = #tpu.pipeline_mode<synchronous>, transform_indices = @transform_3, window_bounds = array<i64: 16, 50>}, {pipeline_mode = #tpu.pipeline_mode<synchronous>, transform_indices = @transform_4, window_bounds = array<i64: 36, 530>}, {pipeline_mode = #tpu.pipeline_mode<synchronous>, transform_indices = @transform_5, window_bounds = array<i64: 32, 9>}, {pipeline_mode = #tpu.pipeline_mode<synchronous>, transform_indices = @transform_6, window_bounds = array<i64: 32, 1>}, {pipeline_mode = #tpu.pipeline_mode<synchronous>, transform_indices = @transform_7, window_bounds = array<i64: 16, 288>}, {pipeline_mode = #tpu.pipeline_mode<synchronous>, transform_indices = @transform_8, window_bounds = array<i64: 16, 1>}, {pipeline_mode = #tpu.pipeline_mode<synchronous>, transform_indices = @transform_9, window_bounds = array<i64: 16, 144>}, {pipeline_mode = #tpu.pipeline_mode<synchronous>, transform_indices = @transform_10, window_bounds = array<i64: 16, 1>}, {pipeline_mode = #tpu.pipeline_mode<synchronous>, transform_indices = @transform_11, window_bounds = array<i64: 32, 144>}, {pipeline_mode = #tpu.pipeline_mode<synchronous>, transform_indices = @transform_12, window_bounds = array<i64: 32, 1>}, {pipeline_mode = #tpu.pipeline_mode<synchronous>, transform_indices = @transform_13, window_bounds = array<i64: 1, 288>}, {pipeline_mode = #tpu.pipeline_mode<synchronous>, transform_indices = @transform_14, window_bounds = array<i64: 1, 1>}, {transform_indices = @transform_15, window_bounds = array<i64: 1, 1, 484>}]} {
    %c0 = arith.constant 0 : index
    %c0_0 = arith.constant 0 : index
    %0 = vector.load %arg2[%c0, %c0_0] : memref<392x50xf32, #tpu.memory_space<vmem>>, vector<392x50xf32>
    %c0_1 = arith.constant 0 : index
    %c0_2 = arith.constant 0 : index
    %1 = vector.load %arg3[%c0_1, %c0_2] : memref<29x26xf32, #tpu.memory_space<vmem>>, vector<29x26xf32>
    %c0_3 = arith.constant 0 : index
    %c0_4 = arith.constant 0 : index
    %2 = vector.load %arg4[%c0_3, %c0_4] : memref<16x50xf32, #tpu.memory_space<vmem>>, vector<16x50xf32>
    %c0_5 = arith.constant 0 : index
    %c0_6 = arith.constant 0 : index
    %3 = vector.load %arg5[%c0_5, %c0_6] : memref<36x530xf32, #tpu.memory_space<vmem>>, vector<36x530xf32>
    %c0_7 = arith.constant 0 : index
    %c0_8 = arith.constant 0 : index
    %4 = vector.load %arg6[%c0_7, %c0_8] : memref<32x9xf32, #tpu.memory_space<vmem>>, vector<32x9xf32>
    %c0_9 = arith.constant 0 : index
    %c0_10 = arith.constant 0 : index
    %5 = vector.load %arg7[%c0_9, %c0_10] : memref<32x1xf32, #tpu.memory_space<vmem>>, vector<32x1xf32>
    %c0_11 = arith.constant 0 : index
    %c0_12 = arith.constant 0 : index
    %6 = vector.load %arg8[%c0_11, %c0_12] : memref<16x288xf32, #tpu.memory_space<vmem>>, vector<16x288xf32>
    %c0_13 = arith.constant 0 : index
    %c0_14 = arith.constant 0 : index
    %7 = vector.load %arg9[%c0_13, %c0_14] : memref<16x1xf32, #tpu.memory_space<vmem>>, vector<16x1xf32>
    %c0_15 = arith.constant 0 : index
    %c0_16 = arith.constant 0 : index
    %8 = vector.load %arg10[%c0_15, %c0_16] : memref<16x144xf32, #tpu.memory_space<vmem>>, vector<16x144xf32>
    %c0_17 = arith.constant 0 : index
    %c0_18 = arith.constant 0 : index
    %9 = vector.load %arg11[%c0_17, %c0_18] : memref<16x1xf32, #tpu.memory_space<vmem>>, vector<16x1xf32>
    %c0_19 = arith.constant 0 : index
    %c0_20 = arith.constant 0 : index
    %10 = vector.load %arg12[%c0_19, %c0_20] : memref<32x144xf32, #tpu.memory_space<vmem>>, vector<32x144xf32>
    %c0_21 = arith.constant 0 : index
    %c0_22 = arith.constant 0 : index
    %11 = vector.load %arg13[%c0_21, %c0_22] : memref<32x1xf32, #tpu.memory_space<vmem>>, vector<32x1xf32>
    %c0_23 = arith.constant 0 : index
    %c0_24 = arith.constant 0 : index
    %12 = vector.load %arg14[%c0_23, %c0_24] : memref<1x288xf32, #tpu.memory_space<vmem>>, vector<1x288xf32>
    %c0_25 = arith.constant 0 : index
    %c0_26 = arith.constant 0 : index
    %13 = vector.load %arg15[%c0_25, %c0_26] : memref<1x1xf32, #tpu.memory_space<vmem>>, vector<1x1xf32>
    %c0_27 = arith.constant 0 : index
    %c0_28 = arith.constant 0 : index
    %c0_29 = arith.constant 0 : index
    %14 = vector.load %arg1[%c0_27, %c0_28, %c0_29] : memref<1x1x530xf32, #tpu.memory_space<vmem>>, vector<1x1x530xf32>
    %15 = vector.shape_cast %14 : vector<1x1x530xf32> to vector<1x530xf32>
    %16 = vector.extract_strided_slice %15 {offsets = [0, 0], sizes = [1, 484], strides = [1, 1]} : vector<1x530xf32> to vector<1x484xf32>
    %17 = vector.extract_strided_slice %15 {offsets = [0, 1], sizes = [1, 484], strides = [1, 1]} : vector<1x530xf32> to vector<1x484xf32>
    %18 = vector.extract_strided_slice %15 {offsets = [0, 2], sizes = [1, 484], strides = [1, 1]} : vector<1x530xf32> to vector<1x484xf32>
    %19 = vector.extract_strided_slice %15 {offsets = [0, 22], sizes = [1, 484], strides = [1, 1]} : vector<1x530xf32> to vector<1x484xf32>
    %20 = vector.extract_strided_slice %15 {offsets = [0, 23], sizes = [1, 484], strides = [1, 1]} : vector<1x530xf32> to vector<1x484xf32>
    %21 = vector.extract_strided_slice %15 {offsets = [0, 24], sizes = [1, 484], strides = [1, 1]} : vector<1x530xf32> to vector<1x484xf32>
    %22 = vector.extract_strided_slice %15 {offsets = [0, 44], sizes = [1, 484], strides = [1, 1]} : vector<1x530xf32> to vector<1x484xf32>
    %23 = vector.extract_strided_slice %15 {offsets = [0, 45], sizes = [1, 484], strides = [1, 1]} : vector<1x530xf32> to vector<1x484xf32>
    %24 = vector.extract_strided_slice %15 {offsets = [0, 46], sizes = [1, 484], strides = [1, 1]} : vector<1x530xf32> to vector<1x484xf32>
    %25 = tpu.concatenate %16, %17, %18, %19, %20, %21, %22, %23, %24 in 0 : vector<1x484xf32>, vector<1x484xf32>, vector<1x484xf32>, vector<1x484xf32>, vector<1x484xf32>, vector<1x484xf32>, vector<1x484xf32>, vector<1x484xf32>, vector<1x484xf32> -> vector<9x484xf32>
    %cst = arith.constant dense<0.000000e+00> : vector<32x484xf32>
    %26 = tpu.matmul %4, %25, %cst {dimension_numbers = #tpu.dot_dimension_numbers<[1], [0], [0], [1], [0, 0, 1, 1], [], []>} : vector<32x9xf32>, vector<9x484xf32>, vector<32x484xf32> -> vector<32x484xf32>
    %27 = vector.broadcast %5 : vector<32x1xf32> to vector<32x484xf32>
    %28 = arith.addf %26, %27 : vector<32x484xf32>
    %cst_30 = arith.constant 0.000000e+00 : f32
    %29 = vector.broadcast %cst_30 : f32 to vector<32x484xf32>
    %30 = arith.maximumf %28, %29 : vector<32x484xf32>
    %31 = vector.extract_strided_slice %30 {offsets = [0, 0], sizes = [32, 480], strides = [1, 1]} : vector<32x484xf32> to vector<32x480xf32>
    %32 = vector.extract_strided_slice %30 {offsets = [0, 1], sizes = [32, 480], strides = [1, 1]} : vector<32x484xf32> to vector<32x480xf32>
    %33 = arith.maximumf %31, %32 : vector<32x480xf32>
    %34 = vector.extract_strided_slice %30 {offsets = [0, 2], sizes = [32, 480], strides = [1, 1]} : vector<32x484xf32> to vector<32x480xf32>
    %35 = arith.maximumf %33, %34 : vector<32x480xf32>
    %36 = vector.extract_strided_slice %30 {offsets = [0, 3], sizes = [32, 480], strides = [1, 1]} : vector<32x484xf32> to vector<32x480xf32>
    %37 = arith.maximumf %35, %36 : vector<32x480xf32>
    %38 = vector.extract_strided_slice %30 {offsets = [0, 4], sizes = [32, 480], strides = [1, 1]} : vector<32x484xf32> to vector<32x480xf32>
    %39 = arith.maximumf %37, %38 : vector<32x480xf32>
    %40 = vector.extract_strided_slice %39 {offsets = [0, 0], sizes = [32, 392], strides = [1, 1]} : vector<32x480xf32> to vector<32x392xf32>
    %41 = vector.extract_strided_slice %39 {offsets = [0, 22], sizes = [32, 392], strides = [1, 1]} : vector<32x480xf32> to vector<32x392xf32>
    %42 = arith.maximumf %40, %41 : vector<32x392xf32>
    %43 = vector.extract_strided_slice %39 {offsets = [0, 44], sizes = [32, 392], strides = [1, 1]} : vector<32x480xf32> to vector<32x392xf32>
    %44 = arith.maximumf %42, %43 : vector<32x392xf32>
    %45 = vector.extract_strided_slice %39 {offsets = [0, 66], sizes = [32, 392], strides = [1, 1]} : vector<32x480xf32> to vector<32x392xf32>
    %46 = arith.maximumf %44, %45 : vector<32x392xf32>
    %47 = vector.extract_strided_slice %39 {offsets = [0, 88], sizes = [32, 392], strides = [1, 1]} : vector<32x480xf32> to vector<32x392xf32>
    %48 = arith.maximumf %46, %47 : vector<32x392xf32>
    %cst_31 = arith.constant dense<0.000000e+00> : vector<32x50xf32>
    %49 = tpu.matmul %48, %0, %cst_31 {dimension_numbers = #tpu.dot_dimension_numbers<[1], [0], [0], [1], [0, 0, 1, 1], [], []>} : vector<32x392xf32>, vector<392x50xf32>, vector<32x50xf32> -> vector<32x50xf32>
    %50 = vector.extract_strided_slice %49 {offsets = [0, 0], sizes = [32, 36], strides = [1, 1]} : vector<32x50xf32> to vector<32x36xf32>
    %51 = vector.extract_strided_slice %49 {offsets = [0, 1], sizes = [32, 36], strides = [1, 1]} : vector<32x50xf32> to vector<32x36xf32>
    %52 = vector.extract_strided_slice %49 {offsets = [0, 2], sizes = [32, 36], strides = [1, 1]} : vector<32x50xf32> to vector<32x36xf32>
    %53 = vector.extract_strided_slice %49 {offsets = [0, 6], sizes = [32, 36], strides = [1, 1]} : vector<32x50xf32> to vector<32x36xf32>
    %54 = vector.extract_strided_slice %49 {offsets = [0, 7], sizes = [32, 36], strides = [1, 1]} : vector<32x50xf32> to vector<32x36xf32>
    %55 = vector.extract_strided_slice %49 {offsets = [0, 8], sizes = [32, 36], strides = [1, 1]} : vector<32x50xf32> to vector<32x36xf32>
    %56 = vector.extract_strided_slice %49 {offsets = [0, 12], sizes = [32, 36], strides = [1, 1]} : vector<32x50xf32> to vector<32x36xf32>
    %57 = vector.extract_strided_slice %49 {offsets = [0, 13], sizes = [32, 36], strides = [1, 1]} : vector<32x50xf32> to vector<32x36xf32>
    %58 = vector.extract_strided_slice %49 {offsets = [0, 14], sizes = [32, 36], strides = [1, 1]} : vector<32x50xf32> to vector<32x36xf32>
    %59 = tpu.concatenate %50, %51, %52, %53, %54, %55, %56, %57, %58 in 0 : vector<32x36xf32>, vector<32x36xf32>, vector<32x36xf32>, vector<32x36xf32>, vector<32x36xf32>, vector<32x36xf32>, vector<32x36xf32>, vector<32x36xf32>, vector<32x36xf32> -> vector<288x36xf32>
    %cst_32 = arith.constant dense<0.000000e+00> : vector<16x36xf32>
    %60 = tpu.matmul %6, %59, %cst_32 {dimension_numbers = #tpu.dot_dimension_numbers<[1], [0], [0], [1], [0, 0, 1, 1], [], []>} : vector<16x288xf32>, vector<288x36xf32>, vector<16x36xf32> -> vector<16x36xf32>
    %61 = vector.broadcast %7 : vector<16x1xf32> to vector<16x36xf32>
    %62 = arith.addf %60, %61 : vector<16x36xf32>
    %cst_33 = arith.constant 0.000000e+00 : f32
    %63 = vector.broadcast %cst_33 : f32 to vector<16x36xf32>
    %64 = arith.maximumf %62, %63 : vector<16x36xf32>
    %65 = vector.extract_strided_slice %64 {offsets = [0, 0], sizes = [16, 35], strides = [1, 1]} : vector<16x36xf32> to vector<16x35xf32>
    %66 = vector.extract_strided_slice %64 {offsets = [0, 1], sizes = [16, 35], strides = [1, 1]} : vector<16x36xf32> to vector<16x35xf32>
    %67 = arith.maximumf %65, %66 : vector<16x35xf32>
    %68 = vector.extract_strided_slice %67 {offsets = [0, 0], sizes = [16, 29], strides = [1, 1]} : vector<16x35xf32> to vector<16x29xf32>
    %69 = vector.extract_strided_slice %67 {offsets = [0, 6], sizes = [16, 29], strides = [1, 1]} : vector<16x35xf32> to vector<16x29xf32>
    %70 = arith.maximumf %68, %69 : vector<16x29xf32>
    %cst_34 = arith.constant dense<0.000000e+00> : vector<16x26xf32>
    %71 = tpu.matmul %70, %1, %cst_34 {dimension_numbers = #tpu.dot_dimension_numbers<[1], [0], [0], [1], [0, 0, 1, 1], [], []>} : vector<16x29xf32>, vector<29x26xf32>, vector<16x26xf32> -> vector<16x26xf32>
    %72 = vector.extract_strided_slice %71 {offsets = [0, 0], sizes = [16, 16], strides = [1, 1]} : vector<16x26xf32> to vector<16x16xf32>
    %73 = vector.extract_strided_slice %71 {offsets = [0, 1], sizes = [16, 16], strides = [1, 1]} : vector<16x26xf32> to vector<16x16xf32>
    %74 = vector.extract_strided_slice %71 {offsets = [0, 2], sizes = [16, 16], strides = [1, 1]} : vector<16x26xf32> to vector<16x16xf32>
    %75 = vector.extract_strided_slice %71 {offsets = [0, 4], sizes = [16, 16], strides = [1, 1]} : vector<16x26xf32> to vector<16x16xf32>
    %76 = vector.extract_strided_slice %71 {offsets = [0, 5], sizes = [16, 16], strides = [1, 1]} : vector<16x26xf32> to vector<16x16xf32>
    %77 = vector.extract_strided_slice %71 {offsets = [0, 6], sizes = [16, 16], strides = [1, 1]} : vector<16x26xf32> to vector<16x16xf32>
    %78 = vector.extract_strided_slice %71 {offsets = [0, 8], sizes = [16, 16], strides = [1, 1]} : vector<16x26xf32> to vector<16x16xf32>
    %79 = vector.extract_strided_slice %71 {offsets = [0, 9], sizes = [16, 16], strides = [1, 1]} : vector<16x26xf32> to vector<16x16xf32>
    %80 = vector.extract_strided_slice %71 {offsets = [0, 10], sizes = [16, 16], strides = [1, 1]} : vector<16x26xf32> to vector<16x16xf32>
    %81 = tpu.concatenate %72, %73, %74, %75, %76, %77, %78, %79, %80 in 0 : vector<16x16xf32>, vector<16x16xf32>, vector<16x16xf32>, vector<16x16xf32>, vector<16x16xf32>, vector<16x16xf32>, vector<16x16xf32>, vector<16x16xf32>, vector<16x16xf32> -> vector<144x16xf32>
    %cst_35 = arith.constant dense<0.000000e+00> : vector<16x16xf32>
    %82 = tpu.matmul %8, %81, %cst_35 {dimension_numbers = #tpu.dot_dimension_numbers<[1], [0], [0], [1], [0, 0, 1, 1], [], []>} : vector<16x144xf32>, vector<144x16xf32>, vector<16x16xf32> -> vector<16x16xf32>
    %83 = vector.broadcast %9 : vector<16x1xf32> to vector<16x16xf32>
    %84 = arith.addf %82, %83 : vector<16x16xf32>
    %cst_36 = arith.constant 0.000000e+00 : f32
    %85 = vector.broadcast %cst_36 : f32 to vector<16x16xf32>
    %86 = arith.maximumf %84, %85 : vector<16x16xf32>
    %cst_37 = arith.constant dense<0.000000e+00> : vector<16x50xf32>
    %87 = tpu.matmul %86, %2, %cst_37 {dimension_numbers = #tpu.dot_dimension_numbers<[1], [0], [0], [1], [0, 0, 1, 1], [], []>} : vector<16x16xf32>, vector<16x50xf32>, vector<16x50xf32> -> vector<16x50xf32>
    %88 = vector.extract_strided_slice %87 {offsets = [0, 0], sizes = [16, 36], strides = [1, 1]} : vector<16x50xf32> to vector<16x36xf32>
    %89 = vector.extract_strided_slice %87 {offsets = [0, 1], sizes = [16, 36], strides = [1, 1]} : vector<16x50xf32> to vector<16x36xf32>
    %90 = vector.extract_strided_slice %87 {offsets = [0, 2], sizes = [16, 36], strides = [1, 1]} : vector<16x50xf32> to vector<16x36xf32>
    %91 = vector.extract_strided_slice %87 {offsets = [0, 6], sizes = [16, 36], strides = [1, 1]} : vector<16x50xf32> to vector<16x36xf32>
    %92 = vector.extract_strided_slice %87 {offsets = [0, 7], sizes = [16, 36], strides = [1, 1]} : vector<16x50xf32> to vector<16x36xf32>
    %93 = vector.extract_strided_slice %87 {offsets = [0, 8], sizes = [16, 36], strides = [1, 1]} : vector<16x50xf32> to vector<16x36xf32>
    %94 = vector.extract_strided_slice %87 {offsets = [0, 12], sizes = [16, 36], strides = [1, 1]} : vector<16x50xf32> to vector<16x36xf32>
    %95 = vector.extract_strided_slice %87 {offsets = [0, 13], sizes = [16, 36], strides = [1, 1]} : vector<16x50xf32> to vector<16x36xf32>
    %96 = vector.extract_strided_slice %87 {offsets = [0, 14], sizes = [16, 36], strides = [1, 1]} : vector<16x50xf32> to vector<16x36xf32>
    %97 = tpu.concatenate %88, %89, %90, %91, %92, %93, %94, %95, %96 in 0 : vector<16x36xf32>, vector<16x36xf32>, vector<16x36xf32>, vector<16x36xf32>, vector<16x36xf32>, vector<16x36xf32>, vector<16x36xf32>, vector<16x36xf32>, vector<16x36xf32> -> vector<144x36xf32>
    %cst_38 = arith.constant dense<0.000000e+00> : vector<32x36xf32>
    %98 = tpu.matmul %10, %97, %cst_38 {dimension_numbers = #tpu.dot_dimension_numbers<[1], [0], [0], [1], [0, 0, 1, 1], [], []>} : vector<32x144xf32>, vector<144x36xf32>, vector<32x36xf32> -> vector<32x36xf32>
    %99 = vector.broadcast %11 : vector<32x1xf32> to vector<32x36xf32>
    %100 = arith.addf %98, %99 : vector<32x36xf32>
    %cst_39 = arith.constant 0.000000e+00 : f32
    %101 = vector.broadcast %cst_39 : f32 to vector<32x36xf32>
    %102 = arith.maximumf %100, %101 : vector<32x36xf32>
    %cst_40 = arith.constant dense<0.000000e+00> : vector<32x530xf32>
    %103 = tpu.matmul %102, %3, %cst_40 {dimension_numbers = #tpu.dot_dimension_numbers<[1], [0], [0], [1], [0, 0, 1, 1], [], []>} : vector<32x36xf32>, vector<36x530xf32>, vector<32x530xf32> -> vector<32x530xf32>
    %104 = vector.extract_strided_slice %103 {offsets = [0, 0], sizes = [32, 484], strides = [1, 1]} : vector<32x530xf32> to vector<32x484xf32>
    %105 = vector.extract_strided_slice %103 {offsets = [0, 1], sizes = [32, 484], strides = [1, 1]} : vector<32x530xf32> to vector<32x484xf32>
    %106 = vector.extract_strided_slice %103 {offsets = [0, 2], sizes = [32, 484], strides = [1, 1]} : vector<32x530xf32> to vector<32x484xf32>
    %107 = vector.extract_strided_slice %103 {offsets = [0, 22], sizes = [32, 484], strides = [1, 1]} : vector<32x530xf32> to vector<32x484xf32>
    %108 = vector.extract_strided_slice %103 {offsets = [0, 23], sizes = [32, 484], strides = [1, 1]} : vector<32x530xf32> to vector<32x484xf32>
    %109 = vector.extract_strided_slice %103 {offsets = [0, 24], sizes = [32, 484], strides = [1, 1]} : vector<32x530xf32> to vector<32x484xf32>
    %110 = vector.extract_strided_slice %103 {offsets = [0, 44], sizes = [32, 484], strides = [1, 1]} : vector<32x530xf32> to vector<32x484xf32>
    %111 = vector.extract_strided_slice %103 {offsets = [0, 45], sizes = [32, 484], strides = [1, 1]} : vector<32x530xf32> to vector<32x484xf32>
    %112 = vector.extract_strided_slice %103 {offsets = [0, 46], sizes = [32, 484], strides = [1, 1]} : vector<32x530xf32> to vector<32x484xf32>
    %113 = tpu.concatenate %104, %105, %106, %107, %108, %109, %110, %111, %112 in 0 : vector<32x484xf32>, vector<32x484xf32>, vector<32x484xf32>, vector<32x484xf32>, vector<32x484xf32>, vector<32x484xf32>, vector<32x484xf32>, vector<32x484xf32>, vector<32x484xf32> -> vector<288x484xf32>
    %cst_41 = arith.constant dense<0.000000e+00> : vector<1x484xf32>
    %114 = tpu.matmul %12, %113, %cst_41 {dimension_numbers = #tpu.dot_dimension_numbers<[1], [0], [0], [1], [0, 0, 1, 1], [], []>} : vector<1x288xf32>, vector<288x484xf32>, vector<1x484xf32> -> vector<1x484xf32>
    %115 = vector.broadcast %13 : vector<1x1xf32> to vector<1x484xf32>
    %116 = arith.addf %114, %115 : vector<1x484xf32>
    %117 = arith.negf %116 : vector<1x484xf32>
    %118 = math.exp %117 : vector<1x484xf32>
    %cst_42 = arith.constant 1.000000e+00 : f32
    %119 = vector.broadcast %cst_42 : f32 to vector<1x484xf32>
    %120 = arith.addf %119, %118 : vector<1x484xf32>
    %121 = arith.divf %119, %120 : vector<1x484xf32>
    %c0_43 = arith.constant 0 : index
    %c0_44 = arith.constant 0 : index
    %c0_45 = arith.constant 0 : index
    %122 = vector.load %arg16[%c0_43, %c0_44, %c0_45] : memref<1x1x484xf32, #tpu.memory_space<vmem>>, vector<1x1x484xf32>
    %123 = vector.shape_cast %122 : vector<1x1x484xf32> to vector<1x484xf32>
    %124 = vector.shape_cast %121 : vector<1x484xf32> to vector<1x1x484xf32>
    tpu.vector_store %arg16[%c0_43, %c0_44, %c0_45], %124 {strides = array<i32>} : memref<1x1x484xf32, #tpu.memory_space<vmem>>, vector<1x1x484xf32>,
    return
  }
  func.func @transform_0(%arg0: i32) -> (i32, i32, i32) {
    %c0_i32 = arith.constant 0 : i32
    %c0_i32_0 = arith.constant 0 : i32
    %c0_i32_1 = arith.constant 0 : i32
    return %arg0, %c0_i32, %c0_i32_0 : i32, i32, i32
  }
  func.func @transform_1(%arg0: i32) -> (i32, i32) {
    %c0_i32 = arith.constant 0 : i32
    %c0_i32_0 = arith.constant 0 : i32
    %c0_i32_1 = arith.constant 0 : i32
    return %c0_i32, %c0_i32_0 : i32, i32
  }
  func.func @transform_2(%arg0: i32) -> (i32, i32) {
    %c0_i32 = arith.constant 0 : i32
    %c0_i32_0 = arith.constant 0 : i32
    %c0_i32_1 = arith.constant 0 : i32
    return %c0_i32, %c0_i32_0 : i32, i32
  }
  func.func @transform_3(%arg0: i32) -> (i32, i32) {
    %c0_i32 = arith.constant 0 : i32
    %c0_i32_0 = arith.constant 0 : i32
    %c0_i32_1 = arith.constant 0 : i32
    return %c0_i32, %c0_i32_0 : i32, i32
  }
  func.func @transform_4(%arg0: i32) -> (i32, i32) {
    %c0_i32 = arith.constant 0 : i32
    %c0_i32_0 = arith.constant 0 : i32
    %c0_i32_1 = arith.constant 0 : i32
    return %c0_i32, %c0_i32_0 : i32, i32
  }
  func.func @transform_5(%arg0: i32) -> (i32, i32) {
    %c0_i32 = arith.constant 0 : i32
    %c0_i32_0 = arith.constant 0 : i32
    %c0_i32_1 = arith.constant 0 : i32
    return %c0_i32, %c0_i32_0 : i32, i32
  }
  func.func @transform_6(%arg0: i32) -> (i32, i32) {
    %c0_i32 = arith.constant 0 : i32
    %c0_i32_0 = arith.constant 0 : i32
    %c0_i32_1 = arith.constant 0 : i32
    return %c0_i32, %c0_i32_0 : i32, i32
  }
  func.func @transform_7(%arg0: i32) -> (i32, i32) {
    %c0_i32 = arith.constant 0 : i32
    %c0_i32_0 = arith.constant 0 : i32
    %c0_i32_1 = arith.constant 0 : i32
    return %c0_i32, %c0_i32_0 : i32, i32
  }
  func.func @transform_8(%arg0: i32) -> (i32, i32) {
    %c0_i32 = arith.constant 0 : i32
    %c0_i32_0 = arith.constant 0 : i32
    %c0_i32_1 = arith.constant 0 : i32
    return %c0_i32, %c0_i32_0 : i32, i32
  }
  func.func @transform_9(%arg0: i32) -> (i32, i32) {
    %c0_i32 = arith.constant 0 : i32
    %c0_i32_0 = arith.constant 0 : i32
    %c0_i32_1 = arith.constant 0 : i32
    return %c0_i32, %c0_i32_0 : i32, i32
  }
  func.func @transform_10(%arg0: i32) -> (i32, i32) {
    %c0_i32 = arith.constant 0 : i32
    %c0_i32_0 = arith.constant 0 : i32
    %c0_i32_1 = arith.constant 0 : i32
    return %c0_i32, %c0_i32_0 : i32, i32
  }
  func.func @transform_11(%arg0: i32) -> (i32, i32) {
    %c0_i32 = arith.constant 0 : i32
    %c0_i32_0 = arith.constant 0 : i32
    %c0_i32_1 = arith.constant 0 : i32
    return %c0_i32, %c0_i32_0 : i32, i32
  }
  func.func @transform_12(%arg0: i32) -> (i32, i32) {
    %c0_i32 = arith.constant 0 : i32
    %c0_i32_0 = arith.constant 0 : i32
    %c0_i32_1 = arith.constant 0 : i32
    return %c0_i32, %c0_i32_0 : i32, i32
  }
  func.func @transform_13(%arg0: i32) -> (i32, i32) {
    %c0_i32 = arith.constant 0 : i32
    %c0_i32_0 = arith.constant 0 : i32
    %c0_i32_1 = arith.constant 0 : i32
    return %c0_i32, %c0_i32_0 : i32, i32
  }
  func.func @transform_14(%arg0: i32) -> (i32, i32) {
    %c0_i32 = arith.constant 0 : i32
    %c0_i32_0 = arith.constant 0 : i32
    %c0_i32_1 = arith.constant 0 : i32
    return %c0_i32, %c0_i32_0 : i32, i32
  }
  func.func @transform_15(%arg0: i32) -> (i32, i32, i32) {
    %c0_i32 = arith.constant 0 : i32
    %c0_i32_0 = arith.constant 0 : i32
    %c0_i32_1 = arith.constant 0 : i32
    return %arg0, %c0_i32, %c0_i32_0 : i32, i32, i32
  }
}

</mosaic_0001>

<bundles_post_ra>
// kernel: autoencoder_forward.1
= control target key start
LH: loop header
LB: loop body
LE: loop exit
PB: predicated region body
PF: predicated region fallthrough
CT: control target
= control target key end

     0   :  { %s4500_s20 = smov 0   ;;  %s6725_s0 = inlined_call_operand.vmem [shape: f32[2,1,530], index: 0, kind: input, shape index: {}]   ;;  %s6726_s1 = inlined_call_operand.vmem [shape: f32[392,50], index: 1, kind: input, shape index: {}]   ;;  %s6727_s2 = inlined_call_operand.vmem [shape: f32[29,26], index: 2, kind: input, shape index: {}]   ;;  %s6728_s3 = inlined_call_operand.vmem [shape: f32[16,50], index: 3, kind: input, shape index: {}]   ;;  %s6729_s4 = inlined_call_operand.vmem [shape: f32[36,530], index: 4, kind: input, shape index: {}]   ;;  %s6730_s5 = inlined_call_operand.vmem [shape: f32[32,9], index: 5, kind: input, shape index: {}]   ;;  %s6731_s6 = inlined_call_operand.vmem [shape: f32[32,1], index: 6, kind: input, shape index: {}]   ;;  %s6732_s7 = inlined_call_operand.vmem [shape: f32[16,288], index: 7, kind: input, shape index: {}]   ;;  %s6733_s8 = inlined_call_operand.vmem [shape: f32[16,1], index: 8, kind: input, shape index: {}]   ;;  %s6734_s9 = inlined_call_operand.vmem [shape: f32[16,144], index: 9, kind: input, shape index: {}]   ;;  %s6735_s10 = inlined_call_operand.vmem [shape: f32[16,1], index: 10, kind: input, shape index: {}]   ;;  %s6736_s11 = inlined_call_operand.vmem [shape: f32[32,144], index: 11, kind: input, shape index: {}]   ;;  %s6737_s12 = inlined_call_operand.vmem [shape: f32[32,1], index: 12, kind: input, shape index: {}]   ;;  %s6738_s13 = inlined_call_operand.vmem [shape: f32[1,288], index: 13, kind: input, shape index: {}]   ;;  %s6739_s14 = inlined_call_operand.<no memory space> [shape: f32[1,1], index: 14, kind: input, shape index: {}]   ;;  %s6740_s15 = inlined_call_operand.vmem [shape: f32[2,1,484], index: 15, kind: output, shape index: {}]  }
   0x1   :  { %v20_v0 = vstv %s6739_s14 }
   0x2   :  { %21 = vst [vmem:[#allocation2] sm:$0x1] %v20_v0 }
   0x3 LB: > { %s3882_s21 = sadd.s32 4294967295, %s4391_s20   ;;  %p3886_p0 = scmp.ge.s32.totalorder %s4391_s20, 1  ;;  %s4391_s20 = sphi %s4500_s20, %s27_s20  }
   0x4   : > { %p438_p1 = scmp.lt.s32.totalorder %s4391_s20, 3 }
   0x6   : > { %p439_p2 = pnand %p3886_p0, %p438_p1 }
   0x8   : > { %442 = sbr.rel (%p439_p2) target bundleno = 3440 (0xd70), region = 80 }
   0xd   : > { %p484_p3 = scmp.lt.s32.totalorder %s3882_s21, 1  ;;  %v6759_v1 = vlaneseq  ;;  %s6757_s25 = smov 127   ;;  %v6760_v14 = vmov 0.0   ;;  %v576_v15 = vld [vmem:[%s6731_s6] sm:$0xff]  ;;  %v4402_v16 = vmov 0   ;;  %v577_v17 = vld [vmem:[%s6731_s6 + $0x8] sm:$0xff] }
   0xe   : > { %s4394_s26 = smov 126   ;;  %s6753_s27 = smov 106   ;;  %996 = vmatprep.mubr.f32.mxu1 %v6760_v14  ;;  %907 = vmatprep.mubr.f32.mxu0 %v6760_v14  ;;  %v578_v18 = vld [vmem:[%s6731_s6 + $0x10] sm:$0xff]  ;;  %v579_v19 = vld [vmem:[%s6731_s6 + $0x18] sm:$0xff]  ;;  %vm762_vm0 = vcmask 670720   ;;  %vm767_vm1 = vcmask 1040384  }
   0xf   : > { %s6949_s21 = smov (!%p484_p3, %s3882_s21), 1  ;;  %v4511_v2 = vshrl.u32 %v6759_v1, 7  ;;  %s6741_s28 = smov 105   ;;  %4127 = vset.pattern.permute.xlu1 %v4402_v16  ;;  %4128 = vset.pattern.permute.xlu0 %v4402_v16  ;;  %vm638_vm2 = vcmask 1039360   ;;  %vm654_vm3 = vcmask 1031168   ;;  %vm772_vm4 = vcmask 1041408  }
  0x10   : > { %s4094_s14 = smul.u32 5, %s6949_s21  ;;  %s6743_s29 = smov 104   ;;  %vm670_vm5 = vcmask 867328   ;;  %vm777_vm6 = vcmask 1042432   ;;  %vm686_vm7 = vcmask 859136   ;;  %vm782_vm8 = vcmask 1043456  }
  0x11   : > { %v6762_v3 = vsub.s32 1, %v4511_v2  ;;  %v4516_v4 = vsub.s32 0, %v4511_v2  ;;  %v6761_v5 = vsub.s32 2, %v4511_v2  ;;  %v624_v6 = vsub.s32 3, %v4511_v2  ;;  %s6751_s30 = smov 84   ;;  %s6747_s16 = smov 82  }
  0x12   : > { %s487_s24 = scalar_lea.vmem %s6725_s0, %s4094_s14  ;;  %v712_v12 = vsub.s32 4, %v4511_v2  ;;  %s6745_s17 = smov 83   ;;  %vm702_vm9 = vcmask 850944   ;;  %vm787_vm10 = vcmask 1044480   ;;  %vm724_vm11 = vcmask 687104  }
  0x13   : > { %6805 = vst [vmem:[#allocation3_spill] sm:$0xff] %v4516_v4  ;;  %v608_v7 = vld [vmem:[%s487_s24] sm:$0x1f]  ;;  %vm743_vm12 = vcmask 678912   ;;  %vm792_vm13 = vcmask 1045504   ;;  %vm797_vm14 = vcmask 1046528  }
  0x14   : > { %v4525_v8 = vrot.slane %v608_v7, %v6762_v3  ;;  %v4528_v9 = vrot.slane %v608_v7, %v4516_v4  ;;  %v4536_v10 = vrot.slane %v608_v7, %v6761_v5  ;;  %v4538_v11 = vrot.slane %v608_v7, %v624_v6  ;;  %s4406_s24 = smov 62   ;;  %s4410_s18 = smov 120  }
  0x15   : > { %v713_v13 = vrot.slane %v608_v7, %v712_v12  ;;  %vm822_vm15 = vcmask 72704   ;;  %s6755_s23 = smov 114   ;;  %s4414_s22 = smov 123  }
  0x16   : > { %632 = vrot.lane.b32.xlu0 %v4525_v8, %s6757_s25  ;;  %630 = vrot.lane.b32.xlu1 %v4528_v9, %s6757_s25  ;;  %s6806_s19 = smov 124   ;;  %s3887_s14 = sshll.u32 %s6949_s21, 2 }
  0x1a   : > { %634 = vrot.lane.b32.xlu0 %v4536_v10, %s6757_s25  ;;  %636 = vrot.lane.b32.xlu1 %v4538_v11, %s6757_s25 }
  0x1e   : > { %648 = vrot.lane.b32.xlu0 %v4525_v8, %s4394_s26  ;;  %650 = vrot.lane.b32.xlu1 %v4536_v10, %s4394_s26 }
  0x22   : > { %646 = vrot.lane.b32.xlu0 %v4528_v9, %s4394_s26  ;;  %652 = vrot.lane.b32.xlu1 %v4538_v11, %s4394_s26 }
  0x26   : > { %664 = vrot.lane.b32.xlu0 %v4525_v8, %s6753_s27  ;;  %666 = vrot.lane.b32.xlu1 %v4536_v10, %s6753_s27 }
  0x2a   : > { %662 = vrot.lane.b32.xlu0 %v4528_v9, %s6753_s27  ;;  %668 = vrot.lane.b32.xlu1 %v4538_v11, %s6753_s27 }
  0x2e   : > { %680 = vrot.lane.b32.xlu0 %v4525_v8, %s6741_s28  ;;  %682 = vrot.lane.b32.xlu1 %v4536_v10, %s6741_s28 }
  0x32   : > { %678 = vrot.lane.b32.xlu0 %v4528_v9, %s6741_s28  ;;  %684 = vrot.lane.b32.xlu1 %v4538_v11, %s6741_s28  ;;  %s6749_s28 = smov 124  }
  0x36   : > { %696 = vrot.lane.b32.xlu0 %v4525_v8, %s6743_s29  ;;  %698 = vrot.lane.b32.xlu1 %v4536_v10, %s6743_s29 }
  0x3a   : > { %694 = vrot.lane.b32.xlu0 %v4528_v9, %s6743_s29  ;;  %700 = vrot.lane.b32.xlu1 %v4538_v11, %s6743_s29  ;;  %s4404_s29 = smov 125  }
  0x3e   : > { %716 = vrot.lane.b32.xlu0 %v4525_v8, %s6751_s30  ;;  %718 = vrot.lane.b32.xlu1 %v4536_v10, %s6751_s30 }
  0x42   : > { %720 = vrot.lane.b32.xlu0 %v4538_v11, %s6751_s30  ;;  %722 = vrot.lane.b32.xlu1 %v713_v13, %s6751_s30 }
  0x46   : > { %754 = vrot.lane.b32.xlu0 %v4525_v8, %s6747_s16  ;;  %756 = vrot.lane.b32.xlu1 %v4536_v10, %s6747_s16 }
  0x4a   : > { %758 = vrot.lane.b32.xlu0 %v4538_v11, %s6747_s16  ;;  %760 = vrot.lane.b32.xlu1 %v713_v13, %s6747_s16 }
  0x4e   : > { %714 = vrot.lane.b32.xlu0 %v4528_v9, %s6751_s30  ;;  %735 = vrot.lane.b32.xlu1 %v4525_v8, %s6745_s17 }
  0x52   : > { %737 = vrot.lane.b32.xlu0 %v4536_v10, %s6745_s17  ;;  %739 = vrot.lane.b32.xlu1 %v4538_v11, %s6745_s17 }
  0x56   : > { %741 = vrot.lane.b32.xlu0 %v713_v13, %s6745_s17  ;;  %752 = vrot.lane.b32.xlu1 %v4528_v9, %s6747_s16  ;;  %s4411_s16 = smov 121  }
  0x5a   : > { %733 = vrot.lane.b32.xlu0 %v4528_v9, %s6745_s17  ;;  %804 = vperm.xlu1 %4127, %v576_v15   ;;  %s4405_s17 = smov 40  }
  0x5e   : > { %809 = vperm.xlu0 %4128, %v577_v17   ;;  %814 = vperm.xlu1 %4127, %v578_v18  }
  0x62   : > { %819 = vperm.xlu1 %4127, %v579_v19  }
  0x88   : > { %v633_v20 = vpop.permute.xlu0 %632  ;;  %v631_v21 = vpop.permute.xlu1 %630 }
  0x89   : > { %v639_v51 = vsel %vm638_vm2, %v631_v21, %v633_v20 }
  0x8a   : > { %v768_v59 = vsel %vm767_vm1, %v4528_v9, %v639_v51 }
  0x8c   : > { %v635_v22 = vpop.permute.xlu0 %634  ;;  %v637_v23 = vpop.permute.xlu1 %636 }
  0x8d   : > { %v640_v52 = vsel %vm638_vm2, %v633_v20, %v635_v22  ;;  %v641_v53 = vsel %vm638_vm2, %v635_v22, %v637_v23  ;;  %v771_v61 = vsel %vm767_vm1, %v4538_v11, %v637_v23 }
  0x8e   : > { %v769_v60 = vsel %vm767_vm1, %v4525_v8, %v640_v52  ;;  %v770_v63 = vsel %vm767_vm1, %v4536_v10, %v641_v53  ;;  %v573_v53 = vld [vmem:[%s6730_s5 + $0x8] sm:$0xff] }
  0x90   : > { %v649_v24 = vpop.permute.xlu0 %648  ;;  %v651_v25 = vpop.permute.xlu1 %650 }
  0x91   : > { %v656_v54 = vsel %vm654_vm3, %v649_v24, %v651_v25 }
  0x92   : > { %v774_v9 = vsel %vm772_vm4, %v769_v60, %v656_v54  ;;  %v574_v54 = vld [vmem:[%s6730_s5 + $0x10] sm:$0xff] }
  0x94   : > { %v647_v26 = vpop.permute.xlu0 %646  ;;  %v4618_v27 = vpop.permute.xlu1 %652 }
  0x95   : > { %v655_v55 = vsel %vm654_vm3, %v647_v26, %v649_v24  ;;  %v657_v56 = vsel %vm654_vm3, %v651_v25, %v4618_v27  ;;  %v776_v11 = vsel %vm772_vm4, %v771_v61, %v4618_v27 }
  0x96   : > { %v773_v8 = vsel %vm772_vm4, %v768_v59, %v655_v55  ;;  %v775_v12 = vsel %vm772_vm4, %v770_v63, %v657_v56  ;;  %v575_v55 = vld [vmem:[%s6730_s5 + $0x18] sm:$0xff]  ;;  %vm1314_vm4 = vcmask 1014784  }
  0x98   : > { %v665_v28 = vpop.permute.xlu0 %664  ;;  %v667_v29 = vpop.permute.xlu1 %666 }
  0x99   : > { %v672_v62 = vsel %vm670_vm5, %v665_v28, %v667_v29 }
  0x9a   : > { %v779_v13 = vsel %vm777_vm6, %v774_v9, %v672_v62 }
  0x9c   : > { %v663_v30 = vpop.permute.xlu0 %662  ;;  %v669_v31 = vpop.permute.xlu1 %668 }
  0x9d   : > { %v671_v0 = vsel %vm670_vm5, %v663_v30, %v665_v28  ;;  %v673_v6 = vsel %vm670_vm5, %v667_v29, %v669_v31  ;;  %v781_v10 = vsel %vm777_vm6, %v776_v11, %v669_v31 }
  0x9e   : > { %v778_v19 = vsel %vm777_vm6, %v773_v8, %v671_v0  ;;  %v780_v20 = vsel %vm777_vm6, %v775_v12, %v673_v6  ;;  %vm1681_vm6 = vcmask 64512  }
  0xa0   : > { %v4620_v32 = vpop.permute.xlu0 %680  ;;  %v683_v33 = vpop.permute.xlu1 %682 }
  0xa1   : > { %v688_v7 = vsel %vm686_vm7, %v4620_v32, %v683_v33 }
  0xa2   : > { %v784_v21 = vsel %vm782_vm8, %v779_v13, %v688_v7 }
  0xa4   : > { %v4622_v34 = vpop.permute.xlu0 %678  ;;  %v4624_v35 = vpop.permute.xlu1 %684 }
  0xa5   : > { %v689_v15 = vsel %vm686_vm7, %v683_v33, %v4624_v35  ;;  %v687_v23 = vsel %vm686_vm7, %v4622_v34, %v4620_v32  ;;  %v786_v24 = vsel %vm782_vm8, %v781_v10, %v4624_v35 }
  0xa6   : > { %v785_v27 = vsel %vm782_vm8, %v780_v20, %v689_v15 }
  0xa8   : > { %v4626_v36 = vpop.permute.xlu0 %696  ;;  %v4628_v37 = vpop.permute.xlu1 %698 }
  0xa9   : > { %v704_v16 = vsel %vm702_vm9, %v4626_v36, %v4628_v37 }
  0xaa   : > { %v789_v28 = vsel %vm787_vm10, %v784_v21, %v704_v16 }
  0xac   : > { %v4630_v38 = vpop.permute.xlu0 %694  ;;  %v4632_v39 = vpop.permute.xlu1 %700 }
  0xad   : > { %v705_v22 = vsel %vm702_vm9, %v4628_v37, %v4632_v39  ;;  %v703_v31 = vsel %vm702_vm9, %v4630_v38, %v4626_v36  ;;  %v791_v33 = vsel %vm787_vm10, %v786_v24, %v4632_v39 }
  0xae   : > { %v790_v32 = vsel %vm787_vm10, %v785_v27, %v705_v22 }
  0xb0   : > { %v4634_v40 = vpop.permute.xlu0 %716  ;;  %v4636_v41 = vpop.permute.xlu1 %718 }
  0xb1   : > { %v726_v25 = vsel %vm724_vm11, %v4634_v40, %v4636_v41 }
  0xb4   : > { %v4638_v42 = vpop.permute.xlu0 %720  ;;  %v723_v43 = vpop.permute.xlu1 %722 }
  0xb5   : > { %v728_v26 = vsel %vm724_vm11, %v4638_v42, %v723_v43  ;;  %v727_v29 = vsel %vm724_vm11, %v4636_v41, %v4638_v42  ;;  %v794_v42 = vsel %vm792_vm13, %v789_v28, %v726_v25 }
  0xb8   : > { %v4640_v44 = vpop.permute.xlu0 %754  ;;  %v757_v45 = vpop.permute.xlu1 %756 }
  0xb9   : > { %v764_v46 = vsel %vm762_vm0, %v4640_v44, %v757_v45 }
  0xba   : > { %3888 = vmatprep.subr.msk.mxu0 %vm767_vm1, %v764_v46  ;;  %v795_v46 = vsel %vm792_vm13, %v790_v32, %v727_v29 }
  0xbc   : > { %v759_v47 = vpop.permute.xlu0 %758  ;;  %v761_v48 = vpop.permute.xlu1 %760 }
  0xbd   : > { %v766_v49 = vsel %vm762_vm0, %v759_v47, %v761_v48  ;;  %v765_v50 = vsel %vm762_vm0, %v757_v45, %v759_v47  ;;  %v796_v45 = vsel %vm792_vm13, %v791_v33, %v728_v26  ;;  %v572_v47 = vld [vmem:[%s6730_s5] sm:$0xff] }
  0xbe   : > { %3894 = vmatprep.subr.msk.mxu1 %vm767_vm1, %v766_v49 }
  0xbf   : > { %3895 = vmatpush1.msk.msra.mxu1 %vm767_vm1, %v765_v50 }
  0xc0   : > { %v715_v57 = vpop.permute.xlu0 %714  ;;  %v736_v58 = vpop.permute.xlu1 %735 }
  0xc1   : > { %v725_v36 = vsel %vm724_vm11, %v715_v57, %v4634_v40 }
  0xc4   : > { %v738_v17 = vpop.permute.xlu0 %737  ;;  %v740_v18 = vpop.permute.xlu1 %739 }
  0xc5   : > { %v745_v30 = vsel %vm743_vm12, %v736_v58, %v738_v17  ;;  %v746_v34 = vsel %vm743_vm12, %v738_v17, %v740_v18 }
  0xc6   : > { %v799_v38 = vsel %vm797_vm14, %v794_v42, %v745_v30  ;;  %v800_v48 = vsel %vm797_vm14, %v795_v46, %v746_v34 }
  0xc8   : > { %v742_v35 = vpop.permute.xlu0 %741  ;;  %v753_v37 = vpop.permute.xlu1 %752 }
  0xc9   : > { %v747_v43 = vsel %vm743_vm12, %v740_v18, %v742_v35  ;;  %v763_v41 = vsel %vm762_vm0, %v753_v37, %v4640_v44  ;;  %v783_v44 = vsel %vm782_vm8, %v778_v19, %v687_v23 }
  0xca   : > { %3889 = vmatpush1.msk.msra.mxu0 %vm767_vm1, %v763_v41  ;;  %v801_v39 = vsel %vm797_vm14, %v796_v45, %v747_v43  ;;  %v788_v40 = vsel %vm787_vm10, %v783_v44, %v703_v31  ;;  %vm1237_vm1 = vcmask 1022976  }
  0xcb   : > { %873 = vmatprep.subr.mxu0 %v799_v38  ;;  %962 = vmatprep.subr.mxu1 %v801_v39  ;;  %v793_v51 = vsel %vm792_vm13, %v788_v40, %v725_v36  ;;  %vm1559_vm13 = vcmask 506880  }
  0xcc   : > { %v734_v49 = vpop.permute.xlu0 %733  ;;  %963 = vmatpush1.msra.mxu1 %v800_v48 }
  0xcd   : > { %v744_v50 = vsel %vm743_vm12, %v734_v49, %v736_v58  ;;  %3896 = vmatmul.mubr.msk.f32.vlgmr.msra.gmra.mxu1 %vm822_vm15, %v572_v47  ;;  %1779 = vmatprep.subr.mxu1 %v6760_v14 }
  0xce   : > { %v798_v52 = vsel %vm797_vm14, %v793_v51, %v744_v50  ;;  %1002 = vmatprep.mubr.f32.mxu1 %v6760_v14  ;;  %vm1636_vm14 = vcmask 326656  }
  0xcf   : > { %874 = vmatpush1.msra.mxu0 %v798_v52 }
  0xd0   : > { %3890 = vmatmul.mubr.msk.f32.vlgmr.msra.gmra.mxu0 %vm822_vm15, %v572_v47 }
  0xd1   : > { %3897 = vmatmul.mubr.msk.f32.gmra.mxu1 %vm822_vm15, %v573_v53  ;;  %913 = vmatprep.mubr.f32.mxu0 %v6760_v14 }
  0xd2   : > { %1008 = vmatprep.mubr.f32.mxu1 %v6760_v14 }
  0xd4   : > { %3891 = vmatmul.mubr.msk.f32.gmra.mxu0 %vm822_vm15, %v573_v53 }
  0xd5   : > { %3898 = vmatmul.mubr.msk.f32.gmra.mxu1 %vm822_vm15, %v574_v54  ;;  %919 = vmatprep.mubr.f32.mxu0 %v6760_v14  ;;  %v805_v57 = vpop.permute.xlu1 %804 }
  0xd6   : > { %1014 = vmatprep.mubr.f32.mxu1 %v6760_v14 }
  0xd8   : > { %3892 = vmatmul.mubr.msk.f32.gmra.mxu0 %vm822_vm15, %v574_v54 }
  0xd9   : > { %3899 = vmatmul.mubr.msk.f32.gmra.mxu1 %vm822_vm15, %v575_v55  ;;  %925 = vmatprep.mubr.f32.mxu0 %v6760_v14  ;;  %v810_v7 = vpop.permute.xlu0 %809  ;;  %v815_v30 = vpop.permute.xlu1 %814 }
  0xdc   : > { %3893 = vmatmul.mubr.msk.f32.gmra.mxu0 %vm822_vm15, %v575_v55  ;;  %vm1974_vm15 = vcmask 261120  }
  0xdd   : > { %v820_v42 = vpop.permute.xlu1 %819 }
 0x18d   : > { %v998_v56 = vpop.f32.mrf.mxu1 }
 0x18e   : > { %v4758_v0 = vadd.f32 %v998_v56, %v805_v57  ;;  %v539_v56 = vld [vmem:[%s6726_s1 + $0x178] sm:$0xff] }
 0x18f   : > { %v1000_v58 = vpop.f32.mrf.mxu1  ;;  %1780 = vmatpush1.msra.mxu1 %v539_v56 }
 0x190   : > { %v1001_v59 = vadd.f32 %v1000_v58, %v805_v57  ;;  %v909_v60 = vpop.f32.mrf.mxu0  ;;  %v1023_v12 = vmax.f32 %v4758_v0, 0.0  ;;  %1781 = vmatprep.subr.mxu1 %v6760_v14  ;;  %v537_v58 = vld [vmem:[%s6726_s1 + $0x168] sm:$0xff] }
 0x191   : > { %v1004_v9 = vpop.f32.mrf.mxu1  ;;  %v4796_v23 = vadd.f32 %v909_v60, %v805_v57  ;;  %v535_v60 = vld [vmem:[%s6726_s1 + $0x158] sm:$0xff] }
 0x192   : > { %v4754_v61 = vmax.f32 %v1001_v59, 0.0  ;;  %v911_v62 = vpop.f32.mrf.mxu0  ;;  %v4768_v13 = vadd.f32 %v1004_v9, %v810_v7  ;;  %v536_v59 = vld [vmem:[%s6726_s1 + $0x160] sm:$0xff] }
 0x193   : > { %v4756_v63 = vadd.f32 %v911_v62, %v805_v57  ;;  %v1006_v18 = vpop.f32.mrf.mxu1  ;;  %v1021_v26 = vmax.f32 %v4796_v23, 0.0  ;;  %v538_v57 = vld [vmem:[%s6726_s1 + $0x170] sm:$0xff] }
 0x194   : > { %1135 = vrot.lane.b32.xlu0 %v4754_v61, %s4394_s26  ;;  %1059 = vrot.lane.b32.xlu1 %v4754_v61, %s6757_s25  ;;  %v915_v8 = vpop.f32.mrf.mxu0  ;;  %v1027_v16 = vmax.f32 %v4768_v13, 0.0  ;;  %v1007_v19 = vadd.f32 %v1006_v18, %v810_v7  ;;  %v534_v62 = vld [vmem:[%s6726_s1 + $0x150] sm:$0xff] }
 0x195   : > { %v1022_v6 = vmax.f32 %v4756_v63, 0.0  ;;  %v4766_v11 = vadd.f32 %v915_v8, %v810_v7  ;;  %v1010_v25 = vpop.f32.mrf.mxu1  ;;  %1782 = vmatpush1.msra.mxu1 %v538_v57  ;;  %v533_v8 = vld [vmem:[%s6726_s1 + $0x148] sm:$0xff] }
 0x196   : > { %v917_v20 = vpop.f32.mrf.mxu0  ;;  %v4792_v21 = vmax.f32 %v1007_v19, 0.0  ;;  %v4820_v35 = vadd.f32 %v1010_v25, %v815_v30  ;;  %1783 = vmatprep.subr.mxu1 %v6760_v14 }
 0x197   : > { %v4134_v10 = vpack.i.bf16 %v1023_v12, %v1022_v6  ;;  %v1025_v15 = vmax.f32 %v4766_v11, 0.0  ;;  %v4794_v22 = vadd.f32 %v917_v20, %v810_v7  ;;  %v1012_v28 = vpop.f32.mrf.mxu1  ;;  %1784 = vmatpush1.msra.mxu1 %v537_v58  ;;  %v528_v58 = vld [vmem:[%s6726_s1 + $0x120] sm:$0xff] }
 0x198   : > { %1288 = vrot.lane.b32.xlu0 %v4754_v61, %s6749_s28  ;;  %1211 = vrot.lane.b32.xlu1 %v4754_v61, %s4404_s29  ;;  %v921_v29 = vpop.f32.mrf.mxu0  ;;  %v1013_v31 = vadd.f32 %v1012_v28, %v815_v30  ;;  %v1031_v41 = vmax.f32 %v4820_v35, 0.0 }
 0x199   : > { %v4154_v17 = vpack.i.bf16 %v1025_v15, %v1027_v16  ;;  %v1026_v24 = vmax.f32 %v4794_v22, 0.0  ;;  %v1016_v45 = vpop.f32.mrf.mxu1  ;;  %v4859_v52 = vadd.f32 %v921_v29, %v815_v30  ;;  %1785 = vmatprep.subr.mxu1 %v6760_v14  ;;  %v515_v22 = vld [vmem:[%s6726_s1 + $0xb8] sm:$0xff] }
 0x19a   : > { %v923_v32 = vpop.f32.mrf.mxu0  ;;  %v4816_v33 = vmax.f32 %v1013_v31, 0.0  ;;  %v4838_v39 = vadd.f32 %v1016_v45, %v820_v42  ;;  %1786 = vmatpush1.msra.mxu1 %v536_v59  ;;  %v529_v45 = vld [vmem:[%s6726_s1 + $0x128] sm:$0xff] }
 0x19b   : > { %v4174_v27 = vpack.i.bf16 %v1026_v24, %v1021_v26  ;;  %v4818_v34 = vadd.f32 %v923_v32, %v815_v30  ;;  %v1018_v47 = vpop.f32.mrf.mxu1  ;;  %v1029_v54 = vmax.f32 %v4859_v52, 0.0  ;;  %1787 = vmatprep.subr.mxu1 %v6760_v14 }
 0x19c   : > { %4135 = vrot.lane.b32.xlu1 %v4134_v10, %s4394_s26  ;;  %4130 = vrot.lane.b32.xlu0 %v4134_v10, %s6757_s25  ;;  %v927_v43 = vpop.f32.mrf.mxu0  ;;  %v1035_v44 = vmax.f32 %v4838_v39, 0.0  ;;  %v1019_v48 = vadd.f32 %v1018_v47, %v820_v42 }
 0x19d   : > { %v1030_v37 = vmax.f32 %v4818_v34, 0.0  ;;  %v4832_v36 = vadd.f32 %v927_v43, %v820_v42  ;;  %1788 = vmatpush1.msra.mxu1 %v535_v60 }
 0x19e   : > { %v4852_v49 = vmax.f32 %v1019_v48, 0.0  ;;  %v929_v50 = vpop.f32.mrf.mxu0  ;;  %1789 = vmatprep.subr.mxu1 %v6760_v14 }
 0x19f   : > { %v4194_v38 = vpack.i.bf16 %v1031_v41, %v1030_v37  ;;  %v1033_v46 = vmax.f32 %v4832_v36, 0.0  ;;  %v4857_v51 = vadd.f32 %v929_v50, %v820_v42  ;;  %1790 = vmatpush1.msra.mxu1 %v534_v62  ;;  %v527_v62 = vld [vmem:[%s6726_s1 + $0x118] sm:$0xff] }
 0x1a0   : > { %4145 = vrot.lane.b32.xlu1 %v4134_v10, %s6749_s28  ;;  %4140 = vrot.lane.b32.xlu0 %v4134_v10, %s4404_s29  ;;  %v532_v10 = vld [vmem:[%s6726_s1 + $0x140] sm:$0xff] }
 0x1a1   : > { %v4214_v40 = vpack.i.bf16 %v1033_v46, %v1035_v44  ;;  %v1034_v53 = vmax.f32 %v4857_v51, 0.0  ;;  %1791 = vmatprep.subr.mxu1 %v6760_v14 }
 0x1a2   : > { %1792 = vmatpush1.msra.mxu1 %v533_v8 }
 0x1a3   : > { %v4234_v55 = vpack.i.bf16 %v1034_v53, %v1029_v54  ;;  %1793 = vmatprep.subr.mxu1 %v6760_v14 }
 0x1a4   : > { %4155 = vrot.lane.b32.xlu1 %v4154_v17, %s4394_s26  ;;  %4150 = vrot.lane.b32.xlu0 %v4154_v17, %s6757_s25 }
 0x1a5   : > { %1794 = vmatpush1.msra.mxu1 %v532_v10 }
 0x1a6   : > { %1795 = vmatprep.subr.mxu1 %v6760_v14 }
 0x1a8   : > { %4165 = vrot.lane.b32.xlu1 %v4154_v17, %s6749_s28  ;;  %4160 = vrot.lane.b32.xlu0 %v4154_v17, %s4404_s29 }
 0x1ac   : > { %1067 = vrot.lane.b32.xlu1 %v4792_v21, %s6757_s25  ;;  %1143 = vrot.lane.b32.xlu0 %v4792_v21, %s4394_s26 }
 0x1b0   : > { %1219 = vrot.lane.b32.xlu1 %v4792_v21, %s4404_s29  ;;  %1296 = vrot.lane.b32.xlu0 %v4792_v21, %s6749_s28 }
 0x1b4   : > { %4175 = vrot.lane.b32.xlu1 %v4174_v27, %s4394_s26  ;;  %4170 = vrot.lane.b32.xlu0 %v4174_v27, %s6757_s25 }
 0x1b8   : > { %4185 = vrot.lane.b32.xlu1 %v4174_v27, %s6749_s28  ;;  %4180 = vrot.lane.b32.xlu0 %v4174_v27, %s4404_s29  ;;  %v531_v27 = vld [vmem:[%s6726_s1 + $0x138] sm:$0xff] }
 0x1b9   : > { %1796 = vmatpush1.msra.mxu1 %v531_v27 }
 0x1ba   : > { %1797 = vmatprep.subr.mxu1 %v6760_v14 }
 0x1bc   : > { %1151 = vrot.lane.b32.xlu0 %v4816_v33, %s4394_s26  ;;  %1075 = vrot.lane.b32.xlu1 %v4816_v33, %s6757_s25 }
 0x1c0   : > { %1304 = vrot.lane.b32.xlu0 %v4816_v33, %s6749_s28  ;;  %1227 = vrot.lane.b32.xlu1 %v4816_v33, %s4404_s29 }
 0x1c4   : > { %4195 = vrot.lane.b32.xlu1 %v4194_v38, %s4394_s26  ;;  %4190 = vrot.lane.b32.xlu0 %v4194_v38, %s6757_s25 }
 0x1c8   : > { %4205 = vrot.lane.b32.xlu1 %v4194_v38, %s6749_s28  ;;  %4200 = vrot.lane.b32.xlu0 %v4194_v38, %s4404_s29 }
 0x1cc   : > { %4215 = vrot.lane.b32.xlu1 %v4214_v40, %s4394_s26  ;;  %4210 = vrot.lane.b32.xlu0 %v4214_v40, %s6757_s25 }
 0x1d0   : > { %1083 = vrot.lane.b32.xlu1 %v4852_v49, %s6757_s25  ;;  %4220 = vrot.lane.b32.xlu0 %v4214_v40, %s4404_s29 }
 0x1d4   : > { %1235 = vrot.lane.b32.xlu1 %v4852_v49, %s4404_s29  ;;  %4225 = vrot.lane.b32.xlu0 %v4214_v40, %s6749_s28 }
 0x1d8   : > { %1312 = vrot.lane.b32.xlu1 %v4852_v49, %s6749_s28  ;;  %1159 = vrot.lane.b32.xlu0 %v4852_v49, %s4394_s26 }
 0x1dc   : > { %4235 = vrot.lane.b32.xlu1 %v4234_v55, %s4394_s26  ;;  %4230 = vrot.lane.b32.xlu0 %v4234_v55, %s6757_s25 }
 0x1e0   : > { %4245 = vrot.lane.b32.xlu1 %v4234_v55, %s6749_s28  ;;  %4240 = vrot.lane.b32.xlu0 %v4234_v55, %s4404_s29  ;;  %s4409_s29 = smov 116   ;;  %s4413_s28 = smov 119  }
 0x206   : > { %v1136_v7 = vpop.permute.xlu0 %1135  ;;  %v1060_v9 = vpop.permute.xlu1 %1059 }
 0x207   : > { %v1116_v17 = vmax.f32 %v4754_v61, %v1060_v9  ;;  %v530_v61 = vld [vmem:[%s6726_s1 + $0x130] sm:$0xff] }
 0x208   : > { %1798 = vmatpush1.msra.mxu1 %v530_v61 }
 0x209   : > { %v1192_v18 = vmax.f32 %v1116_v17, %v1136_v7  ;;  %1799 = vmatprep.subr.mxu1 %v6760_v14 }
 0x20a   : > { %v1289_v19 = vpop.permute.xlu0 %1288  ;;  %v1212_v20 = vpop.permute.xlu1 %1211  ;;  %1800 = vmatpush1.msra.mxu1 %v529_v45  ;;  %v507_v45 = vld [vmem:[%s6726_s1 + $0x78] sm:$0xff] }
 0x20b   : > { %v1269_v25 = vmax.f32 %v1192_v18, %v1212_v20  ;;  %1801 = vmatprep.subr.mxu1 %v6760_v14 }
 0x20c   : > { %1802 = vmatpush1.msra.mxu1 %v528_v58  ;;  %v540_v58 = vld [vmem:[%s6726_s1 + $0x180] sm:$0xff] }
 0x20d   : > { %v4914_v28 = vmax.f32 %v1269_v25, %v1289_v19  ;;  %1803 = vmatprep.subr.mxu1 %v6760_v14  ;;  %v526_v25 = vld [vmem:[%s6726_s1 + $0x110] sm:$0xff] }
 0x20e   : > { %v4919_v29 = vpop.permute.xlu0 %4130  ;;  %v4921_v30 = vpop.permute.xlu1 %4135  ;;  %1804 = vmatpush1.msra.mxu1 %v527_v62  ;;  %v505_v62 = vld [vmem:[%s6726_s1 + $0x68] sm:$0xff] }
 0x20f   : > { %v4133_v31 = vunpack.i.h.bf16 %v4919_v29  ;;  %v4132_v32 = vunpack.i.l.bf16 %v4919_v29  ;;  %v4138_v43 = vunpack.i.h.bf16 %v4921_v30  ;;  %v4137_v42 = vunpack.i.l.bf16 %v4921_v30  ;;  %1610 = vrot.lane.b32.xlu1 %v4914_v28, %s4405_s17  ;;  %1381 = vrot.lane.b32.xlu0 %v4914_v28, %s6753_s27 }
 0x210   : > { %1805 = vmatprep.subr.mxu1 %v6760_v14 }
 0x211   : > { %v1086_v38 = vsel %vm638_vm2, %v4132_v32, %v4133_v31  ;;  %v1087_v47 = vsel %vm638_vm2, %v4133_v31, %v1060_v9  ;;  %v1163_v50 = vsel %vm654_vm3, %v4138_v43, %v1136_v7  ;;  %v1162_v55 = vsel %vm654_vm3, %v4137_v42, %v4138_v43  ;;  %1806 = vmatpush1.msra.mxu1 %v526_v25  ;;  %v525_v43 = vld [vmem:[%s6726_s1 + $0x108] sm:$0xff]  ;;  %v504_v25 = vld [vmem:[%s6726_s1 + $0x60] sm:$0xff] }
 0x212   : > { %v1114_v48 = vmax.f32 %v1022_v6, %v1086_v38  ;;  %v1115_v40 = vmax.f32 %v1023_v12, %v1087_v47  ;;  %v4948_v56 = vpop.permute.xlu0 %4140  ;;  %v4950_v57 = vpop.permute.xlu1 %4145  ;;  %1807 = vmatprep.subr.mxu1 %v6760_v14 }
 0x213   : > { %v4143_v63 = vunpack.i.h.bf16 %v4948_v56  ;;  %v4142_v0 = vunpack.i.l.bf16 %v4948_v56  ;;  %v4148_v6 = vunpack.i.h.bf16 %v4950_v57  ;;  %v4147_v12 = vunpack.i.l.bf16 %v4950_v57  ;;  %1457 = vrot.lane.b32.xlu0 %v4914_v28, %s6751_s30  ;;  %1808 = vmatpush1.msra.mxu1 %v525_v43  ;;  %v497_v57 = vld [vmem:[%s6726_s1 + $0x28] sm:$0xff] }
 0x214   : > { %v1191_v59 = vmax.f32 %v1115_v40, %v1163_v50  ;;  %v1190_v60 = vmax.f32 %v1114_v48, %v1162_v55  ;;  %v524_v40 = vld [vmem:[%s6726_s1 + $0x100] sm:$0xff]  ;;  %v522_v50 = vld [vmem:[%s6726_s1 + $0xf0] sm:$0xff]  ;;  %1809 = vmatprep.subr.mxu1 %v6760_v14 }
 0x215   : > { %v1239_v7 = vsel %vm1237_vm1, %v4142_v0, %v4143_v63  ;;  %v1240_v9 = vsel %vm1237_vm1, %v4143_v63, %v1212_v20  ;;  %v1317_v27 = vsel %vm1314_vm4, %v4148_v6, %v1289_v19  ;;  %v1316_v61 = vsel %vm1314_vm4, %v4147_v12, %v4148_v6  ;;  %v523_v19 = vld [vmem:[%s6726_s1 + $0xf8] sm:$0xff]  ;;  %v506_v55 = vld [vmem:[%s6726_s1 + $0x70] sm:$0xff]  ;;  %v521_v63 = vld [vmem:[%s6726_s1 + $0xe8] sm:$0xff]  ;;  %1810 = vmatpush1.msra.mxu1 %v524_v40 }
 0x216   : > { %v1267_v8 = vmax.f32 %v1190_v60, %v1239_v7  ;;  %v1268_v10 = vmax.f32 %v1191_v59, %v1240_v9  ;;  %v4970_v17 = vpop.permute.xlu0 %4150  ;;  %v4972_v18 = vpop.permute.xlu1 %4155  ;;  %3942 = vmatprep.subr.mxu0 %v523_v19  ;;  %1841 = vmatprep.subr.mxu1 %v6760_v14  ;;  %v518_v40 = vld [vmem:[%s6726_s1 + $0xd0] sm:$0xff] }
 0x217   : > { %1533 = vrot.lane.b32.xlu0 %v4914_v28, %s4406_s24  ;;  %3943 = vmatpush3.msra.mxu0 %v507_v45  ;;  %v4152_v6 = vunpack.i.l.bf16 %v4970_v17 }
 0x218   : > { %v4984_v20 = vmax.f32 %v1267_v8, %v1316_v61  ;;  %v4986_v31 = vmax.f32 %v1268_v10, %v1317_v27  ;;  %3944 = vmatprep.subr.mxu0 %v522_v50  ;;  %1842 = vmatpush2.msra.mxu1 %v540_v58  ;;  %v520_v8 = vld [vmem:[%s6726_s1 + $0xe0] sm:$0xff]  ;;  %v4157_v27 = vunpack.i.l.bf16 %v4972_v18  ;;  %v519_v61 = vld [vmem:[%s6726_s1 + $0xd8] sm:$0xff] }
 0x219   : > { %3945 = vmatpush3.msra.mxu0 %v506_v55 }
 0x21a   : > { %v4998_v38 = vpop.permute.xlu0 %4160  ;;  %v5000_v47 = vpop.permute.xlu1 %4165  ;;  %v4259_v48 = vpack.i.bf16 %v4986_v31, %v4984_v20  ;;  %3946 = vmatprep.subr.mxu0 %v521_v63  ;;  %v502_v63 = vld [vmem:[%s6726_s1 + $0x50] sm:$0xff] }
 0x21b   : > { %3947 = vmatpush3.msra.mxu0 %v505_v62  ;;  %v4162_v19 = vunpack.i.l.bf16 %v4998_v38 }
 0x21c   : > { %4260 = vrot.lane.b32.xlu1 %v4259_v48, %s4406_s24  ;;  %4250 = vrot.lane.b32.xlu0 %v4259_v48, %s6753_s27 }
 0x21d   : > { %3948 = vmatprep.subr.mxu0 %v520_v8 }
 0x21e   : > { %v1144_v59 = vpop.permute.xlu0 %1143  ;;  %v1068_v60 = vpop.permute.xlu1 %1067  ;;  %3949 = vmatpush3.msra.mxu0 %v504_v25 }
 0x21f   : > { %v1090_v7 = vsel %vm638_vm2, %v4152_v6, %v1068_v60  ;;  %v1120_v9 = vmax.f32 %v4792_v21, %v1068_v60  ;;  %v1166_v45 = vsel %vm654_vm3, %v4157_v27, %v1144_v59  ;;  %3950 = vmatprep.subr.mxu0 %v519_v61  ;;  %v4163_v61 = vunpack.i.h.bf16 %v4998_v38 }
 0x220   : > { %v1119_v10 = vmax.f32 %v1027_v16, %v1090_v7  ;;  %4265 = vrot.lane.b32.xlu1 %v4259_v48, %s4405_s17  ;;  %4255 = vrot.lane.b32.xlu0 %v4259_v48, %s6751_s30  ;;  %v503_v16 = vld [vmem:[%s6726_s1 + $0x58] sm:$0xff]  ;;  %v517_v7 = vld [vmem:[%s6726_s1 + $0xc8] sm:$0xff] }
 0x221   : > { %v1196_v21 = vmax.f32 %v1120_v9, %v1144_v59  ;;  %3951 = vmatpush3.msra.mxu0 %v503_v16  ;;  %v4153_v59 = vunpack.i.h.bf16 %v4970_v17  ;;  %v501_v17 = vld [vmem:[%s6726_s1 + $0x48] sm:$0xff] }
 0x222   : > { %v5043_v43 = vpop.permute.xlu0 %1296  ;;  %v1220_v13 = vpop.permute.xlu1 %1219  ;;  %v1195_v50 = vmax.f32 %v1119_v10, %v1166_v45  ;;  %3952 = vmatprep.subr.mxu0 %v518_v40 }
 0x223   : > { %v1273_v48 = vmax.f32 %v1196_v21, %v1220_v13  ;;  %v1243_v55 = vsel %vm1237_vm1, %v4162_v19, %v1220_v13  ;;  %v4158_v21 = vunpack.i.h.bf16 %v4972_v18  ;;  %v4168_v13 = vunpack.i.h.bf16 %v5000_v47  ;;  %3953 = vmatpush3.msra.mxu0 %v502_v63  ;;  %v516_v18 = vld [vmem:[%s6726_s1 + $0xc0] sm:$0xff] }
 0x224   : > { %v1272_v16 = vmax.f32 %v1195_v50, %v1243_v55  ;;  %3954 = vmatprep.subr.mxu0 %v517_v7 }
 0x225   : > { %v5055_v58 = vmax.f32 %v1273_v48, %v5043_v43  ;;  %3955 = vmatpush3.msra.mxu0 %v501_v17 }
 0x226   : > { %v4171_v60 = vpop.permute.xlu0 %4170  ;;  %v4176_v62 = vpop.permute.xlu1 %4175  ;;  %3956 = vmatprep.subr.mxu0 %v516_v18 }
 0x227   : > { %v4173_v9 = vunpack.i.h.bf16 %v4171_v60  ;;  %v4172_v8 = vunpack.i.l.bf16 %v4171_v60  ;;  %v4178_v10 = vunpack.i.h.bf16 %v4176_v62  ;;  %v4177_v25 = vunpack.i.l.bf16 %v4176_v62  ;;  %1465 = vrot.lane.b32.xlu1 %v5055_v58, %s6751_s30  ;;  %1389 = vrot.lane.b32.xlu0 %v5055_v58, %s6753_s27 }
 0x228   : > { %v4167_v62 = vunpack.i.l.bf16 %v5000_v47  ;;  %v498_v47 = vld [vmem:[%s6726_s1 + $0x30] sm:$0xff] }
 0x229   : > { %v1088_v45 = vsel %vm638_vm2, %v4153_v59, %v4173_v9  ;;  %v1089_v48 = vsel %vm638_vm2, %v4173_v9, %v4152_v6  ;;  %v1085_v40 = vsel %vm638_vm2, %v4172_v8, %v4132_v32  ;;  %v1161_v60 = vsel %vm654_vm3, %v4177_v25, %v4137_v42  ;;  %v500_v42 = vld [vmem:[%s6726_s1 + $0x40] sm:$0xff] }
 0x22a   : > { %v1117_v38 = vmax.f32 %v1025_v15, %v1088_v45  ;;  %v1118_v50 = vmax.f32 %v1026_v24, %v1089_v48  ;;  %v1113_v29 = vmax.f32 %v1021_v26, %v1085_v40  ;;  %v1164_v32 = vsel %vm654_vm3, %v4158_v21, %v4178_v10  ;;  %v4181_v6 = vpop.permute.xlu0 %4180  ;;  %v4186_v30 = vpop.permute.xlu1 %4185  ;;  %3957 = vmatpush3.msra.mxu0 %v500_v42  ;;  %v513_v40 = vld [vmem:[%s6726_s1 + $0xa8] sm:$0xff] }
 0x22b   : > { %v1165_v55 = vsel %vm654_vm3, %v4178_v10, %v4157_v27  ;;  %v4183_v63 = vunpack.i.h.bf16 %v4181_v6  ;;  %v4182_v11 = vunpack.i.l.bf16 %v4181_v6  ;;  %v4188_v15 = vunpack.i.h.bf16 %v4186_v30  ;;  %1541 = vrot.lane.b32.xlu1 %v5055_v58, %s4406_s24  ;;  %1618 = vrot.lane.b32.xlu0 %v5055_v58, %s4405_s17  ;;  %v499_v27 = vld [vmem:[%s6726_s1 + $0x38] sm:$0xff]  ;;  %v514_v10 = vld [vmem:[%s6726_s1 + $0xb0] sm:$0xff] }
 0x22c   : > { %v1189_v23 = vmax.f32 %v1113_v29, %v1161_v60  ;;  %v1193_v24 = vmax.f32 %v1117_v38, %v1164_v32  ;;  %v1194_v26 = vmax.f32 %v1118_v50, %v1165_v55  ;;  %v4187_v59 = vunpack.i.l.bf16 %v4186_v30  ;;  %3958 = vmatprep.subr.mxu0 %v515_v22  ;;  %v512_v32 = vld [vmem:[%s6726_s1 + $0xa0] sm:$0xff]  ;;  %v511_v6 = vld [vmem:[%s6726_s1 + $0x98] sm:$0xff] }
 0x22d   : > { %v1241_v7 = vsel %vm1237_vm1, %v4163_v61, %v4183_v63  ;;  %v1242_v9 = vsel %vm1237_vm1, %v4183_v63, %v4162_v19  ;;  %v1238_v8 = vsel %vm1237_vm1, %v4182_v11, %v4142_v0  ;;  %v1320_v56 = vsel %vm1314_vm4, %v4167_v62, %v5043_v43  ;;  %3959 = vmatpush3.msra.mxu0 %v499_v27  ;;  %v495_v63 = vld [vmem:[%s6726_s1 + $0x18] sm:$0xff] }
 0x22e   : > { %v1266_v25 = vmax.f32 %v1189_v23, %v1238_v8  ;;  %v1270_v17 = vmax.f32 %v1193_v24, %v1241_v7  ;;  %v1271_v21 = vmax.f32 %v1194_v26, %v1242_v9  ;;  %v1152_v45 = vpop.permute.xlu0 %1151  ;;  %v1076_v48 = vpop.permute.xlu1 %1075  ;;  %v1315_v0 = vsel %vm1314_vm4, %v4187_v59, %v4147_v12  ;;  %3960 = vmatprep.subr.mxu0 %v514_v10  ;;  %v510_v24 = vld [vmem:[%s6726_s1 + $0x90] sm:$0xff] }
 0x22f   : > { %v1318_v19 = vsel %vm1314_vm4, %v4168_v13, %v4188_v15  ;;  %v1319_v61 = vsel %vm1314_vm4, %v4188_v15, %v4167_v62  ;;  %v5128_v60 = vmax.f32 %v1272_v16, %v1320_v56  ;;  %v1124_v12 = vmax.f32 %v4816_v33, %v1076_v48  ;;  %3961 = vmatpush3.msra.mxu0 %v498_v47  ;;  %v496_v33 = vld [vmem:[%s6726_s1 + $0x20] sm:$0xff]  ;;  %v494_v26 = vld [vmem:[%s6726_s1 + $0x10] sm:$0xff] }
 0x230   : > { %v5130_v18 = vmax.f32 %v1266_v25, %v1315_v0  ;;  %v5132_v38 = vmax.f32 %v1270_v17, %v1318_v19  ;;  %v5134_v43 = vmax.f32 %v1271_v21, %v1319_v61  ;;  %3962 = vmatprep.subr.mxu0 %v513_v40  ;;  %v509_v25 = vld [vmem:[%s6726_s1 + $0x88] sm:$0xff] }
 0x231   : > { %3963 = vmatpush3.msra.mxu0 %v497_v57  ;;  %v1200_v30 = vmax.f32 %v1124_v12, %v1152_v45 }
 0x232   : > { %v5140_v13 = vpop.permute.xlu0 %1304  ;;  %v1228_v50 = vpop.permute.xlu1 %1227  ;;  %v5144_v16 = vpack.i.bf16 %v5132_v38, %v5128_v60  ;;  %v4269_v29 = vpack.i.bf16 %v5134_v43, %v5130_v18  ;;  %3964 = vmatprep.subr.mxu0 %v512_v32 }
 0x233   : > { %3965 = vmatpush3.msra.mxu0 %v496_v33  ;;  %v1277_v59 = vmax.f32 %v1200_v30, %v1228_v50  ;;  %v492_v33 = vld [vmem:[%s6726_s1] sm:$0xff] }
 0x234   : > { %4280 = vrot.lane.b32.xlu0 %v5144_v16, %s6753_s27  ;;  %4270 = vrot.lane.b32.xlu1 %v4269_v29, %s6753_s27 }
 0x235   : > { %3966 = vmatprep.subr.mxu0 %v511_v6  ;;  %v5217_v61 = vmax.f32 %v1277_v59, %v5140_v13 }
 0x236   : > { %v5160_v42 = vpop.permute.xlu0 %4190  ;;  %v5162_v55 = vpop.permute.xlu1 %4195  ;;  %3967 = vmatpush3.msra.mxu0 %v495_v63 }
 0x237   : > { %v4193_v11 = vunpack.i.h.bf16 %v5160_v42  ;;  %v4192_v15 = vunpack.i.l.bf16 %v5160_v42  ;;  %v4198_v22 = vunpack.i.h.bf16 %v5162_v55  ;;  %v4197_v23 = vunpack.i.l.bf16 %v5162_v55  ;;  %3968 = vmatprep.subr.mxu0 %v510_v24 }
 0x238   : > { %4290 = vrot.lane.b32.xlu0 %v5144_v16, %s6751_s30  ;;  %4275 = vrot.lane.b32.xlu1 %v4269_v29, %s6751_s30 }
 0x239   : > { %v1092_v27 = vsel %vm638_vm2, %v4192_v15, %v4193_v11  ;;  %v1093_v62 = vsel %vm638_vm2, %v4193_v11, %v1076_v48  ;;  %v1169_v17 = vsel %vm654_vm3, %v4198_v22, %v1152_v45  ;;  %v1168_v21 = vsel %vm654_vm3, %v4197_v23, %v4198_v22  ;;  %3969 = vmatpush3.msra.mxu0 %v494_v26  ;;  %v508_v45 = vld [vmem:[%s6726_s1 + $0x80] sm:$0xff] }
 0x23a   : > { %v1122_v7 = vmax.f32 %v1030_v37, %v1092_v27  ;;  %v1123_v9 = vmax.f32 %v1031_v41, %v1093_v62  ;;  %v5188_v8 = vpop.permute.xlu0 %4200  ;;  %v5190_v10 = vpop.permute.xlu1 %4205  ;;  %v493_v37 = vld [vmem:[%s6726_s1 + $0x8] sm:$0xff]  ;;  %3970 = vmatprep.subr.mxu0 %v509_v25 }
 0x23b   : > { %v4203_v34 = vunpack.i.h.bf16 %v5188_v8  ;;  %v4202_v35 = vunpack.i.l.bf16 %v5188_v8  ;;  %v4208_v0 = vunpack.i.h.bf16 %v5190_v10  ;;  %v4207_v19 = vunpack.i.l.bf16 %v5190_v10  ;;  %3971 = vmatpush3.msra.mxu0 %v493_v37 }
 0x23c   : > { %v1199_v41 = vmax.f32 %v1123_v9, %v1169_v17  ;;  %v1198_v48 = vmax.f32 %v1122_v7, %v1168_v21  ;;  %4305 = vrot.lane.b32.xlu0 %v5144_v16, %s4405_s17  ;;  %4285 = vrot.lane.b32.xlu1 %v4269_v29, %s4406_s24 }
 0x23d   : > { %v1245_v47 = vsel %vm1237_vm1, %v4202_v35, %v4203_v34  ;;  %v1246_v56 = vsel %vm1237_vm1, %v4203_v34, %v1228_v50  ;;  %3972 = vmatprep.subr.mxu0 %v508_v45  ;;  %v1323_v50 = vsel %vm1314_vm4, %v4208_v0, %v5140_v13  ;;  %v1322_v6 = vsel %vm1314_vm4, %v4207_v19, %v4208_v0 }
 0x23e   : > { %v1275_v40 = vmax.f32 %v1198_v48, %v1245_v47  ;;  %v1276_v57 = vmax.f32 %v1199_v41, %v1246_v56  ;;  %v4211_v12 = vpop.permute.xlu0 %4210  ;;  %v4216_v32 = vpop.permute.xlu1 %4215  ;;  %3973 = vmatpush3.msra.mxu0 %v492_v33 }
 0x23f   : > { %v4212_v26 = vunpack.i.l.bf16 %v4211_v12  ;;  %v4217_v7 = vunpack.i.l.bf16 %v4216_v32  ;;  %v4213_v21 = vunpack.i.h.bf16 %v4211_v12  ;;  %v4218_v34 = vunpack.i.h.bf16 %v4216_v32 }
 0x240   : > { %1397 = vrot.lane.b32.xlu0 %v5217_v61, %s6753_s27  ;;  %4295 = vrot.lane.b32.xlu1 %v4269_v29, %s4405_s17  ;;  %v5230_v30 = vmax.f32 %v1275_v40, %v1322_v6  ;;  %v5232_v63 = vmax.f32 %v1276_v57, %v1323_v50 }
 0x242   : > { %v5234_v11 = vpop.permute.xlu0 %4220  ;;  %v1084_v22 = vpop.permute.xlu1 %1083  ;;  %v4309_v24 = vpack.i.bf16 %v5232_v63, %v5230_v30 }
 0x243   : > { %v1128_v59 = vmax.f32 %v4852_v49, %v1084_v22  ;;  %v1096_v9 = vsel %vm638_vm2, %v4212_v26, %v1084_v22  ;;  %v4223_v48 = vunpack.i.h.bf16 %v5234_v11  ;;  %v4222_v0 = vunpack.i.l.bf16 %v5234_v11 }
 0x244   : > { %1549 = vrot.lane.b32.xlu0 %v5217_v61, %s4406_s24  ;;  %4300 = vrot.lane.b32.xlu1 %v5144_v16, %s4406_s24  ;;  %v1127_v37 = vmax.f32 %v1035_v44, %v1096_v9 }
 0x246   : > { %v5240_v29 = vpop.permute.xlu0 %4225  ;;  %v1236_v13 = vpop.permute.xlu1 %1235 }
 0x247   : > { %v4227_v36 = vunpack.i.l.bf16 %v5240_v29 }
 0x248   : > { %4310 = vrot.lane.b32.xlu0 %v4309_v24, %s6753_s27  ;;  %1473 = vrot.lane.b32.xlu1 %v5217_v61, %s6751_s30 }
 0x24a   : > { %v1160_v27 = vpop.permute.xlu0 %1159  ;;  %v1313_v62 = vpop.permute.xlu1 %1312 }
 0x24b   : > { %v1204_v16 = vmax.f32 %v1128_v59, %v1160_v27  ;;  %v1172_v25 = vsel %vm654_vm3, %v4217_v7, %v1160_v27 }
 0x24c   : > { %4325 = vrot.lane.b32.xlu0 %v4309_v24, %s4405_s17  ;;  %4315 = vrot.lane.b32.xlu1 %v4309_v24, %s6751_s30  ;;  %v1203_v40 = vmax.f32 %v1127_v37, %v1172_v25  ;;  %v4228_v25 = vunpack.i.h.bf16 %v5240_v29 }
 0x24d   : > { %v1281_v17 = vmax.f32 %v1204_v16, %v1236_v13 }
 0x24e   : > { %v4231_v41 = vpop.permute.xlu0 %4230  ;;  %v4236_v49 = vpop.permute.xlu1 %4235 }
 0x24f   : > { %v4233_v45 = vunpack.i.h.bf16 %v4231_v41  ;;  %v4232_v47 = vunpack.i.l.bf16 %v4231_v41  ;;  %v4238_v56 = vunpack.i.h.bf16 %v4236_v49  ;;  %v5256_v57 = vmax.f32 %v1281_v17, %v1313_v62 }
 0x250   : > { %v4237_v33 = vunpack.i.l.bf16 %v4236_v49  ;;  %4320 = vrot.lane.b32.xlu1 %v4309_v24, %s4406_s24  ;;  %v1249_v17 = vsel %vm1237_vm1, %v4222_v0, %v1236_v13  ;;  %v1326_v13 = vsel %vm1314_vm4, %v4227_v36, %v1313_v62 }
 0x251   : > { %v1091_v39 = vsel %vm638_vm2, %v4232_v47, %v4192_v15  ;;  %v1094_v44 = vsel %vm638_vm2, %v4213_v21, %v4233_v45  ;;  %v1095_v12 = vsel %vm638_vm2, %v4233_v45, %v4212_v26  ;;  %v1170_v32 = vsel %vm654_vm3, %v4218_v34, %v4238_v56 }
 0x252   : > { %v1121_v50 = vmax.f32 %v1029_v54, %v1091_v39  ;;  %v1125_v6 = vmax.f32 %v1033_v46, %v1094_v44  ;;  %v1126_v11 = vmax.f32 %v1034_v53, %v1095_v12  ;;  %v1167_v42 = vsel %vm654_vm3, %v4237_v33, %v4197_v23  ;;  %v4241_v15 = vpop.permute.xlu0 %4240  ;;  %v4246_v22 = vpop.permute.xlu1 %4245 }
 0x253   : > { %v1171_v24 = vsel %vm654_vm3, %v4238_v56, %v4217_v7  ;;  %v4243_v26 = vunpack.i.h.bf16 %v4241_v15  ;;  %v4242_v59 = vunpack.i.l.bf16 %v4241_v15  ;;  %v4248_v27 = vunpack.i.h.bf16 %v4246_v22 }
 0x254   : > { %v1197_v9 = vmax.f32 %v1121_v50, %v1167_v42  ;;  %v1201_v52 = vmax.f32 %v1125_v6, %v1170_v32  ;;  %v1202_v54 = vmax.f32 %v1126_v11, %v1171_v24  ;;  %v4247_v16 = vunpack.i.l.bf16 %v4246_v22  ;;  %1405 = vrot.lane.b32.xlu1 %v5256_v57, %s6753_s27 }
 0x255   : > { %v1244_v46 = vsel %vm1237_vm1, %v4242_v59, %v4202_v35  ;;  %v1247_v51 = vsel %vm1237_vm1, %v4223_v48, %v4243_v26  ;;  %v1248_v53 = vsel %vm1237_vm1, %v4243_v26, %v4222_v0  ;;  %v1325_v21 = vsel %vm1314_vm4, %v4248_v27, %v4227_v36 }
 0x256   : > { %v1274_v55 = vmax.f32 %v1197_v9, %v1244_v46  ;;  %v1278_v23 = vmax.f32 %v1201_v52, %v1247_v51  ;;  %v1279_v7 = vmax.f32 %v1202_v54, %v1248_v53  ;;  %v1321_v34 = vsel %vm1314_vm4, %v4247_v16, %v4207_v19 }
 0x257   : > { %v1280_v8 = vmax.f32 %v1203_v40, %v1249_v17  ;;  %v1324_v41 = vsel %vm1314_vm4, %v4228_v25, %v4248_v27  ;;  %vm2298_vm1 = vcmask 130048   ;;  %vm2634_vm4 = vcmask 293888  }
 0x258   : > { %v5289_v37 = vmax.f32 %v1274_v55, %v1321_v34  ;;  %v5291_v35 = vmax.f32 %v1279_v7, %v1325_v21  ;;  %v5294_v49 = vmax.f32 %v1278_v23, %v1324_v41 }
 0x259   : > { %v5299_v48 = vmax.f32 %v1280_v8, %v1326_v13 }
 0x25a   : > { %v4334_v29 = vpack.i.bf16 %v5291_v35, %v5289_v37 }
 0x25b   : > { %v4339_v10 = vpack.i.bf16 %v5294_v49, %v5299_v48 }
 0x25c   : > { %4335 = vrot.lane.b32.xlu0 %v4334_v29, %s6751_s30  ;;  %4330 = vrot.lane.b32.xlu1 %v4334_v29, %s6753_s27 }
 0x260   : > { %4340 = vrot.lane.b32.xlu0 %v4339_v10, %s6753_s27  ;;  %4350 = vrot.lane.b32.xlu1 %v4339_v10, %s6751_s30 }
 0x264   : > { %4345 = vrot.lane.b32.xlu0 %v4334_v29, %s4406_s24  ;;  %4355 = vrot.lane.b32.xlu1 %v4334_v29, %s4405_s17 }
 0x268   : > { %4360 = vrot.lane.b32.xlu0 %v4339_v10, %s4406_s24  ;;  %4365 = vrot.lane.b32.xlu1 %v4339_v10, %s4405_s17 }
 0x26c   : > { %1481 = vrot.lane.b32.xlu0 %v5256_v57, %s6751_s30  ;;  %1626 = vrot.lane.b32.xlu1 %v5217_v61, %s4405_s17  ;;  %s4415_s30 = smov 118  }
 0x270   : > { %1557 = vrot.lane.b32.xlu0 %v5256_v57, %s4406_s24  ;;  %1634 = vrot.lane.b32.xlu1 %v5256_v57, %s4405_s17  ;;  %s4407_s17 = smov 122   ;;  %s4408_s24 = smov 115  }
 0x281   : > { %v1382_v19 = vpop.permute.xlu0 %1381  ;;  %v1611_v0 = vpop.permute.xlu1 %1610 }
 0x282   : > { %v1438_v45 = vmax.f32 %v4914_v28, %v1382_v19 }
 0x285   : > { %v1458_v62 = vpop.permute.xlu0 %1457 }
 0x286   : > { %v1514_v47 = vmax.f32 %v1438_v45, %v1458_v62 }
 0x289   : > { %v1534_v56 = vpop.permute.xlu0 %1533 }
 0x28a   : > { %v1591_v40 = vmax.f32 %v1514_v47, %v1534_v56 }
 0x28c   : > { %v1668_v33 = vmax.f32 %v1591_v40, %v1611_v0 }
 0x28e   : > { %3900 = vmatprep.mubr.msk.f32.mxu1 %vm1681_vm6, %v1668_v33  ;;  %v4261_v39 = vpop.permute.xlu1 %4260  ;;  %v4251_v44 = vpop.permute.xlu0 %4250 }
 0x28f   : > { %v4253_v12 = vunpack.i.h.bf16 %v4251_v44  ;;  %v4252_v32 = vunpack.i.l.bf16 %v4251_v44  ;;  %v4263_v28 = vunpack.i.h.bf16 %v4261_v39  ;;  %v4262_v15 = vunpack.i.l.bf16 %v4261_v39 }
 0x291   : > { %v1409_v50 = vsel %vm670_vm5, %v4253_v12, %v1382_v19  ;;  %v1408_v6 = vsel %vm670_vm5, %v4252_v32, %v4253_v12  ;;  %v1562_v46 = vsel %vm1559_vm13, %v4263_v28, %v1534_v56  ;;  %v1561_v51 = vsel %vm1559_vm13, %v4262_v15, %v4263_v28 }
 0x292   : > { %v5323_v11 = vpop.permute.xlu1 %4265  ;;  %v4256_v42 = vpop.permute.xlu0 %4255  ;;  %v1437_v26 = vmax.f32 %v4986_v31, %v1409_v50  ;;  %v1436_v59 = vmax.f32 %v4984_v20, %v1408_v6 }
 0x293   : > { %v4258_v22 = vunpack.i.h.bf16 %v4256_v42  ;;  %v4257_v24 = vunpack.i.l.bf16 %v4256_v42  ;;  %v4268_v27 = vunpack.i.h.bf16 %v5323_v11  ;;  %v4267_v9 = vunpack.i.l.bf16 %v5323_v11 }
 0x295   : > { %v1485_v52 = vsel %vm724_vm11, %v4258_v22, %v1458_v62  ;;  %v1484_v54 = vsel %vm724_vm11, %v4257_v24, %v4258_v22  ;;  %v1639_v31 = vsel %vm1636_vm14, %v4268_v27, %v1611_v0  ;;  %v1638_v7 = vsel %vm1636_vm14, %v4267_v9, %v4268_v27 }
 0x296   : > { %v1513_v16 = vmax.f32 %v1437_v26, %v1485_v52  ;;  %v1512_v36 = vmax.f32 %v1436_v59, %v1484_v54 }
 0x298   : > { %v1590_v53 = vmax.f32 %v1513_v16, %v1562_v46  ;;  %v1589_v55 = vmax.f32 %v1512_v36, %v1561_v51 }
 0x299   : > { %v1466_v20 = vpop.permute.xlu1 %1465  ;;  %v1390_v23 = vpop.permute.xlu0 %1389 }
 0x29a   : > { %v1442_v25 = vmax.f32 %v5055_v58, %v1390_v23  ;;  %v1666_v17 = vmax.f32 %v1589_v55, %v1638_v7  ;;  %v1667_v21 = vmax.f32 %v1590_v53, %v1639_v31 }
 0x29c   : > { %1758 = vmatprep.mubr.f32.mxu0 %v1666_v17  ;;  %1844 = vmatmul.mubr.f32.vlgmr.msra.gmra.mxu1 %v1667_v21  ;;  %v1518_v34 = vmax.f32 %v1442_v25, %v1466_v20 }
 0x29d   : > { %v1542_v8 = vpop.permute.xlu1 %1541  ;;  %v1619_v29 = vpop.permute.xlu0 %1618 }
 0x29e   : > { %v1595_v41 = vmax.f32 %v1518_v34, %v1542_v8 }
 0x2a0   : > { %v1672_v13 = vmax.f32 %v1595_v41, %v1619_v29 }
 0x2a2   : > { %3901 = vmatprep.mubr.msk.f32.mxu1 %vm1681_vm6, %v1672_v13 }
 0x2a6   : > { %v4281_v10 = vpop.permute.xlu0 %4280  ;;  %v4271_v19 = vpop.permute.xlu1 %4270 }
 0x2a7   : > { %v4272_v62 = vunpack.i.l.bf16 %v4271_v19  ;;  %v4282_v0 = vunpack.i.l.bf16 %v4281_v10  ;;  %v4283_v39 = vunpack.i.h.bf16 %v4281_v10  ;;  %v4273_v44 = vunpack.i.h.bf16 %v4271_v19 }
 0x2a9   : > { %v1407_v58 = vsel %vm670_vm5, %v4272_v62, %v4252_v32  ;;  %v1412_v6 = vsel %vm670_vm5, %v4282_v0, %v1390_v23  ;;  %v1410_v52 = vsel %vm670_vm5, %v4283_v39, %v4273_v44  ;;  %v1411_v54 = vsel %vm670_vm5, %v4273_v44, %v4282_v0 }
 0x2aa   : > { %v4291_v45 = vpop.permute.xlu0 %4290  ;;  %v4276_v47 = vpop.permute.xlu1 %4275  ;;  %v1435_v11 = vmax.f32 %v5130_v18, %v1407_v58  ;;  %v1439_v53 = vmax.f32 %v5132_v38, %v1410_v52  ;;  %v1440_v55 = vmax.f32 %v5134_v43, %v1411_v54 }
 0x2ab   : > { %v4277_v56 = vunpack.i.l.bf16 %v4276_v47  ;;  %v4293_v42 = vunpack.i.h.bf16 %v4291_v45  ;;  %v4292_v28 = vunpack.i.l.bf16 %v4291_v45  ;;  %v4278_v22 = vunpack.i.h.bf16 %v4276_v47 }
 0x2ad   : > { %v1483_v12 = vsel %vm724_vm11, %v4277_v56, %v4257_v24  ;;  %v1441_v24 = vmax.f32 %v5128_v60, %v1412_v6  ;;  %v1488_v46 = vsel %vm724_vm11, %v4292_v28, %v1466_v20  ;;  %v1486_v18 = vsel %vm724_vm11, %v4293_v42, %v4278_v22 }
 0x2ae   : > { %v4306_v40 = vpop.permute.xlu0 %4305  ;;  %v4286_v33 = vpop.permute.xlu1 %4285  ;;  %v1511_v59 = vmax.f32 %v1435_v11, %v1483_v12  ;;  %v1487_v51 = vsel %vm724_vm11, %v4278_v22, %v4292_v28  ;;  %v1515_v13 = vmax.f32 %v1439_v53, %v1486_v18 }
 0x2af   : > { %v4287_v50 = vunpack.i.l.bf16 %v4286_v33  ;;  %v4307_v31 = vunpack.i.l.bf16 %v4306_v40  ;;  %v4288_v17 = vunpack.i.h.bf16 %v4286_v33  ;;  %v1516_v20 = vmax.f32 %v1440_v55, %v1487_v51 }
 0x2b0   : > { %v1517_v41 = vmax.f32 %v1441_v24, %v1488_v46  ;;  %v4308_v10 = vunpack.i.h.bf16 %v4306_v40 }
 0x2b1   : > { %v1560_v26 = vsel %vm1559_vm13, %v4287_v50, %v4262_v15  ;;  %v1642_v56 = vsel %vm1636_vm14, %v4307_v31, %v1619_v29 }
 0x2b2   : > { %v5342_v27 = vpop.permute.xlu0 %1397  ;;  %v4296_v32 = vpop.permute.xlu1 %4295  ;;  %v1588_v36 = vmax.f32 %v1511_v59, %v1560_v26 }
 0x2b3   : > { %v4297_v16 = vunpack.i.l.bf16 %v4296_v32  ;;  %v4298_v60 = vunpack.i.h.bf16 %v4296_v32 }
 0x2b5   : > { %v1637_v15 = vsel %vm1636_vm14, %v4297_v16, %v4267_v9  ;;  %v1641_v39 = vsel %vm1636_vm14, %v4298_v60, %v4307_v31  ;;  %v1640_v44 = vsel %vm1636_vm14, %v4308_v10, %v4298_v60  ;;  %v1446_v31 = vmax.f32 %v5217_v61, %v5342_v27 }
 0x2b6   : > { %v1665_v23 = vmax.f32 %v1588_v36, %v1637_v15  ;;  %v5353_v7 = vpop.permute.xlu0 %1549  ;;  %v4301_v25 = vpop.permute.xlu1 %4300 }
 0x2b7   : > { %v4303_v21 = vunpack.i.h.bf16 %v4301_v25  ;;  %v4302_v34 = vunpack.i.l.bf16 %v4301_v25 }
 0x2b8   : > { %1759 = vmatmul.mubr.f32.vlgmr.msra.gmra.mxu0 %v1665_v23 }
 0x2b9   : > { %v1564_v9 = vsel %vm1559_vm13, %v4288_v17, %v4302_v34  ;;  %v1565_v38 = vsel %vm1559_vm13, %v4302_v34, %v1542_v8  ;;  %v1563_v43 = vsel %vm1559_vm13, %v4303_v21, %v4288_v17 }
 0x2ba   : > { %v4311_v19 = vpop.permute.xlu0 %4310  ;;  %v1474_v62 = vpop.permute.xlu1 %1473  ;;  %v1593_v45 = vmax.f32 %v1516_v20, %v1564_v9  ;;  %v1594_v47 = vmax.f32 %v1517_v41, %v1565_v38  ;;  %v1592_v0 = vmax.f32 %v1515_v13, %v1563_v43 }
 0x2bb   : > { %v4313_v58 = vunpack.i.h.bf16 %v4311_v19  ;;  %v4312_v33 = vunpack.i.l.bf16 %v4311_v19  ;;  %v1522_v41 = vmax.f32 %v1446_v31, %v1474_v62 }
 0x2bc   : > { %v1670_v40 = vmax.f32 %v1593_v45, %v1641_v39  ;;  %v1671_v12 = vmax.f32 %v1594_v47, %v1642_v56  ;;  %v1669_v50 = vmax.f32 %v1592_v0, %v1640_v44 }
 0x2bd   : > { %v1414_v8 = vsel %vm670_vm5, %v4312_v33, %v4313_v58  ;;  %v1415_v23 = vsel %vm670_vm5, %v4313_v58, %v5342_v27  ;;  %v1599_v39 = vmax.f32 %v1522_v41, %v5353_v7 }
 0x2be   : > { %v4316_v6 = vpop.permute.xlu1 %4315  ;;  %1763 = vmatprep.mubr.f32.mxu0 %v1670_v40  ;;  %1849 = vmatmul.mubr.f32.gmra.mxu1 %v1671_v12  ;;  %v5362_v28 = vpop.permute.xlu0 %4325  ;;  %v1444_v22 = vmax.f32 %v5230_v30, %v1414_v8  ;;  %v1445_v43 = vmax.f32 %v5232_v63, %v1415_v23 }
 0x2bf   : > { %v4318_v11 = vunpack.i.h.bf16 %v4316_v6  ;;  %v4317_v42 = vunpack.i.l.bf16 %v4316_v6  ;;  %1764 = vmatmul.mubr.f32.gmra.mxu0 %v1669_v50  ;;  %v4328_v59 = vunpack.i.h.bf16 %v5362_v28  ;;  %v4327_v32 = vunpack.i.l.bf16 %v5362_v28 }
 0x2c1   : > { %v1490_v29 = vsel %vm724_vm11, %v4317_v42, %v4318_v11  ;;  %v1644_v46 = vsel %vm1636_vm14, %v4327_v32, %v4328_v59  ;;  %v1491_v61 = vsel %vm724_vm11, %v4318_v11, %v1474_v62 }
 0x2c2   : > { %v4321_v26 = vpop.permute.xlu1 %4320  ;;  %v1520_v16 = vmax.f32 %v1444_v22, %v1490_v29  ;;  %v1521_v62 = vmax.f32 %v1445_v43, %v1491_v61 }
 0x2c3   : > { %v4323_v52 = vunpack.i.h.bf16 %v4321_v26  ;;  %v4322_v54 = vunpack.i.l.bf16 %v4321_v26 }
 0x2c5   : > { %v1567_v24 = vsel %vm1559_vm13, %v4322_v54, %v4323_v52  ;;  %v1568_v12 = vsel %vm1559_vm13, %v4323_v52, %v5353_v7 }
 0x2c6   : > { %v1597_v36 = vmax.f32 %v1520_v16, %v1567_v24  ;;  %v5372_v51 = vpop.permute.xlu1 %1405  ;;  %v1598_v52 = vmax.f32 %v1521_v62, %v1568_v12 }
 0x2c8   : > { %v1674_v18 = vmax.f32 %v1597_v36, %v1644_v46 }
 0x2ca   : > { %1768 = vmatprep.mubr.f32.mxu0 %v1674_v18 }
 0x2ce   : > { %v4336_v30 = vpop.permute.xlu0 %4335  ;;  %v4331_v15 = vpop.permute.xlu1 %4330 }
 0x2cf   : > { %v4332_v53 = vunpack.i.l.bf16 %v4331_v15  ;;  %v4337_v60 = vunpack.i.l.bf16 %v4336_v30  ;;  %v4333_v21 = vunpack.i.h.bf16 %v4331_v15  ;;  %v4338_v47 = vunpack.i.h.bf16 %v4336_v30 }
 0x2d0   : > { %v1450_v30 = vmax.f32 %v5256_v57, %v5372_v51 }
 0x2d1   : > { %v1413_v55 = vsel %vm670_vm5, %v4332_v53, %v4312_v33  ;;  %v1489_v56 = vsel %vm724_vm11, %v4337_v60, %v4317_v42 }
 0x2d2   : > { %v4341_v25 = vpop.permute.xlu0 %4340  ;;  %v4351_v17 = vpop.permute.xlu1 %4350  ;;  %v1443_v13 = vmax.f32 %v5289_v37, %v1413_v55 }
 0x2d3   : > { %v4343_v34 = vunpack.i.h.bf16 %v4341_v25  ;;  %v4342_v20 = vunpack.i.l.bf16 %v4341_v25  ;;  %v4353_v38 = vunpack.i.h.bf16 %v4351_v17  ;;  %v4352_v19 = vunpack.i.l.bf16 %v4351_v17 }
 0x2d4   : > { %v1519_v44 = vmax.f32 %v1443_v13, %v1489_v56 }
 0x2d5   : > { %v1416_v10 = vsel %vm670_vm5, %v4343_v34, %v4333_v21  ;;  %v1417_v9 = vsel %vm670_vm5, %v4333_v21, %v4342_v20  ;;  %v1492_v40 = vsel %vm724_vm11, %v4353_v38, %v4338_v47  ;;  %v1493_v50 = vsel %vm724_vm11, %v4338_v47, %v4352_v19 }
 0x2d6   : > { %v4346_v27 = vpop.permute.xlu0 %4345  ;;  %v4356_v45 = vpop.permute.xlu1 %4355  ;;  %v1447_v33 = vmax.f32 %v5294_v49, %v1416_v10  ;;  %v1448_v37 = vmax.f32 %v5291_v35, %v1417_v9  ;;  %v1418_v46 = vsel %vm670_vm5, %v4342_v20, %v5372_v51 }
 0x2d7   : > { %v4347_v0 = vunpack.i.l.bf16 %v4346_v27  ;;  %v4357_v58 = vunpack.i.l.bf16 %v4356_v45  ;;  %v4348_v6 = vunpack.i.h.bf16 %v4346_v27  ;;  %v4358_v16 = vunpack.i.h.bf16 %v4356_v45 }
 0x2d8   : > { %v1524_v36 = vmax.f32 %v1448_v37, %v1493_v50  ;;  %v1449_v21 = vmax.f32 %v5299_v48, %v1418_v46 }
 0x2d9   : > { %v1566_v63 = vsel %vm1559_vm13, %v4347_v0, %v4322_v54  ;;  %v1643_v49 = vsel %vm1636_vm14, %v4357_v58, %v4327_v32  ;;  %v1523_v54 = vmax.f32 %v1447_v33, %v1492_v40 }
 0x2da   : > { %v4361_v8 = vpop.permute.xlu0 %4360  ;;  %v4366_v11 = vpop.permute.xlu1 %4365  ;;  %v1596_v42 = vmax.f32 %v1519_v44, %v1566_v63 }
 0x2db   : > { %v4363_v35 = vunpack.i.h.bf16 %v4361_v8  ;;  %v4362_v29 = vunpack.i.l.bf16 %v4361_v8  ;;  %v4368_v22 = vunpack.i.h.bf16 %v4366_v11  ;;  %v4367_v26 = vunpack.i.l.bf16 %v4366_v11 }
 0x2dc   : > { %v1673_v24 = vmax.f32 %v1596_v42, %v1643_v49 }
 0x2dd   : > { %v1570_v7 = vsel %vm1559_vm13, %v4348_v6, %v4362_v29  ;;  %v1569_v18 = vsel %vm1559_vm13, %v4363_v35, %v4348_v6  ;;  %v1647_v55 = vsel %vm1636_vm14, %v4358_v16, %v4367_v26  ;;  %v1646_v60 = vsel %vm1636_vm14, %v4368_v22, %v4358_v16  ;;  %v581_v22 = vld [vmem:[%s6732_s7 + $0x8] sm:$0xff] }
 0x2de   : > { %v1482_v32 = vpop.permute.xlu0 %1481  ;;  %v1627_v15 = vpop.permute.xlu1 %1626  ;;  %1769 = vmatmul.mubr.f32.gmra.mxu0 %v1673_v24  ;;  %v1601_v53 = vmax.f32 %v1524_v36, %v1570_v7  ;;  %v1600_v31 = vmax.f32 %v1523_v54, %v1569_v18  ;;  %v587_v16 = vld [vmem:[%s6733_s8 + $0x8] sm:$0xff]  ;;  %v586_v24 = vld [vmem:[%s6733_s8] sm:$0xff] }
 0x2df   : > { %v1494_v23 = vsel %vm724_vm11, %v4352_v19, %v1482_v32  ;;  %v1645_v25 = vsel %vm1636_vm14, %v4328_v59, %v1627_v15  ;;  %v1676_v17 = vmax.f32 %v1599_v39, %v1627_v15  ;;  %v1526_v20 = vmax.f32 %v1450_v30, %v1482_v32 }
 0x2e0   : > { %v1678_v34 = vmax.f32 %v1601_v53, %v1647_v55  ;;  %v1675_v57 = vmax.f32 %v1598_v52, %v1645_v25  ;;  %v1677_v51 = vmax.f32 %v1600_v31, %v1646_v60  ;;  %v1525_v41 = vmax.f32 %v1449_v21, %v1494_v23 }
 0x2e1   : > { %3902 = vmatprep.mubr.msk.f32.mxu1 %vm1681_vm6, %v1676_v17 }
 0x2e2   : > { %v1558_v13 = vpop.permute.xlu0 %1557  ;;  %v1635_v10 = vpop.permute.xlu1 %1634  ;;  %1773 = vmatprep.mubr.f32.mxu0 %v1678_v34  ;;  %1854 = vmatmul.mubr.f32.gmra.mxu1 %v1675_v57 }
 0x2e3   : > { %v1571_v28 = vsel %vm1559_vm13, %v4362_v29, %v1558_v13  ;;  %v1603_v9 = vmax.f32 %v1526_v20, %v1558_v13  ;;  %1774 = vmatmul.mubr.f32.gmra.mxu0 %v1677_v51  ;;  %v1648_v38 = vsel %vm1636_vm14, %v4367_v26, %v1635_v10  ;;  %v582_v26 = vld [vmem:[%s6732_s7 + $0x10] sm:$0xff] }
 0x2e4   : > { %v1602_v59 = vmax.f32 %v1525_v41, %v1571_v28  ;;  %2045 = vmatprep.mubr.f32.mxu0 %v581_v22 }
 0x2e5   : > { %v1680_v43 = vmax.f32 %v1603_v9, %v1635_v10 }
 0x2e6   : > { %v1679_v48 = vmax.f32 %v1602_v59, %v1648_v38 }
 0x2e7   : > { %3903 = vmatprep.mubr.msk.f32.mxu1 %vm1681_vm6, %v1680_v43  ;;  %v580_v43 = vld [vmem:[%s6732_s7] sm:$0xff] }
 0x2e8   : > { %1859 = vmatmul.mubr.f32.gmra.mxu1 %v1679_v48  ;;  %v584_v48 = vld [vmem:[%s6732_s7 + $0x20] sm:$0xff] }
 0x2e9   : > { %4057 = vmatprep.mubr.msk.f32.mxu1 %vm1974_vm15, %v582_v26  ;;  %v541_v26 = vld [vmem:[%s6727_s2] sm:$0xff] }
 0x35c   : > { %v1845_v61 = vpop.f32.mrf.mxu1 }
 0x35e   : > { %v1847_v19 = vpop.f32.mrf.mxu1 }
 0x378   : > { %v3974_v27 = vpop.f32.mrf.mxu0 }
 0x37a   : > { %v3975_v45 = vpop.f32.mrf.mxu0 }
 0x37b   : > { %v3976_v47 = vadd.f32 %v3975_v45, %v3974_v27  ;;  %v583_v27 = vld [vmem:[%s6732_s7 + $0x18] sm:$0xff] }
 0x37d   : > { %v5411_v56 = vadd.f32 %v3976_v47, %v1845_v61 }
 0x37e   : > { %v1850_v0 = vpop.f32.mrf.mxu1 }
 0x37f   : > { %v3977_v58 = vpop.f32.mrf.mxu0  ;;  %1892 = vrot.lane.b32.xlu1 %v5411_v56, %s4407_s17  ;;  %1940 = vrot.lane.b32.xlu0 %v5411_v56, %s4408_s24 }
 0x380   : > { %v1852_v33 = vpop.f32.mrf.mxu1 }
 0x381   : > { %v3978_v37 = vpop.f32.mrf.mxu0 }
 0x382   : > { %v3979_v39 = vadd.f32 %v3978_v37, %v3977_v58  ;;  %v544_v37 = vld [vmem:[%s6727_s2 + $0x18] sm:$0x1f] }
 0x383   : > { %1880 = vrot.lane.b32.xlu1 %v5411_v56, %s4394_s26  ;;  %1928 = vrot.lane.b32.xlu0 %v5411_v56, %s4409_s29 }
 0x384   : > { %v5421_v44 = vadd.f32 %v3979_v39, %v1850_v0  ;;  %v543_v39 = vld [vmem:[%s6727_s2 + $0x10] sm:$0xff] }
 0x387   : > { %1894 = vrot.lane.b32.xlu1 %v5421_v44, %s4407_s17  ;;  %1942 = vrot.lane.b32.xlu0 %v5421_v44, %s4408_s24 }
 0x38b   : > { %1882 = vrot.lane.b32.xlu1 %v5421_v44, %s4394_s26  ;;  %1930 = vrot.lane.b32.xlu0 %v5421_v44, %s4409_s29 }
 0x39e   : > { %v3980_v40 = vpop.f32.mrf.mxu0 }
 0x3a0   : > { %v3981_v63 = vpop.f32.mrf.mxu0 }
 0x3a1   : > { %v3982_v62 = vadd.f32 %v3981_v63, %v3980_v40  ;;  %v542_v63 = vld [vmem:[%s6727_s2 + $0x8] sm:$0xff] }
 0x3a2   : > { %v1855_v12 = vpop.f32.mrf.mxu1 }
 0x3a3   : > { %v5431_v50 = vadd.f32 %v3982_v62, %v1855_v12  ;;  %v3983_v6 = vpop.f32.mrf.mxu0 }
 0x3a4   : > { %v1857_v8 = vpop.f32.mrf.mxu1 }
 0x3a5   : > { %v3984_v11 = vpop.f32.mrf.mxu0  ;;  %1896 = vrot.lane.b32.xlu1 %v5431_v50, %s4407_s17  ;;  %1944 = vrot.lane.b32.xlu0 %v5431_v50, %s4408_s24 }
 0x3a6   : > { %v3985_v42 = vadd.f32 %v3984_v11, %v3983_v6 }
 0x3a8   : > { %v1860_v49 = vpop.f32.mrf.mxu1 }
 0x3a9   : > { %1884 = vrot.lane.b32.xlu1 %v5431_v50, %s4394_s26  ;;  %1932 = vrot.lane.b32.xlu0 %v5431_v50, %s4409_s29  ;;  %v5441_v29 = vadd.f32 %v3985_v42, %v1860_v49 }
 0x3aa   : > { %v1862_v35 = vpop.f32.mrf.mxu1 }
 0x3ad   : > { %1898 = vrot.lane.b32.xlu1 %v5441_v29, %s4407_s17  ;;  %1946 = vrot.lane.b32.xlu0 %v5441_v29, %s4408_s24 }
 0x3b1   : > { %1872 = vrot.lane.b32.xlu1 %v5431_v50, %s6757_s25  ;;  %1920 = vrot.lane.b32.xlu0 %v5431_v50, %s4410_s18 }
 0x3b5   : > { %1886 = vrot.lane.b32.xlu1 %v5441_v29, %s4394_s26  ;;  %1934 = vrot.lane.b32.xlu0 %v5441_v29, %s4409_s29 }
 0x3b9   : > { %1870 = vrot.lane.b32.xlu1 %v5421_v44, %s6757_s25  ;;  %1918 = vrot.lane.b32.xlu0 %v5421_v44, %s4410_s18 }
 0x3bd   : > { %1874 = vrot.lane.b32.xlu1 %v5441_v29, %s6757_s25  ;;  %1922 = vrot.lane.b32.xlu0 %v5441_v29, %s4410_s18 }
 0x3c1   : > { %1868 = vrot.lane.b32.xlu1 %v5411_v56, %s6757_s25  ;;  %1916 = vrot.lane.b32.xlu0 %v5411_v56, %s4410_s18 }
 0x3c5   : > { %1908 = vrot.lane.b32.xlu1 %v5431_v50, %s4411_s16  ;;  %1910 = vrot.lane.b32.xlu0 %v5441_v29, %s4411_s16 }
 0x3c9   : > { %1904 = vrot.lane.b32.xlu1 %v5411_v56, %s4411_s16  ;;  %1906 = vrot.lane.b32.xlu0 %v5421_v44, %s4411_s16 }
 0x3cd   : > { %1956 = vrot.lane.b32.xlu1 %v5431_v50, %s6755_s23  ;;  %1958 = vrot.lane.b32.xlu0 %v5441_v29, %s6755_s23 }
 0x3d1   : > { %1952 = vrot.lane.b32.xlu1 %v5411_v56, %s6755_s23  ;;  %1954 = vrot.lane.b32.xlu0 %v5421_v44, %s6755_s23  ;;  %s6814_s23 = smov 83  }
 0x3d5   : > { %1971 = vperm.xlu1 %4127, %v587_v16   ;;  %1966 = vperm.xlu0 %4128, %v586_v24  }
 0x3f1   : > { %v1893_v36 = vpop.permute.xlu1 %1892  ;;  %v1941_v54 = vpop.permute.xlu0 %1940 }
 0x3f5   : > { %v1881_v46 = vpop.permute.xlu1 %1880  ;;  %v1929_v7 = vpop.permute.xlu0 %1928 }
 0x3f9   : > { %v1895_v52 = vpop.permute.xlu1 %1894  ;;  %v1943_v18 = vpop.permute.xlu0 %1942 }
 0x3fd   : > { %v1883_v30 = vpop.permute.xlu1 %1882  ;;  %v1931_v32 = vpop.permute.xlu0 %1930 }
 0x417   : > { %v1897_v15 = vpop.permute.xlu1 %1896  ;;  %v1945_v53 = vpop.permute.xlu0 %1944 }
 0x41b   : > { %v1885_v55 = vpop.permute.xlu1 %1884  ;;  %v1933_v31 = vpop.permute.xlu0 %1932 }
 0x41f   : > { %v1899_v23 = vpop.permute.xlu1 %1898  ;;  %v1947_v25 = vpop.permute.xlu0 %1946 }
 0x420   : > { %3986 = vmatprep.subr.mxu0 %v1947_v25 }
 0x421   : > { %3987 = vmatpush3.msra.mxu0 %v1899_v23 }
 0x422   : > { %3988 = vmatprep.subr.mxu0 %v1945_v53  ;;  %v592_v53 = vld [vmem:[%s6735_s10] sm:$0xff] }
 0x423   : > { %v1873_v17 = vpop.permute.xlu1 %1872  ;;  %3989 = vmatpush3.msra.mxu0 %v1897_v15  ;;  %v1921_v60 = vpop.permute.xlu0 %1920  ;;  %v589_v15 = vld [vmem:[%s6734_s9 + $0x8] sm:$0xff] }
 0x424   : > { %3990 = vmatprep.subr.mxu0 %v1943_v18 }
 0x425   : > { %3991 = vmatpush3.msra.mxu0 %v1895_v52 }
 0x426   : > { %3992 = vmatprep.subr.mxu0 %v1941_v54 }
 0x427   : > { %v1887_v21 = vpop.permute.xlu1 %1886  ;;  %3993 = vmatpush3.msra.mxu0 %v1893_v36  ;;  %v1935_v34 = vpop.permute.xlu0 %1934 }
 0x428   : > { %3994 = vmatprep.subr.mxu0 %v1935_v34 }
 0x429   : > { %3995 = vmatpush3.msra.mxu0 %v1887_v21 }
 0x42a   : > { %3996 = vmatprep.subr.mxu0 %v1933_v31 }
 0x42b   : > { %v1871_v57 = vpop.permute.xlu1 %1870  ;;  %3997 = vmatpush3.msra.mxu0 %v1885_v55  ;;  %v1919_v51 = vpop.permute.xlu0 %1918  ;;  %v593_v55 = vld [vmem:[%s6735_s10 + $0x8] sm:$0xff] }
 0x42c   : > { %3998 = vmatprep.subr.mxu0 %v1931_v32 }
 0x42d   : > { %3999 = vmatpush3.msra.mxu0 %v1883_v30 }
 0x42e   : > { %4000 = vmatprep.subr.mxu0 %v1929_v7 }
 0x42f   : > { %v1875_v20 = vpop.permute.xlu1 %1874  ;;  %4001 = vmatpush3.msra.mxu0 %v1881_v46  ;;  %v1923_v41 = vpop.permute.xlu0 %1922 }
 0x430   : > { %4002 = vmatprep.subr.mxu0 %v1923_v41 }
 0x431   : > { %4003 = vmatpush3.msra.mxu0 %v1875_v20 }
 0x432   : > { %4004 = vmatprep.subr.mxu0 %v1921_v60 }
 0x433   : > { %v1869_v13 = vpop.permute.xlu1 %1868  ;;  %4005 = vmatpush3.msra.mxu0 %v1873_v17  ;;  %v1917_v10 = vpop.permute.xlu0 %1916 }
 0x434   : > { %4006 = vmatprep.subr.mxu0 %v1919_v51 }
 0x435   : > { %4007 = vmatpush3.msra.mxu0 %v1871_v57 }
 0x436   : > { %4008 = vmatprep.subr.mxu0 %v1917_v10 }
 0x437   : > { %v1909_v28 = vpop.permute.xlu1 %1908  ;;  %4009 = vmatpush3.msra.mxu0 %v1869_v13  ;;  %v1911_v9 = vpop.permute.xlu0 %1910 }
 0x438   : > { %4010 = vmatprep.subr.mxu0 %v1911_v9 }
 0x439   : > { %4011 = vmatpush3.msra.mxu0 %v5441_v29 }
 0x43a   : > { %4012 = vmatprep.subr.mxu0 %v1909_v28 }
 0x43b   : > { %v1905_v59 = vpop.permute.xlu1 %1904  ;;  %4013 = vmatpush3.msra.mxu0 %v5431_v50  ;;  %v1907_v38 = vpop.permute.xlu0 %1906 }
 0x43c   : > { %4014 = vmatprep.subr.mxu0 %v1907_v38 }
 0x43d   : > { %4015 = vmatpush3.msra.mxu0 %v5421_v44 }
 0x43e   : > { %4016 = vmatprep.subr.mxu0 %v1905_v59  ;;  %v588_v59 = vld [vmem:[%s6734_s9] sm:$0xff] }
 0x43f   : > { %v1957_v61 = vpop.permute.xlu1 %1956  ;;  %4017 = vmatpush3.msra.mxu0 %v5411_v56  ;;  %v1959_v19 = vpop.permute.xlu0 %1958  ;;  %v585_v56 = vld [vmem:[%s6732_s7 + $0x28] sm:$0xff] }
 0x440   : > { %2046 = vmatmul.mubr.f32.vlgmr.msra.gmra.mxu0 %v580_v43  ;;  %4049 = vmatprep.subr.mxu1 %v1959_v19  ;;  %v591_v43 = vld [vmem:[%s6734_s9 + $0x18] sm:$0xff] }
 0x441   : > { %4050 = vmatpush3.msra.mxu1 %v1959_v19  ;;  %2050 = vmatprep.mubr.f32.mxu0 %v584_v48  ;;  %v590_v48 = vld [vmem:[%s6734_s9 + $0x10] sm:$0xff]  ;;  %v545_v19 = vld [vmem:[%s6728_s3] sm:$0xff] }
 0x442   : > { %4051 = vmatprep.subr.mxu1 %v1957_v61 }
 0x443   : > { %4052 = vmatpush3.msra.mxu1 %v1957_v61  ;;  %v1955_v45 = vpop.permute.xlu0 %1954  ;;  %v1953_v47 = vpop.permute.xlu1 %1952  ;;  %v546_v61 = vld [vmem:[%s6728_s3 + $0x8] sm:$0xff] }
 0x444   : > { %2051 = vmatmul.mubr.f32.gmra.mxu0 %v583_v27  ;;  %4053 = vmatprep.subr.mxu1 %v1955_v45 }
 0x445   : > { %4054 = vmatpush3.msra.mxu1 %v1955_v45  ;;  %4071 = vmatprep.subr.mxu0 %v546_v61 }
 0x446   : > { %4055 = vmatprep.subr.mxu1 %v1953_v47  ;;  %4072 = vmatpush3.msra.mxu0 %v546_v61 }
 0x447   : > { %4056 = vmatpush3.msra.mxu1 %v1953_v47  ;;  %4073 = vmatprep.subr.mxu0 %v545_v19 }
 0x448   : > { %4058 = vmatmul.mubr.msk.f32.vlgmr.msra.gmra.mxu1 %vm1974_vm15, %v585_v56  ;;  %4060 = vmatprep.subr.msk.mxu1 %vm787_vm10, %v544_v37 }
 0x449   : > { %4061 = vmatpush3.msk.msra.mxu1 %vm787_vm10, %v544_v37  ;;  %vm2153_vm10 = vcmask 236544   ;;  %4074 = vmatpush3.msra.mxu0 %v545_v19 }
 0x44a   : > { %4062 = vmatprep.subr.mxu1 %v543_v39  ;;  %2545 = vmatprep.subr.mxu0 %v6760_v14 }
 0x44b   : > { %4063 = vmatpush3.msra.mxu1 %v543_v39 }
 0x44c   : > { %4064 = vmatprep.subr.mxu1 %v542_v63 }
 0x44d   : > { %4065 = vmatpush3.msra.mxu1 %v542_v63 }
 0x44e   : > { %4066 = vmatprep.subr.mxu1 %v541_v26 }
 0x44f   : > { %4067 = vmatpush3.msra.mxu1 %v541_v26 }
 0x450   : > { %v1972_v62 = vpop.permute.xlu1 %1971  ;;  %v1967_v50 = vpop.permute.xlu0 %1966  ;;  %2305 = vmatprep.subr.mxu1 %v6760_v14 }
 0x500   : > { %v4018_v0 = vpop.f32.mrf.mxu0 }
 0x502   : > { %v4019_v58 = vpop.f32.mrf.mxu0 }
 0x503   : > { %v4020_v44 = vadd.f32 %v4019_v58, %v4018_v0 }
 0x504   : > { %v4021_v33 = vpop.f32.mrf.mxu0 }
 0x505   : > { %v2048_v11 = vadd.f32 %v4020_v44, %v1967_v50  ;;  %v603_v50 = vld [vmem:[%s6737_s12 + $0x8] sm:$0xff] }
 0x506   : > { %v4022_v40 = vpop.f32.mrf.mxu0 }
 0x507   : > { %v4023_v12 = vadd.f32 %v4022_v40, %v4021_v33 }
 0x508   : > { %v4059_v6 = vpop.f32.mrf.mxu1 }
 0x509   : > { %v2053_v8 = vadd.f32 %v4023_v12, %v1972_v62  ;;  %v595_v62 = vld [vmem:[%s6736_s11 + $0x8] sm:$0xff]  ;;  %v602_v12 = vld [vmem:[%s6737_s12] sm:$0xff] }
 0x50a   : > { %v2122_v42 = vpop.f32.mrf.mxu1 }
 0x50b   : > { %v2128_v49 = vadd.f32 %v4059_v6, %v2053_v8  ;;  %v2123_v35 = vadd.f32 %v2122_v42, %v2048_v11  ;;  %v604_v6 = vld [vmem:[%s6737_s12 + $0x10] sm:$0xff]  ;;  %v568_v8 = vld [vmem:[%s6729_s4 + $0xa8] sm:$0xf]  ;;  %v567_v11 = vld [vmem:[%s6729_s4 + $0xa0] sm:$0xf] }
 0x50c   : > { %v563_v42 = vld [vmem:[%s6729_s4 + $0x80] sm:$0xff] }
 0x50d   : > { %v2132_v29 = vmax.f32 %v2128_v49, 0.0  ;;  %v2131_v22 = vmax.f32 %v2123_v35, 0.0  ;;  %v605_v49 = vld [vmem:[%s6737_s12 + $0x18] sm:$0xff] }
 0x50e   : > { %v562_v35 = vld [vmem:[%s6729_s4 + $0x78] sm:$0xff] }
 0x50f   : > { %2137 = vrot.lane.b32.xlu1 %v2132_v29, %s6757_s25  ;;  %2135 = vrot.lane.b32.xlu0 %v2131_v22, %s6757_s25 }
 0x581   : > { %v2138_v16 = vpop.permute.xlu1 %2137  ;;  %v2136_v24 = vpop.permute.xlu0 %2135 }
 0x582   : > { %v2142_v36 = vmax.f32 %v2132_v29, %v2138_v16  ;;  %v2141_v54 = vmax.f32 %v2131_v22, %v2136_v24  ;;  %v558_v29 = vld [vmem:[%s6729_s4 + $0x58] sm:$0xff] }
 0x584   : > { %2147 = vrot.lane.b32.xlu1 %v2142_v36, %s4407_s17  ;;  %2145 = vrot.lane.b32.xlu0 %v2141_v54, %s4407_s17 }
 0x5f6   : > { %v2148_v46 = vpop.permute.xlu1 %2147  ;;  %v2146_v7 = vpop.permute.xlu0 %2145 }
 0x5f7   : > { %v2152_v52 = vmax.f32 %v2142_v36, %v2148_v46  ;;  %v2151_v18 = vmax.f32 %v2141_v54, %v2146_v7 }
 0x5f9   : > { %4068 = vmatprep.mubr.msk.f32.mxu1 %vm2153_vm10, %v2151_v18 }
 0x5fa   : > { %4069 = vmatmul.mubr.msk.f32.vlgmr.msra.gmra.mxu1 %vm2153_vm10, %v2152_v52 }
 0x5fb   : > { %3909 = vmatprep.mubr.msk.f32.mxu1 %vm2298_vm1, %v589_v15 }
 0x6ba   : > { %v5532_v30 = vpop.f32.mrf.mxu1 }
 0x6bb   : > { %2278 = vrot.lane.b32.xlu0 %v5532_v30, %s4413_s28 }
 0x6bc   : > { %v5535_v32 = vpop.f32.mrf.mxu1 }
 0x6bd   : > { %2276 = vrot.lane.b32.xlu1 %v5535_v32, %s4413_s28  ;;  %s6815_s28 = smov 84  }
 0x6bf   : > { %2272 = vrot.lane.b32.xlu0 %v5532_v30, %s4410_s18 }
 0x6c1   : > { %2270 = vrot.lane.b32.xlu1 %v5535_v32, %s4410_s18 }
 0x6c3   : > { %2266 = vrot.lane.b32.xlu0 %v5532_v30, %s4407_s17 }
 0x6c5   : > { %2264 = vrot.lane.b32.xlu1 %v5535_v32, %s4407_s17 }
 0x6c7   : > { %2260 = vrot.lane.b32.xlu0 %v5532_v30, %s4414_s22 }
 0x6c9   : > { %2258 = vrot.lane.b32.xlu1 %v5535_v32, %s4414_s22  ;;  %s6816_s22 = smov 104  }
 0x6cb   : > { %2254 = vrot.lane.b32.xlu0 %v5532_v30, %s6806_s19 }
 0x6cd   : > { %2252 = vrot.lane.b32.xlu1 %v5535_v32, %s6806_s19  ;;  %s6842_s19 = smov 105  }
 0x6cf   : > { %2248 = vrot.lane.b32.xlu0 %v5532_v30, %s4394_s26 }
 0x6d1   : > { %2246 = vrot.lane.b32.xlu1 %v5535_v32, %s4394_s26 }
 0x6d3   : > { %2242 = vrot.lane.b32.xlu0 %v5532_v30, %s6757_s25 }
 0x6d5   : > { %2240 = vrot.lane.b32.xlu1 %v5535_v32, %s6757_s25  ;;  %s491_s25 = scalar_lea.vmem %s6740_s15, %s3887_s14 }
 0x6d7   : > { %2284 = vrot.lane.b32.xlu0 %v5532_v30, %s4415_s30 }
 0x6d9   : > { %2282 = vrot.lane.b32.xlu1 %v5535_v32, %s4415_s30 }
 0x6db   : > { %2290 = vperm.xlu0 %4128, %v592_v53  }
 0x6dd   : > { %2295 = vperm.xlu1 %4127, %v593_v55  }
 0x72d   : > { %v2279_v31 = vpop.permute.xlu0 %2278 }
 0x72e   : > { %2306 = vmatpush1.msra.mxu1 %v2279_v31  ;;  %v594_v31 = vld [vmem:[%s6736_s11] sm:$0xff] }
 0x72f   : > { %2307 = vmatprep.subr.mxu1 %v6760_v14  ;;  %v2277_v23 = vpop.permute.xlu1 %2276 }
 0x730   : > { %2308 = vmatpush1.msra.mxu1 %v2277_v23  ;;  %v571_v23 = vld [vmem:[%s6729_s4 + $0xc0] sm:$0xf] }
 0x731   : > { %v2273_v25 = vpop.permute.xlu0 %2272  ;;  %2309 = vmatprep.subr.mxu1 %v6760_v14 }
 0x732   : > { %2310 = vmatpush1.msra.mxu1 %v2273_v25 }
 0x733   : > { %2311 = vmatprep.subr.mxu1 %v6760_v14  ;;  %v2271_v17 = vpop.permute.xlu1 %2270 }
 0x734   : > { %2312 = vmatpush1.msra.mxu1 %v2271_v17  ;;  %v597_v17 = vld [vmem:[%s6736_s11 + $0x18] sm:$0xff] }
 0x735   : > { %v2267_v60 = vpop.permute.xlu0 %2266  ;;  %2313 = vmatprep.subr.mxu1 %v6760_v14 }
 0x736   : > { %2314 = vmatpush1.msra.mxu1 %v2267_v60  ;;  %v596_v60 = vld [vmem:[%s6736_s11 + $0x10] sm:$0xff] }
 0x737   : > { %2315 = vmatprep.subr.mxu1 %v6760_v14  ;;  %v2265_v21 = vpop.permute.xlu1 %2264 }
 0x738   : > { %2316 = vmatpush1.msra.mxu1 %v2265_v21  ;;  %v599_v21 = vld [vmem:[%s6736_s11 + $0x28] sm:$0xff] }
 0x739   : > { %v2261_v34 = vpop.permute.xlu0 %2260  ;;  %2317 = vmatprep.subr.mxu1 %v6760_v14 }
 0x73a   : > { %2318 = vmatpush1.msra.mxu1 %v2261_v34  ;;  %v598_v34 = vld [vmem:[%s6736_s11 + $0x20] sm:$0xff] }
 0x73b   : > { %2319 = vmatprep.subr.mxu1 %v6760_v14  ;;  %v2259_v57 = vpop.permute.xlu1 %2258 }
 0x73c   : > { %2320 = vmatpush1.msra.mxu1 %v2259_v57  ;;  %v601_v57 = vld [vmem:[%s6736_s11 + $0x38] sm:$0xff] }
 0x73d   : > { %v2255_v51 = vpop.permute.xlu0 %2254  ;;  %2321 = vmatprep.subr.mxu1 %v6760_v14 }
 0x73e   : > { %2322 = vmatpush1.msra.mxu1 %v2255_v51  ;;  %v600_v51 = vld [vmem:[%s6736_s11 + $0x30] sm:$0xff] }
 0x73f   : > { %2323 = vmatprep.subr.mxu1 %v6760_v14  ;;  %v2253_v20 = vpop.permute.xlu1 %2252 }
 0x740   : > { %2324 = vmatpush1.msra.mxu1 %v2253_v20  ;;  %v557_v20 = vld [vmem:[%s6729_s4 + $0x50] sm:$0xff] }
 0x741   : > { %v2249_v41 = vpop.permute.xlu0 %2248  ;;  %2325 = vmatprep.subr.mxu1 %v6760_v14 }
 0x742   : > { %2326 = vmatpush1.msra.mxu1 %v2249_v41  ;;  %v553_v41 = vld [vmem:[%s6729_s4 + $0x30] sm:$0xff] }
 0x743   : > { %2327 = vmatprep.subr.mxu1 %v6760_v14  ;;  %v2247_v13 = vpop.permute.xlu1 %2246 }
 0x744   : > { %2328 = vmatpush1.msra.mxu1 %v2247_v13  ;;  %v566_v13 = vld [vmem:[%s6729_s4 + $0x98] sm:$0xff] }
 0x745   : > { %v2243_v10 = vpop.permute.xlu0 %2242  ;;  %2329 = vmatprep.subr.mxu1 %v6760_v14 }
 0x746   : > { %2330 = vmatpush1.msra.mxu1 %v2243_v10  ;;  %v552_v10 = vld [vmem:[%s6729_s4 + $0x28] sm:$0xff] }
 0x747   : > { %2331 = vmatprep.subr.mxu1 %v6760_v14  ;;  %v2241_v28 = vpop.permute.xlu1 %2240 }
 0x748   : > { %2332 = vmatpush1.msra.mxu1 %v2241_v28  ;;  %v548_v28 = vld [vmem:[%s6729_s4 + $0x8] sm:$0xff] }
 0x749   : > { %2333 = vmatprep.subr.mxu1 %v6760_v14  ;;  %v2285_v9 = vpop.permute.xlu0 %2284 }
 0x74a   : > { %2334 = vmatpush1.msra.mxu1 %v5532_v30 }
 0x74b   : > { %2335 = vmatprep.subr.mxu1 %v6760_v14  ;;  %v2283_v38 = vpop.permute.xlu1 %2282 }
 0x74c   : > { %2336 = vmatpush1.msra.mxu1 %v5535_v32 }
 0x74d   : > { %2365 = vmatprep.subr.mxu1 %v6760_v14 }
 0x74e   : > { %2366 = vmatpush2.msra.mxu1 %v2285_v9  ;;  %v561_v9 = vld [vmem:[%s6729_s4 + $0x70] sm:$0xff] }
 0x74f   : > { %2367 = vmatprep.subr.mxu1 %v6760_v14 }
 0x750   : > { %2368 = vmatpush2.msra.mxu1 %v2283_v38  ;;  %v556_v38 = vld [vmem:[%s6729_s4 + $0x48] sm:$0xff] }
 0x751   : > { %2370 = vmatmul.mubr.f32.vlgmr.msra.gmra.mxu1 %v588_v59  ;;  %3917 = vmatprep.subr.msk.mxu1 %vm782_vm8, %v568_v8  ;;  %v547_v59 = vld [vmem:[%s6729_s4] sm:$0xff] }
 0x752   : > { %3910 = vmatprep.mubr.msk.f32.mxu1 %vm2298_vm1, %v591_v43  ;;  %3918 = vmatpush1.msk.msra.mxu1 %vm782_vm8, %v567_v11  ;;  %v551_v43 = vld [vmem:[%s6729_s4 + $0x20] sm:$0xff] }
 0x753   : > { %2686 = vmatprep.subr.mxu1 %v563_v42  ;;  %v555_v8 = vld [vmem:[%s6729_s4 + $0x40] sm:$0xff] }
 0x754   : > { %2687 = vmatpush1.msra.mxu1 %v562_v35 }
 0x755   : > { %2375 = vmatmul.mubr.f32.gmra.mxu1 %v590_v48  ;;  %2688 = vmatprep.subr.mxu1 %v558_v29  ;;  %v570_v48 = vld [vmem:[%s6729_s4 + $0xb8] sm:$0xf] }
 0x756   : > { %2726 = vmatprep.mubr.f32.mxu1 %v6760_v14  ;;  %v2291_v27 = vpop.permute.xlu0 %2290  ;;  %2689 = vmatpush1.msra.mxu1 %v557_v20 }
 0x757   : > { %2690 = vmatprep.subr.mxu1 %v553_v41 }
 0x758   : > { %v2296_v58 = vpop.permute.xlu1 %2295  ;;  %2691 = vmatpush1.msra.mxu1 %v552_v10 }
 0x759   : > { %2692 = vmatprep.subr.mxu1 %v548_v28 }
 0x75a   : > { %2693 = vmatpush1.msra.mxu1 %v547_v59 }
 0x75b   : > { %3923 = vmatprep.subr.msk.mxu1 %vm782_vm8, %v570_v48 }
 0x811   : > { %v2371_v45 = vpop.f32.mrf.mxu1 }
 0x812   : > { %v2372_v47 = vadd.f32 %v2371_v45, %v2291_v27 }
 0x813   : > { %v2373_v56 = vpop.f32.mrf.mxu1 }
 0x814   : > { %v2380_v0 = vmax.f32 %v2372_v47, 0.0  ;;  %v569_v56 = vld [vmem:[%s6729_s4 + $0xb0] sm:$0xf] }
 0x815   : > { %v2376_v33 = vpop.f32.mrf.mxu1 }
 0x816   : > { %v2377_v37 = vadd.f32 %v2376_v33, %v2296_v58  ;;  %4075 = vmatprep.mubr.msk.f32.mxu0 %vm2298_vm1, %v2380_v0  ;;  %v565_v33 = vld [vmem:[%s6729_s4 + $0x90] sm:$0xff] }
 0x817   : > { %v2378_v39 = vpop.f32.mrf.mxu1 }
 0x818   : > { %v2381_v44 = vmax.f32 %v2377_v37, 0.0  ;;  %v564_v39 = vld [vmem:[%s6729_s4 + $0x88] sm:$0xff] }
 0x81a   : > { %4076 = vmatmul.mubr.msk.f32.vlgmr.msra.gmra.mxu0 %vm2298_vm1, %v2381_v44 }
 0x81b   : > { %3913 = vmatprep.mubr.msk.f32.mxu0 %vm2298_vm1, %v595_v62 }
 0x8da   : > { %v5611_v40 = vpop.f32.mrf.mxu0 }
 0x8db   : > { %2503 = vrot.lane.b32.xlu0 %v5611_v40, %s4408_s24 }
 0x8dc   : > { %v5615_v63 = vpop.f32.mrf.mxu0 }
 0x8dd   : > { %2501 = vrot.lane.b32.xlu1 %v5615_v63, %s4408_s24 }
 0x8df   : > { %2497 = vrot.lane.b32.xlu0 %v5611_v40, %s4409_s29 }
 0x8e1   : > { %2495 = vrot.lane.b32.xlu1 %v5615_v63, %s4409_s29  ;;  %s6807_s29 = smov 127  }
 0x8e3   : > { %2491 = vrot.lane.b32.xlu0 %v5611_v40, %s4410_s18 }
 0x8e5   : > { %2489 = vrot.lane.b32.xlu1 %v5615_v63, %s4410_s18  ;;  %s6808_s18 = smov 114  }
 0x8e7   : > { %2485 = vrot.lane.b32.xlu0 %v5611_v40, %s4411_s16 }
 0x8e9   : > { %2483 = vrot.lane.b32.xlu1 %v5615_v63, %s4411_s16  ;;  %s6811_s16 = smov 82  }
 0x8eb   : > { %2479 = vrot.lane.b32.xlu0 %v5611_v40, %s4407_s17 }
 0x8ed   : > { %2477 = vrot.lane.b32.xlu1 %v5615_v63, %s4407_s17  ;;  %s6810_s17 = smov 106  }
 0x8ef   : > { %2473 = vrot.lane.b32.xlu0 %v5611_v40, %s4394_s26 }
 0x8f1   : > { %2471 = vrot.lane.b32.xlu1 %v5615_v63, %s4394_s26 }
 0x8f3   : > { %2467 = vrot.lane.b32.xlu0 %v5611_v40, %s6807_s29 }
 0x8f5   : > { %2465 = vrot.lane.b32.xlu1 %v5615_v63, %s6807_s29 }
 0x8f7   : > { %2509 = vrot.lane.b32.xlu0 %v5611_v40, %s6808_s18 }
 0x8f9   : > { %2507 = vrot.lane.b32.xlu1 %v5615_v63, %s6808_s18 }
 0x8fb   : > { %2515 = vperm.xlu0 %4128, %v602_v12  }
 0x8fd   : > { %2520 = vperm.xlu1 %4127, %v603_v50   ;;  %v559_v50 = vld [vmem:[%s6729_s4 + $0x60] sm:$0xff] }
 0x8ff   : > { %2525 = vperm.xlu0 %4128, %v604_v6  }
 0x901   : > { %2530 = vperm.xlu1 %4127, %v605_v49   ;;  %v554_v49 = vld [vmem:[%s6729_s4 + $0x38] sm:$0xff] }
 0x94d   : > { %v2504_v22 = vpop.permute.xlu0 %2503 }
 0x94e   : > { %2546 = vmatpush1.msra.mxu0 %v2504_v22  ;;  %v550_v22 = vld [vmem:[%s6729_s4 + $0x18] sm:$0xff] }
 0x94f   : > { %2547 = vmatprep.subr.mxu0 %v6760_v14  ;;  %v2502_v26 = vpop.permute.xlu1 %2501 }
 0x950   : > { %2548 = vmatpush1.msra.mxu0 %v2502_v26 }
 0x951   : > { %v2498_v16 = vpop.permute.xlu0 %2497  ;;  %2549 = vmatprep.subr.mxu0 %v6760_v14 }
 0x952   : > { %2550 = vmatpush1.msra.mxu0 %v2498_v16  ;;  %v549_v16 = vld [vmem:[%s6729_s4 + $0x10] sm:$0xff] }
 0x953   : > { %2551 = vmatprep.subr.mxu0 %v6760_v14  ;;  %v2496_v24 = vpop.permute.xlu1 %2495 }
 0x954   : > { %2552 = vmatpush1.msra.mxu0 %v2496_v24 }
 0x955   : > { %v2492_v36 = vpop.permute.xlu0 %2491  ;;  %2553 = vmatprep.subr.mxu0 %v6760_v14 }
 0x956   : > { %2554 = vmatpush1.msra.mxu0 %v2492_v36 }
 0x957   : > { %2555 = vmatprep.subr.mxu0 %v6760_v14  ;;  %v2490_v54 = vpop.permute.xlu1 %2489 }
 0x958   : > { %2556 = vmatpush1.msra.mxu0 %v2490_v54 }
 0x959   : > { %v2486_v46 = vpop.permute.xlu0 %2485  ;;  %2557 = vmatprep.subr.mxu0 %v6760_v14 }
 0x95a   : > { %2558 = vmatpush1.msra.mxu0 %v2486_v46 }
 0x95b   : > { %2559 = vmatprep.subr.mxu0 %v6760_v14  ;;  %v2484_v7 = vpop.permute.xlu1 %2483 }
 0x95c   : > { %2560 = vmatpush1.msra.mxu0 %v2484_v7 }
 0x95d   : > { %v2480_v52 = vpop.permute.xlu0 %2479  ;;  %2561 = vmatprep.subr.mxu0 %v6760_v14 }
 0x95e   : > { %2562 = vmatpush1.msra.mxu0 %v2480_v52 }
 0x95f   : > { %2563 = vmatprep.subr.mxu0 %v6760_v14  ;;  %v2478_v18 = vpop.permute.xlu1 %2477 }
 0x960   : > { %2564 = vmatpush1.msra.mxu0 %v2478_v18 }
 0x961   : > { %v2474_v30 = vpop.permute.xlu0 %2473  ;;  %2565 = vmatprep.subr.mxu0 %v6760_v14 }
 0x962   : > { %2566 = vmatpush1.msra.mxu0 %v2474_v30 }
 0x963   : > { %2567 = vmatprep.subr.mxu0 %v6760_v14  ;;  %v2472_v32 = vpop.permute.xlu1 %2471 }
 0x964   : > { %2568 = vmatpush1.msra.mxu0 %v2472_v32 }
 0x965   : > { %v2468_v15 = vpop.permute.xlu0 %2467  ;;  %2569 = vmatprep.subr.mxu0 %v6760_v14 }
 0x966   : > { %2570 = vmatpush1.msra.mxu0 %v2468_v15 }
 0x967   : > { %2571 = vmatprep.subr.mxu0 %v6760_v14  ;;  %v2466_v53 = vpop.permute.xlu1 %2465 }
 0x968   : > { %2572 = vmatpush1.msra.mxu0 %v2466_v53 }
 0x969   : > { %2573 = vmatprep.subr.mxu0 %v6760_v14  ;;  %v2510_v55 = vpop.permute.xlu0 %2509 }
 0x96a   : > { %2574 = vmatpush1.msra.mxu0 %v5611_v40 }
 0x96b   : > { %2575 = vmatprep.subr.mxu0 %v6760_v14  ;;  %v2508_v25 = vpop.permute.xlu1 %2507 }
 0x96c   : > { %2576 = vmatpush1.msra.mxu0 %v5615_v63  ;;  %v560_v63 = vld [vmem:[%s6729_s4 + $0x68] sm:$0xff] }
 0x96d   : > { %2605 = vmatprep.subr.mxu0 %v6760_v14 }
 0x96e   : > { %2606 = vmatpush2.msra.mxu0 %v2510_v55 }
 0x96f   : > { %2607 = vmatprep.subr.mxu0 %v6760_v14 }
 0x970   : > { %2608 = vmatpush2.msra.mxu0 %v2508_v25 }
 0x971   : > { %2610 = vmatmul.mubr.f32.vlgmr.msra.gmra.mxu0 %v594_v31  ;;  %4078 = vmatprep.subr.msk.mxu0 %vm782_vm8, %v571_v23 }
 0x972   : > { %3914 = vmatprep.mubr.msk.f32.mxu0 %vm2298_vm1, %v597_v17  ;;  %4079 = vmatpush3.msk.msra.mxu0 %vm782_vm8, %v571_v23 }
 0x973   : > { %4080 = vmatprep.subr.mxu0 %v566_v13 }
 0x974   : > { %4081 = vmatpush3.msra.mxu0 %v566_v13 }
 0x975   : > { %2615 = vmatmul.mubr.f32.gmra.mxu0 %v596_v60  ;;  %4082 = vmatprep.subr.mxu0 %v561_v9 }
 0x976   : > { %3915 = vmatprep.mubr.msk.f32.mxu0 %vm2298_vm1, %v599_v21  ;;  %4083 = vmatpush3.msra.mxu0 %v561_v9  ;;  %v2516_v61 = vpop.permute.xlu0 %2515 }
 0x977   : > { %4084 = vmatprep.subr.mxu0 %v556_v38 }
 0x978   : > { %4085 = vmatpush3.msra.mxu0 %v556_v38  ;;  %v2521_v0 = vpop.permute.xlu1 %2520 }
 0x979   : > { %2620 = vmatmul.mubr.f32.gmra.mxu0 %v598_v34  ;;  %4086 = vmatprep.subr.mxu0 %v551_v43 }
 0x97a   : > { %3916 = vmatprep.mubr.msk.f32.mxu0 %vm2298_vm1, %v601_v57  ;;  %4087 = vmatpush3.msra.mxu0 %v551_v43  ;;  %v2526_v62 = vpop.permute.xlu0 %2525 }
 0x97c   : > { %v2531_v35 = vpop.permute.xlu1 %2530 }
 0x97d   : > { %2625 = vmatmul.mubr.f32.gmra.mxu0 %v600_v51 }
 0xa31   : > { %v2611_v19 = vpop.f32.mrf.mxu0 }
 0xa32   : > { %v2612_v27 = vadd.f32 %v2611_v19, %v2516_v61 }
 0xa33   : > { %v2613_v45 = vpop.f32.mrf.mxu0 }
 0xa34   : > { %v2630_v47 = vmax.f32 %v2612_v27, 0.0 }
 0xa35   : > { %v2616_v58 = vpop.f32.mrf.mxu0 }
 0xa36   : > { %v2617_v37 = vadd.f32 %v2616_v58, %v2521_v0  ;;  %3919 = vmatmul.mubr.msk.f32.vlgmr.msra.gmra.mxu1 %vm2634_vm4, %v2630_v47  ;;  %4088 = vmatprep.mubr.msk.f32.mxu0 %vm2634_vm4, %v2630_v47 }
 0xa37   : > { %v2618_v44 = vpop.f32.mrf.mxu0  ;;  %2732 = vmatprep.mubr.f32.mxu1 %v6760_v14  ;;  %3924 = vmatpush1.msk.msra.mxu1 %vm782_vm8, %v569_v56 }
 0xa38   : > { %v2631_v40 = vmax.f32 %v2617_v37, 0.0  ;;  %2775 = vmatprep.subr.mxu1 %v565_v33 }
 0xa39   : > { %v2621_v12 = vpop.f32.mrf.mxu0  ;;  %2776 = vmatpush1.msra.mxu1 %v564_v39 }
 0xa3a   : > { %v2622_v6 = vadd.f32 %v2621_v12, %v2526_v62  ;;  %3920 = vmatmul.mubr.msk.f32.gmra.mxu1 %vm2634_vm4, %v2631_v40  ;;  %4089 = vmatmul.mubr.msk.f32.vlgmr.msra.gmra.mxu0 %vm2634_vm4, %v2631_v40 }
 0xa3b   : > { %v2623_v11 = vpop.f32.mrf.mxu0  ;;  %2738 = vmatprep.mubr.f32.mxu1 %v6760_v14  ;;  %2777 = vmatprep.subr.mxu1 %v560_v63 }
 0xa3c   : > { %v2632_v42 = vmax.f32 %v2622_v6, 0.0  ;;  %2778 = vmatpush1.msra.mxu1 %v559_v50 }
 0xa3d   : > { %v2626_v29 = vpop.f32.mrf.mxu0  ;;  %2779 = vmatprep.subr.mxu1 %v555_v8 }
 0xa3e   : > { %v2627_v26 = vadd.f32 %v2626_v29, %v2531_v35  ;;  %3921 = vmatmul.mubr.msk.f32.gmra.mxu1 %vm2634_vm4, %v2632_v42  ;;  %4091 = vmatprep.mubr.msk.f32.mxu0 %vm2634_vm4, %v2632_v42 }
 0xa3f   : > { %2744 = vmatprep.mubr.f32.mxu1 %v6760_v14  ;;  %2780 = vmatpush1.msra.mxu1 %v554_v49  ;;  %v2628_v24 = vpop.f32.mrf.mxu0 }
 0xa40   : > { %v2633_v36 = vmax.f32 %v2627_v26, 0.0  ;;  %2781 = vmatprep.subr.mxu1 %v550_v22 }
 0xa41   : > { %2782 = vmatpush1.msra.mxu1 %v549_v16 }
 0xa42   : > { %3922 = vmatmul.mubr.msk.f32.gmra.mxu1 %vm2634_vm4, %v2633_v36  ;;  %4092 = vmatmul.mubr.msk.f32.gmra.mxu0 %vm2634_vm4, %v2633_v36 }
 0xa43   : > { %2815 = vmatprep.mubr.f32.mxu1 %v6760_v14  ;;  %3622 = vmatprep.mubr.f32.mxu0 %v6760_v14 }
 0xa46   : > { %3925 = vmatmul.mubr.msk.f32.vlgmr.msra.gmra.mxu1 %vm2634_vm4, %v2630_v47 }
 0xa47   : > { %2821 = vmatprep.mubr.f32.mxu1 %v6760_v14 }
 0xa4a   : > { %3926 = vmatmul.mubr.msk.f32.gmra.mxu1 %vm2634_vm4, %v2631_v40 }
 0xa4b   : > { %2827 = vmatprep.mubr.f32.mxu1 %v6760_v14 }
 0xa4e   : > { %3927 = vmatmul.mubr.msk.f32.gmra.mxu1 %vm2634_vm4, %v2632_v42 }
 0xa4f   : > { %2833 = vmatprep.mubr.f32.mxu1 %v6760_v14 }
 0xa52   : > { %3928 = vmatmul.mubr.msk.f32.gmra.mxu1 %vm2634_vm4, %v2633_v36 }
 0xaf6   : > { %v5807_v54 = vpop.f32.mrf.mxu1 }
 0xaf7   : > { %6809 = vst [vmem:[#allocation4_spill] sm:$0xff] %v5807_v54  ;;  %3061 = vrot.lane.b32.xlu1 %v5807_v54, %s6810_s17  ;;  %3389 = vrot.lane.b32.xlu0 %v5807_v54, %s6811_s16 }
 0xaf8   : > { %v5813_v46 = vpop.f32.mrf.mxu1 }
 0xaf9   : > { %6812 = vst [vmem:[#allocation5_spill] sm:$0xff] %v5813_v46 }
 0xafa   : > { %v5815_v7 = vpop.f32.mrf.mxu1  ;;  %v5825_v52 = vpop.f32.mrf.mxu0 }
 0xafb   : > { %6813 = vst [vmem:[#allocation6_spill] sm:$0xff] %v5815_v7  ;;  %3001 = vrot.lane.b32.xlu1 %v5807_v54, %s4394_s26  ;;  %3399 = vrot.lane.b32.xlu0 %v5815_v7, %s6811_s16 }
 0xafc   : > { %v5843_v18 = vpop.f32.mrf.mxu1  ;;  %v5875_v53 = vpop.f32.mrf.mxu0 }
 0xafd   : > { %6817 = vst [vmem:[#allocation7_spill] sm:$0xff] %v5843_v18 }
 0xafe   : > { %v5853_v30 = vpop.f32.mrf.mxu1 }
 0xaff   : > { %2941 = vrot.lane.b32.xlu1 %v5807_v54, %s6807_s29  ;;  %3327 = vrot.lane.b32.xlu0 %v5815_v7, %s6814_s23  ;;  %6818 = vst [vmem:[#allocation8_spill] sm:$0xff] %v5853_v30 }
 0xb00   : > { %v5859_v32 = vpop.f32.mrf.mxu1 }
 0xb01   : > { %6819 = vst [vmem:[#allocation9_spill] sm:$0xff] %v5859_v32 }
 0xb02   : > { %v5865_v15 = vpop.f32.mrf.mxu1  ;;  %v5877_v55 = vpop.f32.mrf.mxu0 }
 0xb03   : > { %3317 = vrot.lane.b32.xlu1 %v5807_v54, %s6814_s23  ;;  %3335 = vrot.lane.b32.xlu0 %v5825_v52, %s6814_s23 }
 0xb04   : > { %v5895_v31 = vpop.f32.mrf.mxu1  ;;  %v6055_v63 = vpop.f32.mrf.mxu0 }
 0xb06   : > { %v5913_v23 = vpop.f32.mrf.mxu1 }
 0xb07   : > { %3245 = vrot.lane.b32.xlu1 %v5807_v54, %s6815_s28  ;;  %3255 = vrot.lane.b32.xlu0 %v5815_v7, %s6815_s28  ;;  %6820 = vst [vmem:[#allocation10_spill] sm:$0xff] %v5913_v23 }
 0xb08   : > { %v5943_v25 = vpop.f32.mrf.mxu1 }
 0xb09   : > { %6821 = vst [vmem:[#allocation11_spill] sm:$0xff] %v5943_v25 }
 0xb0a   : > { %v5977_v13 = vpop.f32.mrf.mxu1 }
 0xb0b   : > { %3181 = vrot.lane.b32.xlu1 %v5807_v54, %s6816_s22  ;;  %3263 = vrot.lane.b32.xlu0 %v5825_v52, %s6815_s28  ;;  %6825 = vst [vmem:[#allocation15_spill] sm:$0xff] %v5977_v13 }
 0xb0c   : > { %v6011_v19 = vpop.f32.mrf.mxu1 }
 0xb0d   : > { %6832 = vst [vmem:[#allocation22_spill] sm:$0xff] %v6011_v19 }
 0xb0e   : > { %v6037_v33 = vpop.f32.mrf.mxu1 }
 0xb0f   : > { %3391 = vrot.lane.b32.xlu1 %v5813_v46, %s6811_s16  ;;  %3189 = vrot.lane.b32.xlu0 %v5815_v7, %s6816_s22  ;;  %6836 = vst [vmem:[#allocation26_spill] sm:$0xff] %v6037_v33 }
 0xb10   : > { %v6097_v22 = vpop.f32.mrf.mxu1 }
 0xb11   : > { %6845 = vst [vmem:[#allocation34_spill] sm:$0xff] %v6097_v22 }
 0xb12   : > { %v6129_v4 = vpop.f32.mrf.mxu1 }
 0xb13   : > { %3063 = vrot.lane.b32.xlu1 %v5813_v46, %s6810_s17  ;;  %3329 = vrot.lane.b32.xlu0 %v5843_v18, %s6814_s23  ;;  %6850 = vst [vmem:[#allocation39_spill] sm:$0xff] %v6129_v4 }
 0xb17   : > { %3003 = vrot.lane.b32.xlu1 %v5813_v46, %s4394_s26  ;;  %3257 = vrot.lane.b32.xlu0 %v5843_v18, %s6815_s28 }
 0xb1b   : > { %2943 = vrot.lane.b32.xlu1 %v5813_v46, %s6807_s29  ;;  %3191 = vrot.lane.b32.xlu0 %v5843_v18, %s6816_s22 }
 0xb1f   : > { %3319 = vrot.lane.b32.xlu1 %v5813_v46, %s6814_s23  ;;  %3409 = vrot.lane.b32.xlu0 %v5853_v30, %s6811_s16 }
 0xb23   : > { %3247 = vrot.lane.b32.xlu1 %v5813_v46, %s6815_s28  ;;  %3419 = vrot.lane.b32.xlu0 %v5865_v15, %s6811_s16 }
 0xb27   : > { %3183 = vrot.lane.b32.xlu1 %v5813_v46, %s6816_s22  ;;  %3347 = vrot.lane.b32.xlu0 %v5865_v15, %s6814_s23 }
 0xb2b   : > { %3069 = vrot.lane.b32.xlu1 %v5815_v7, %s6810_s17  ;;  %3355 = vrot.lane.b32.xlu0 %v5877_v55, %s6814_s23 }
 0xb2f   : > { %3009 = vrot.lane.b32.xlu1 %v5815_v7, %s4394_s26  ;;  %3275 = vrot.lane.b32.xlu0 %v5865_v15, %s6815_s28 }
 0xb33   : > { %2949 = vrot.lane.b32.xlu1 %v5815_v7, %s6807_s29  ;;  %3283 = vrot.lane.b32.xlu0 %v5877_v55, %s6815_s28 }
 0xb37   : > { %3401 = vrot.lane.b32.xlu1 %v5843_v18, %s6811_s16  ;;  %3205 = vrot.lane.b32.xlu0 %v5865_v15, %s6816_s22 }
 0xb3b   : > { %3071 = vrot.lane.b32.xlu1 %v5843_v18, %s6810_s17  ;;  %3421 = vrot.lane.b32.xlu0 %v5895_v31, %s6811_s16 }
 0xb3f   : > { %3011 = vrot.lane.b32.xlu1 %v5843_v18, %s4394_s26  ;;  %3349 = vrot.lane.b32.xlu0 %v5895_v31, %s6814_s23 }
 0xb43   : > { %2951 = vrot.lane.b32.xlu1 %v5843_v18, %s6807_s29  ;;  %3277 = vrot.lane.b32.xlu0 %v5895_v31, %s6815_s28 }
 0xb47   : > { %3325 = vrot.lane.b32.xlu1 %v5875_v53, %s6814_s23  ;;  %3207 = vrot.lane.b32.xlu0 %v5895_v31, %s6816_s22 }
 0xb4b   : > { %3253 = vrot.lane.b32.xlu1 %v5875_v53, %s6815_s28  ;;  %3393 = vrot.lane.b32.xlu0 %v5913_v23, %s6811_s16 }
 0xb4f   : > { %3077 = vrot.lane.b32.xlu1 %v5853_v30, %s6810_s17  ;;  %3065 = vrot.lane.b32.xlu0 %v5913_v23, %s6810_s17 }
 0xb53   : > { %3017 = vrot.lane.b32.xlu1 %v5853_v30, %s4394_s26  ;;  %3005 = vrot.lane.b32.xlu0 %v5913_v23, %s4394_s26 }
 0xb57   : > { %2957 = vrot.lane.b32.xlu1 %v5853_v30, %s6807_s29  ;;  %2945 = vrot.lane.b32.xlu0 %v5913_v23, %s6807_s29 }
 0xb5b   : > { %3337 = vrot.lane.b32.xlu1 %v5853_v30, %s6814_s23  ;;  %3321 = vrot.lane.b32.xlu0 %v5913_v23, %s6814_s23 }
 0xb5f   : > { %3265 = vrot.lane.b32.xlu1 %v5853_v30, %s6815_s28  ;;  %3249 = vrot.lane.b32.xlu0 %v5913_v23, %s6815_s28 }
 0xb63   : > { %3197 = vrot.lane.b32.xlu1 %v5853_v30, %s6816_s22  ;;  %3185 = vrot.lane.b32.xlu0 %v5913_v23, %s6816_s22 }
 0xb67   : > { %3411 = vrot.lane.b32.xlu1 %v5859_v32, %s6811_s16  ;;  %3067 = vrot.lane.b32.xlu0 %v5943_v25, %s6810_s17 }
 0xb69   : > { %v5949_v17 = vpop.permute.xlu0 %3389  ;;  %v5951_v60 = vpop.permute.xlu1 %3061 }
 0xb6b   : > { %3079 = vrot.lane.b32.xlu1 %v5859_v32, %s6810_s17  ;;  %3007 = vrot.lane.b32.xlu0 %v5943_v25, %s4394_s26 }
 0xb6d   : > { %v5957_v21 = vpop.permute.xlu0 %3399  ;;  %v5959_v34 = vpop.permute.xlu1 %3001 }
 0xb6f   : > { %3019 = vrot.lane.b32.xlu1 %v5859_v32, %s4394_s26  ;;  %3323 = vrot.lane.b32.xlu0 %v5943_v25, %s6814_s23 }
 0xb71   : > { %v5965_v57 = vpop.permute.xlu0 %3327  ;;  %v5967_v51 = vpop.permute.xlu1 %2941 }
 0xb72   : > { %6822 = vst [vmem:[#allocation12_spill] sm:$0xff] %v5965_v57 }
 0xb73   : > { %2959 = vrot.lane.b32.xlu1 %v5859_v32, %s6807_s29  ;;  %3251 = vrot.lane.b32.xlu0 %v5943_v25, %s6815_s28 }
 0xb75   : > { %v5973_v20 = vpop.permute.xlu0 %3335  ;;  %v5975_v41 = vpop.permute.xlu1 %3317 }
 0xb76   : > { %6823 = vst [vmem:[#allocation13_spill] sm:$0xff] %v5973_v20  ;;  %6824 = vst [vmem:[#allocation14_spill] sm:$0xff] %v5975_v41 }
 0xb77   : > { %3339 = vrot.lane.b32.xlu1 %v5859_v32, %s6814_s23  ;;  %3403 = vrot.lane.b32.xlu0 %v5977_v13, %s6811_s16 }
 0xb79   : > { %v5983_v10 = vpop.permute.xlu0 %3255  ;;  %v5985_v28 = vpop.permute.xlu1 %3245 }
 0xb7a   : > { %6826 = vst [vmem:[#allocation16_spill] sm:$0xff] %v5983_v10  ;;  %6827 = vst [vmem:[#allocation17_spill] sm:$0xff] %v5985_v28 }
 0xb7b   : > { %3267 = vrot.lane.b32.xlu1 %v5859_v32, %s6815_s28  ;;  %3073 = vrot.lane.b32.xlu0 %v5977_v13, %s6810_s17 }
 0xb7d   : > { %v5991_v9 = vpop.permute.xlu0 %3263  ;;  %v5993_v59 = vpop.permute.xlu1 %3181 }
 0xb7e   : > { %6828 = vst [vmem:[#allocation18_spill] sm:$0xff] %v5991_v9  ;;  %6829 = vst [vmem:[#allocation19_spill] sm:$0xff] %v5993_v59 }
 0xb7f   : > { %3199 = vrot.lane.b32.xlu1 %v5859_v32, %s6816_s22  ;;  %3013 = vrot.lane.b32.xlu0 %v5977_v13, %s4394_s26 }
 0xb81   : > { %v5999_v38 = vpop.permute.xlu0 %3189  ;;  %v6001_v43 = vpop.permute.xlu1 %3391 }
 0xb82   : > { %6830 = vst [vmem:[#allocation20_spill] sm:$0xff] %v5999_v38 }
 0xb83   : > { %3085 = vrot.lane.b32.xlu1 %v5865_v15, %s6810_s17  ;;  %2953 = vrot.lane.b32.xlu0 %v5977_v13, %s6807_s29 }
 0xb85   : > { %v6007_v48 = vpop.permute.xlu0 %3329  ;;  %v6009_v61 = vpop.permute.xlu1 %3063 }
 0xb86   : > { %6831 = vst [vmem:[#allocation21_spill] sm:$0xff] %v6007_v48 }
 0xb87   : > { %3025 = vrot.lane.b32.xlu1 %v5865_v15, %s4394_s26  ;;  %3075 = vrot.lane.b32.xlu0 %v6011_v19, %s6810_s17 }
 0xb89   : > { %v6017_v27 = vpop.permute.xlu0 %3257  ;;  %v6019_v45 = vpop.permute.xlu1 %3003 }
 0xb8a   : > { %6833 = vst [vmem:[#allocation23_spill] sm:$0xff] %v6017_v27 }
 0xb8b   : > { %2965 = vrot.lane.b32.xlu1 %v5865_v15, %s6807_s29  ;;  %3015 = vrot.lane.b32.xlu0 %v6011_v19, %s4394_s26 }
 0xb8d   : > { %v6025_v47 = vpop.permute.xlu0 %3191  ;;  %v6027_v56 = vpop.permute.xlu1 %2943 }
 0xb8e   : > { %6834 = vst [vmem:[#allocation24_spill] sm:$0xff] %v6025_v47 }
 0xb8f   : > { %3087 = vrot.lane.b32.xlu1 %v5895_v31, %s6810_s17  ;;  %2955 = vrot.lane.b32.xlu0 %v6011_v19, %s6807_s29 }
 0xb91   : > { %v6033_v0 = vpop.permute.xlu0 %3409  ;;  %v6035_v58 = vpop.permute.xlu1 %3319 }
 0xb92   : > { %6835 = vst [vmem:[#allocation25_spill] sm:$0xff] %v6035_v58 }
 0xb93   : > { %3027 = vrot.lane.b32.xlu1 %v5895_v31, %s4394_s26  ;;  %3413 = vrot.lane.b32.xlu0 %v6037_v33, %s6811_s16 }
 0xb95   : > { %v6043_v37 = vpop.permute.xlu0 %3419  ;;  %v6045_v39 = vpop.permute.xlu1 %3247 }
 0xb96   : > { %6837 = vst [vmem:[#allocation27_spill] sm:$0xff] %v6045_v39 }
 0xb97   : > { %2967 = vrot.lane.b32.xlu1 %v5895_v31, %s6807_s29  ;;  %3081 = vrot.lane.b32.xlu0 %v6037_v33, %s6810_s17 }
 0xb99   : > { %v6051_v44 = vpop.permute.xlu0 %3347  ;;  %v6053_v40 = vpop.permute.xlu1 %3183 }
 0xb9a   : > { %6838 = vst [vmem:[#allocation28_spill] sm:$0xff] %v6051_v44  ;;  %6839 = vst [vmem:[#allocation29_spill] sm:$0xff] %v6053_v40 }
 0xb9b   : > { %3345 = vrot.lane.b32.xlu1 %v6055_v63, %s6814_s23  ;;  %3021 = vrot.lane.b32.xlu0 %v6037_v33, %s4394_s26 }
 0xb9d   : > { %v6061_v62 = vpop.permute.xlu0 %3355  ;;  %v6063_v12 = vpop.permute.xlu1 %3069 }
 0xb9e   : > { %6840 = vst [vmem:[#allocation30_spill] sm:$0xff] %v6061_v62 }
 0xb9f   : > { %3273 = vrot.lane.b32.xlu1 %v6055_v63, %s6815_s28  ;;  %2961 = vrot.lane.b32.xlu0 %v6037_v33, %s6807_s29 }
 0xba1   : > { %v6069_v50 = vpop.permute.xlu0 %3275  ;;  %v6071_v6 = vpop.permute.xlu1 %3009 }
 0xba2   : > { %6841 = vst [vmem:[#allocation31_spill] sm:$0xff] %v6069_v50 }
 0xba3   : > { %3147 = vrot.lane.b32.xlu1 %v5895_v31, %s6842_s19  ;;  %3341 = vrot.lane.b32.xlu0 %v6037_v33, %s6814_s23 }
 0xba5   : > { %v6077_v8 = vpop.permute.xlu0 %3283  ;;  %v6079_v11 = vpop.permute.xlu1 %2949 }
 0xba6   : > { %6843 = vst [vmem:[#allocation32_spill] sm:$0xff] %v6077_v8 }
 0xba7   : > { %2947 = vrot.lane.b32.xlu1 %v5943_v25, %s6807_s29  ;;  %3269 = vrot.lane.b32.xlu0 %v6037_v33, %s6815_s28 }
 0xba9   : > { %v6085_v42 = vpop.permute.xlu0 %3205  ;;  %v6087_v49 = vpop.permute.xlu1 %3401 }
 0xbaa   : > { %6844 = vst [vmem:[#allocation33_spill] sm:$0xff] %v6085_v42 }
 0xbab   : > { %3331 = vrot.lane.b32.xlu1 %v5977_v13, %s6814_s23  ;;  %3201 = vrot.lane.b32.xlu0 %v6037_v33, %s6816_s22 }
 0xbad   : > { %v6093_v35 = vpop.permute.xlu0 %3421  ;;  %v6095_v29 = vpop.permute.xlu1 %3071 }
 0xbaf   : > { %3259 = vrot.lane.b32.xlu1 %v5977_v13, %s6815_s28  ;;  %3083 = vrot.lane.b32.xlu0 %v6097_v22, %s6810_s17 }
 0xbb1   : > { %v6103_v26 = vpop.permute.xlu0 %3349  ;;  %v6105_v16 = vpop.permute.xlu1 %3011 }
 0xbb2   : > { %6846 = vst [vmem:[#allocation35_spill] sm:$0xff] %v6103_v26 }
 0xbb3   : > { %3193 = vrot.lane.b32.xlu1 %v5977_v13, %s6816_s22  ;;  %3023 = vrot.lane.b32.xlu0 %v6097_v22, %s4394_s26 }
 0xbb5   : > { %v6111_v24 = vpop.permute.xlu0 %3277  ;;  %v6113_v36 = vpop.permute.xlu1 %2951 }
 0xbb6   : > { %6847 = vst [vmem:[#allocation36_spill] sm:$0xff] %v6111_v24 }
 0xbb7   : > { %3333 = vrot.lane.b32.xlu1 %v6011_v19, %s6814_s23  ;;  %3343 = vrot.lane.b32.xlu0 %v6097_v22, %s6814_s23 }
 0xbb9   : > { %v6119_v1 = vpop.permute.xlu0 %3207  ;;  %v6121_v14 = vpop.permute.xlu1 %3325 }
 0xbba   : > { %6848 = vst [vmem:[#allocation37_spill] sm:$0xff] %v6119_v1  ;;  %6849 = vst [vmem:[#allocation38_spill] sm:$0xff] %v6121_v14  ;;  %v6149_v14 = vpop.f32.mrf.mxu1 }
 0xbbb   : > { %3271 = vrot.lane.b32.xlu0 %v6097_v22, %s6815_s28  ;;  %3261 = vrot.lane.b32.xlu1 %v6011_v19, %s6815_s28  ;;  %6851 = vst [vmem:[#allocation40_spill] sm:$0xff] %v6149_v14 }
 0xbbd   : > { %v6127_v5 = vpop.permute.xlu0 %3393  ;;  %v3254_v3 = vpop.permute.xlu1 %3253 }
 0xbbf   : > { %3089 = vrot.lane.b32.xlu0 %v6129_v4, %s6810_s17  ;;  %2963 = vrot.lane.b32.xlu1 %v6097_v22, %s6807_s29 }
 0xbc1   : > { %v6135_v9 = vpop.permute.xlu0 %3065  ;;  %v3078_v59 = vpop.permute.xlu1 %3077 }
 0xbc3   : > { %3029 = vrot.lane.b32.xlu0 %v6129_v4, %s4394_s26  ;;  %3423 = vrot.lane.b32.xlu1 %v6129_v4, %s6811_s16 }
 0xbc5   : > { %v6141_v40 = vpop.permute.xlu0 %3005  ;;  %v3018_v38 = vpop.permute.xlu1 %3017 }
 0xbc7   : > { %2969 = vrot.lane.b32.xlu0 %v6129_v4, %s6807_s29  ;;  %3351 = vrot.lane.b32.xlu1 %v6129_v4, %s6814_s23 }
 0xbc9   : > { %v6147_v8 = vpop.permute.xlu0 %2945  ;;  %v2958_v47 = vpop.permute.xlu1 %2957 }
 0xbcb   : > { %3091 = vrot.lane.b32.xlu0 %v6149_v14, %s6810_s17  ;;  %3279 = vrot.lane.b32.xlu1 %v6129_v4, %s6815_s28 }
 0xbcd   : > { %v6155_v42 = vpop.permute.xlu0 %3321  ;;  %v3338_v20 = vpop.permute.xlu1 %3337 }
 0xbce   : > { %6852 = vst [vmem:[#allocation41_spill] sm:$0xff] %v6155_v42 }
 0xbcf   : > { %3149 = vrot.lane.b32.xlu0 %v6129_v4, %s6842_s19  ;;  %3209 = vrot.lane.b32.xlu1 %v6129_v4, %s6816_s22 }
 0xbd1   : > { %v6161_v1 = vpop.permute.xlu0 %3249  ;;  %v3266_v28 = vpop.permute.xlu1 %3265 }
 0xbd2   : > { %6853 = vst [vmem:[#allocation42_spill] sm:$0xff] %v6161_v1 }
 0xbd3   : > { %3031 = vrot.lane.b32.xlu0 %v6149_v14, %s4394_s26  ;;  %3145 = vrot.lane.b32.xlu1 %v5865_v15, %s6842_s19 }
 0xbd5   : > { %v6167_v39 = vpop.permute.xlu0 %3185  ;;  %v3198_v10 = vpop.permute.xlu1 %3197 }
 0xbd6   : > { %6854 = vst [vmem:[#allocation43_spill] sm:$0xff] %v6167_v39 }
 0xbd7   : > { %3203 = vrot.lane.b32.xlu0 %v6097_v22, %s6816_s22  ;;  %3139 = vrot.lane.b32.xlu1 %v5859_v32, %s6842_s19 }
 0xbd9   : > { %v6173_v62 = vpop.permute.xlu0 %3067  ;;  %v6175_v27 = vpop.permute.xlu1 %3411 }
 0xbdb   : > { %2971 = vrot.lane.b32.xlu0 %v6149_v14, %s6807_s29  ;;  %3137 = vrot.lane.b32.xlu1 %v5853_v30, %s6842_s19 }
 0xbdd   : > { %v6181_v50 = vpop.permute.xlu0 %3007  ;;  %v6183_v39 = vpop.permute.xlu1 %3079 }
 0xbde   : > { %6855 = vst [vmem:[#allocation44_spill] sm:$0xff] %v6181_v50  ;;  %v6187_v24 = vsel %vm670_vm5, %v3078_v59, %v6183_v39 }
 0xbdf   : > { %3141 = vrot.lane.b32.xlu0 %v6037_v33, %s6842_s19  ;;  %3131 = vrot.lane.b32.xlu1 %v5843_v18, %s6842_s19 }
 0xbe1   : > { %v6193_v41 = vpop.permute.xlu0 %3323  ;;  %v6195_v4 = vpop.permute.xlu1 %3019 }
 0xbe2   : > { %6856 = vst [vmem:[#allocation45_spill] sm:$0xff] %v6193_v41  ;;  %v6200_v58 = vsel %vm743_vm12, %v6155_v42, %v6193_v41  ;;  %v6204_v57 = vsel %vm654_vm3, %v3018_v38, %v6195_v4 }
 0xbe3   : > { %6857 = vst [vmem:[#allocation46_spill] sm:$0xff] %v6200_v58  ;;  %3195 = vrot.lane.b32.xlu0 %v6011_v19, %s6816_s22  ;;  %3129 = vrot.lane.b32.xlu1 %v5815_v7, %s6842_s19 }
 0xbe5   : > { %v3252_v59 = vpop.permute.xlu0 %3251  ;;  %v6210_v33 = vpop.permute.xlu1 %2959 }
 0xbe6   : > { %v6214_v48 = vsel %vm724_vm11, %v6161_v1, %v3252_v59  ;;  %v6218_v58 = vsel %vm638_vm2, %v2958_v47, %v6210_v33  ;;  %v6221_v38 = vsel %vm724_vm11, %v3252_v59, %v3254_v3  ;;  %v6253_v1 = vld [vmem:[%s6738_s13] sm:$0x7] }
 0xbe7   : > { %6858 = vst [vmem:[#allocation47_spill] sm:$0xff] %v6214_v48  ;;  %6859 = vst [vmem:[#allocation48_spill] sm:$0xff] %v6221_v38  ;;  %3133 = vrot.lane.b32.xlu0 %v5977_v13, %s6842_s19  ;;  %3123 = vrot.lane.b32.xlu1 %v5813_v46, %s6842_s19 }
 0xbe9   : > { %v6227_v41 = vpop.permute.xlu0 %3403  ;;  %v6229_v42 = vpop.permute.xlu1 %3339 }
 0xbea   : > { %6860 = vst [vmem:[#allocation49_spill] sm:$0xff] %v6229_v42  ;;  %v6233_v48 = vsel %vm743_vm12, %v3338_v20, %v6229_v42 }
 0xbeb   : > { %6861 = vst [vmem:[#allocation50_spill] sm:$0xff] %v6233_v48  ;;  %3187 = vrot.lane.b32.xlu0 %v5943_v25, %s6816_s22  ;;  %3353 = vrot.lane.b32.xlu1 %v6149_v14, %s6814_s23 }
 0xbed   : > { %v6239_v3 = vpop.permute.xlu0 %3073  ;;  %v3268_v47 = vpop.permute.xlu1 %3267 }
 0xbee   : > { %v6242_v59 = vsel %vm724_vm11, %v3266_v28, %v3268_v47  ;;  %v6864_v28 = vsub.s32 1, %v4511_v2 }
 0xbef   : > { %6862 = vst [vmem:[#allocation51_spill] sm:$0xff] %v6242_v59  ;;  %3125 = vrot.lane.b32.xlu0 %v5913_v23, %s6842_s19  ;;  %3121 = vrot.lane.b32.xlu1 %v5807_v54, %s6842_s19 }
 0xbf0   : > { %v6261_v59 = vrot.slane %v6253_v1, %v6864_v28 }
 0xbf1   : > { %v6248_v20 = vpop.permute.xlu0 %3013  ;;  %v3200_v38 = vpop.permute.xlu1 %3199 }
 0xbf2   : > { %v6256_v13 = vsel %vm702_vm9, %v3198_v10, %v3200_v38  ;;  %6865 = vst [vmem:[#allocation53_spill] sm:$0xff] %v6261_v59  ;;  %3551 = vmatprep.mubr.f32.mxu1 %v6261_v59 }
 0xbf3   : > { %6863 = vst [vmem:[#allocation52_spill] sm:$0xff] %v6256_v13  ;;  %3427 = vrot.lane.b32.xlu0 %v5877_v55, %s6811_s16  ;;  %3281 = vrot.lane.b32.xlu1 %v6149_v14, %s6815_s28 }
 0xbf5   : > { %v6268_v23 = vpop.permute.xlu0 %2953  ;;  %v3086_v48 = vpop.permute.xlu1 %3085 }
 0xbf7   : > { %3415 = vrot.lane.b32.xlu0 %v6097_v22, %s6811_s16  ;;  %3143 = vrot.lane.b32.xlu1 %v6097_v22, %s6842_s19 }
 0xbf9   : > { %v6274_v10 = vpop.permute.xlu0 %3075  ;;  %v6276_v28 = vpop.permute.xlu1 %3025 }
 0xbfb   : > { %3211 = vrot.lane.b32.xlu0 %v6149_v14, %s6816_s22  ;;  %3417 = vrot.lane.b32.xlu1 %v6055_v63, %s6811_s16 }
 0xbfd   : > { %v6282_v55 = vpop.permute.xlu0 %3015  ;;  %v6284_v59 = vpop.permute.xlu1 %2965 }
 0xbff   : > { %3135 = vrot.lane.b32.xlu0 %v6011_v19, %s6842_s19  ;;  %3405 = vrot.lane.b32.xlu1 %v6011_v19, %s6811_s16 }
 0xc01   : > { %v6290_v13 = vpop.permute.xlu0 %2955  ;;  %v3088_v22 = vpop.permute.xlu1 %3087 }
 0xc02   : > { %6866 = vst [vmem:[#allocation54_spill] sm:$0xff] %v6290_v13 }
 0xc03   : > { %3151 = vrot.lane.b32.xlu0 %v6149_v14, %s6842_s19  ;;  %3425 = vrot.lane.b32.xlu1 %v6149_v14, %s6811_s16  ;;  %v607_v14 = vld [vmem:[#allocation2] sm:$0x1] }
 0xc05   : > { %v6296_v63 = vpop.permute.xlu0 %3413  ;;  %v3028_v42 = vpop.permute.xlu1 %3027 }
 0xc07   : > { %3407 = vrot.lane.b32.xlu0 %v5825_v52, %s6811_s16  ;;  %3127 = vrot.lane.b32.xlu1 %v5943_v25, %s6842_s19 }
 0xc09   : > { %v6302_v44 = vpop.permute.xlu0 %3081  ;;  %v6304_v19 = vpop.permute.xlu1 %2967 }
 0xc0b   : > { %3395 = vrot.lane.b32.xlu0 %v5943_v25, %s6811_s16  ;;  %3397 = vrot.lane.b32.xlu1 %v5875_v53, %s6811_s16 }
 0xc0d   : > { %v6310_v13 = vpop.permute.xlu0 %3021  ;;  %v6312_v26 = vpop.permute.xlu1 %3345 }
 0xc0e   : > { %6867 = vst [vmem:[#allocation55_spill] sm:$0xff] %v6312_v26 }
 0xc0f   : > { %3463 = vperm.xlu0 %4128, %v607_v14  }
 0xc11   : > { %v6314_v52 = vpop.permute.xlu0 %2961  ;;  %v6316_v54 = vpop.permute.xlu1 %3273 }
 0xc12   : > { %6868 = vst [vmem:[#allocation56_spill] sm:$0xff] %v6316_v54 }
 0xc15   : > { %v6318_v46 = vpop.permute.xlu0 %3341  ;;  %v6320_v7 = vpop.permute.xlu1 %3147 }
 0xc16   : > { %6869 = vst [vmem:[#allocation57_spill] sm:$0xff] %v6318_v46  ;;  %6870 = vst [vmem:[#allocation58_spill] sm:$0xff] %v6320_v7 }
 0xc19   : > { %v6322_v18 = vpop.permute.xlu0 %3269  ;;  %v6324_v25 = vpop.permute.xlu1 %2947 }
 0xc1a   : > { %6871 = vst [vmem:[#allocation59_spill] sm:$0xff] %v6322_v18  ;;  %6872 = vst [vmem:[#allocation60_spill] sm:$0xff] %v6324_v25  ;;  %v6328_v53 = vsel %vm724_vm11, %v3268_v47, %v6322_v18 }
 0xc1b   : > { %6873 = vst [vmem:[#allocation61_spill] sm:$0xff] %v6328_v53 }
 0xc1d   : > { %v6330_v30 = vpop.permute.xlu0 %3201  ;;  %v6332_v26 = vpop.permute.xlu1 %3331 }
 0xc1e   : > { %6874 = vst [vmem:[#allocation62_spill] sm:$0xff] %v6330_v30  ;;  %6875 = vst [vmem:[#allocation63_spill] sm:$0xff] %v6332_v26  ;;  %v6336_v14 = vsel %vm702_vm9, %v3200_v38, %v6330_v30  ;;  %v3102_v30 = vsel %vm670_vm5, %v3086_v48, %v3088_v22 }
 0xc1f   : > { %6876 = vst [vmem:[#allocation64_spill] sm:$0xff] %v6336_v14 }
 0xc21   : > { %v6338_v54 = vpop.permute.xlu0 %3083  ;;  %v6340_v46 = vpop.permute.xlu1 %3259 }
 0xc25   : > { %v6342_v7 = vpop.permute.xlu0 %3023  ;;  %v6344_v50 = vpop.permute.xlu1 %3193 }
 0xc26   : > { %6877 = vst [vmem:[#allocation65_spill] sm:$0xff] %v6344_v50  ;;  %v3100_v50 = vsel %vm670_vm5, %v6183_v39, %v6302_v44  ;;  %v3441_v39 = vsel %vm762_vm0, %v6043_v37, %v6093_v35  ;;  %v3093_v37 = vsel %vm670_vm5, %v5951_v60, %v6009_v61  ;;  %v3040_v60 = vsel %vm654_vm3, %v6195_v4, %v6310_v13 }
 0xc29   : > { %v6346_v25 = vpop.permute.xlu0 %3343  ;;  %v6348_v47 = vpop.permute.xlu1 %3333 }
 0xc2a   : > { %6878 = vst [vmem:[#allocation66_spill] sm:$0xff] %v6348_v47 }
 0xc2d   : > { %v6350_v18 = vpop.permute.xlu0 %3271  ;;  %v6352_v53 = vpop.permute.xlu1 %3261 }
 0xc2e   : > { %6879 = vst [vmem:[#allocation67_spill] sm:$0xff] %v6352_v53  ;;  %v3097_v53 = vsel %vm670_vm5, %v6095_v29, %v6239_v3 }
 0xc31   : > { %v3090_v26 = vpop.permute.xlu0 %3089  ;;  %v6354_v32 = vpop.permute.xlu1 %2963 }
 0xc32   : > { %v3103_v38 = vsel %vm670_vm5, %v3088_v22, %v3090_v26  ;;  %v3438_v22 = vsel %vm762_vm0, %v6175_v27, %v6296_v63 }
 0xc33   : > { %3487 = vmatprep.subr.mxu1 %v3103_v38  ;;  %v6880_v38 = vsub.s32 2, %v4511_v2 }
 0xc34   : > { %3488 = vmatpush1.msra.mxu1 %v3102_v30  ;;  %v3096_v30 = vsel %vm670_vm5, %v6063_v12, %v6095_v29  ;;  %v3434_v29 = vsel %vm762_vm0, %v6087_v49, %v6227_v41 }
 0xc35   : > { %v6361_v14 = vpop.permute.xlu0 %3029  ;;  %3489 = vmatprep.subr.mxu1 %v3100_v50  ;;  %v6363_v47 = vpop.permute.xlu1 %3423  ;;  %v3094_v50 = vsel %vm670_vm5, %v6009_v61, %v6135_v9  ;;  %v3430_v61 = vsel %vm762_vm0, %v6001_v43, %v6127_v5 }
 0xc36   : > { %3490 = vmatpush1.msra.mxu1 %v6187_v24  ;;  %v3442_v48 = vsel %vm762_vm0, %v6093_v35, %v6363_v47  ;;  %v3437_v24 = vsel %vm762_vm0, %v6033_v0, %v6175_v27  ;;  %v3043_v35 = vsel %vm654_vm3, %v3028_v42, %v6361_v14  ;;  %v3042_v27 = vsel %vm654_vm3, %v6276_v28, %v3028_v42 }
 0xc37   : > { %3491 = vmatprep.subr.mxu1 %v3097_v53  ;;  %3582 = vmatprep.subr.mxu0 %v3442_v48  ;;  %v3433_v0 = vsel %vm762_vm0, %v5957_v21, %v6087_v49  ;;  %v6413_v42 = vrot.slane %v6253_v1, %v6880_v38  ;;  %v3429_v21 = vsel %vm762_vm0, %v5949_v17, %v6001_v43 }
 0xc38   : > { %3492 = vmatpush1.msra.mxu1 %v3096_v30  ;;  %3583 = vmatpush1.msra.mxu0 %v3441_v39  ;;  %v3037_v49 = vsel %vm654_vm3, %v6105_v16, %v6248_v20  ;;  %v3036_v30 = vsel %vm654_vm3, %v6071_v6, %v6105_v16  ;;  %v3034_v17 = vsel %vm654_vm3, %v6019_v45, %v6141_v40 }
 0xc39   : > { %v6387_v53 = vpop.permute.xlu0 %2969  ;;  %3493 = vmatprep.subr.mxu1 %v3094_v50  ;;  %3584 = vmatprep.subr.mxu0 %v3438_v22  ;;  %v6389_v12 = vpop.permute.xlu1 %3351  ;;  %v3101_v6 = vsel %vm670_vm5, %v6302_v44, %v6338_v54  ;;  %v2982_v39 = vsel %vm638_vm2, %v6284_v59, %v6304_v19  ;;  %v6886_v22 = vld [vmem:[#allocation5_spill] sm:$0xff] }
 0xc3a   : > { %3494 = vmatpush1.msra.mxu1 %v3093_v37  ;;  %3585 = vmatpush1.msra.mxu0 %v3437_v24  ;;  %v2983_v16 = vsel %vm638_vm2, %v6304_v19, %v6387_v53  ;;  %v3095_v19 = vsel %vm670_vm5, %v6135_v9, %v6173_v62  ;;  %v2974_v9 = vsel %vm638_vm2, %v6027_v56, %v6147_v8  ;;  %v6888_v37 = vld [vmem:[#allocation35_spill] sm:$0xff] }
 0xc3b   : > { %3495 = vmatprep.subr.mxu1 %v3043_v35  ;;  %3586 = vmatprep.subr.mxu0 %v3434_v29  ;;  %v3370_v35 = vsel %vm743_vm12, %v6888_v37, %v6389_v12  ;;  %v6889_v29 = vld [vmem:[#allocation28_spill] sm:$0xff] }
 0xc3c   : > { %3496 = vmatpush1.msra.mxu1 %v3042_v27  ;;  %3587 = vmatpush1.msra.mxu0 %v3433_v0  ;;  %v3369_v27 = vsel %vm743_vm12, %v6889_v29, %v6888_v37  ;;  %v6890_v0 = vld [vmem:[#allocation54_spill] sm:$0xff] }
 0xc3d   : > { %v3092_v28 = vpop.permute.xlu0 %3091  ;;  %3497 = vmatprep.subr.mxu1 %v3040_v60  ;;  %3588 = vmatprep.subr.mxu0 %v3430_v61  ;;  %v6415_v48 = vpop.permute.xlu1 %3279  ;;  %v2978_v60 = vsel %vm638_vm2, %v6268_v23, %v6890_v0  ;;  %v6913_v37 = vld [vmem:[#allocation30_spill] sm:$0xff] }
 0xc3e   : > { %v3104_v4 = vsel %vm670_vm5, %v3090_v26, %v3092_v28  ;;  %3498 = vmatpush1.msra.mxu1 %v6204_v57  ;;  %3589 = vmatpush1.msra.mxu0 %v3429_v21  ;;  %v3033_v26 = vsel %vm654_vm3, %v5959_v34, %v6019_v45  ;;  %v3098_v34 = vsel %vm670_vm5, %v6239_v3, %v6274_v10  ;;  %v6893_v21 = vld [vmem:[#allocation60_spill] sm:$0xff]  ;;  %v6914_v29 = vld [vmem:[#allocation10_spill] sm:$0xff] }
 0xc3f   : > { %3499 = vmatprep.subr.mxu1 %v3037_v49  ;;  %3629 = vmatprep.subr.mxu0 %v3092_v28  ;;  %v2976_v3 = vsel %vm638_vm2, %v6079_v11, %v6113_v36  ;;  %v3041_v11 = vsel %vm654_vm3, %v6310_v13, %v6342_v7  ;;  %v6882_v13 = vld [vmem:[#allocation44_spill] sm:$0xff]  ;;  %v6895_v49 = vld [vmem:[#allocation63_spill] sm:$0xff] }
 0xc40   : > { %3500 = vmatpush1.msra.mxu1 %v3036_v30  ;;  %3934 = vmatmul.mubr.msk.f32.vlgmr.msra.gmra.mxu0 %vm1974_vm15, %v6413_v42  ;;  %v6896_v30 = vld [vmem:[#allocation21_spill] sm:$0xff] }
 0xc41   : > { %3630 = vmatpush1.msra.mxu0 %v3104_v4  ;;  %v6433_v57 = vpop.permute.xlu0 %3149  ;;  %3501 = vmatprep.subr.mxu1 %v3034_v17  ;;  %v6435_v43 = vpop.permute.xlu1 %3209  ;;  %v2975_v4 = vsel %vm638_vm2, %v6147_v8, %v6893_v21  ;;  %v3362_v17 = vsel %vm743_vm12, %v6896_v30, %v6895_v49 }
 0xc42   : > { %3631 = vmatprep.subr.mxu0 %v6338_v54  ;;  %3502 = vmatpush1.msra.mxu1 %v3033_v26  ;;  %v2980_v54 = vsel %vm638_vm2, %v6210_v33, %v6314_v52  ;;  %v2977_v33 = vsel %vm638_vm2, %v6113_v36, %v6268_v23  ;;  %v3038_v36 = vsel %vm654_vm3, %v6248_v20, %v6282_v55  ;;  %v6883_v20 = vld [vmem:[#allocation8_spill] sm:$0xff]  ;;  %v6894_v23 = vld [vmem:[#allocation50_spill] sm:$0xff] }
 0xc43   : > { %3632 = vmatpush1.msra.mxu0 %v3101_v6  ;;  %3503 = vmatprep.subr.mxu1 %v2983_v16  ;;  %v6897_v26 = vld [vmem:[#allocation12_spill] sm:$0xff] }
 0xc44   : > { %3633 = vmatprep.subr.mxu0 %v6274_v10  ;;  %3504 = vmatpush1.msra.mxu1 %v2982_v39  ;;  %v2973_v10 = vsel %vm638_vm2, %v5967_v51, %v6027_v56  ;;  %v6881_v56 = vld [vmem:[#allocation9_spill] sm:$0xff]  ;;  %v3361_v6 = vsel %vm743_vm12, %v6897_v26, %v6896_v30  ;;  %v6898_v16 = vld [vmem:[#allocation40_spill] sm:$0xff] }
 0xc45   : > { %3634 = vmatpush1.msra.mxu0 %v3098_v34  ;;  %v3032_v45 = vpop.permute.xlu0 %3031  ;;  %3505 = vmatprep.subr.mxu1 %v2980_v54  ;;  %v6457_v44 = vpop.permute.xlu1 %3145  ;;  %v6899_v39 = vld [vmem:[#allocation41_spill] sm:$0xff]  ;;  %v6901_v54 = vld [vmem:[#allocation39_spill] sm:$0xff] }
 0xc46   : > { %v3044_v59 = vsel %vm654_vm3, %v6361_v14, %v3032_v45  ;;  %3635 = vmatprep.subr.mxu0 %v6173_v62  ;;  %3506 = vmatpush1.msra.mxu1 %v6218_v58  ;;  %v6900_v34 = vld [vmem:[#allocation25_spill] sm:$0xff] }
 0xc47   : > { %3636 = vmatpush1.msra.mxu0 %v3095_v19  ;;  %3507 = vmatprep.subr.mxu1 %v2977_v33  ;;  %v3358_v8 = vsel %vm743_vm12, %v6900_v34, %v6899_v39  ;;  %v6919_v30 = vld [vmem:[#allocation17_spill] sm:$0xff] }
 0xc48   : > { %3637 = vmatprep.subr.mxu0 %v3032_v45  ;;  %3508 = vmatpush1.msra.mxu1 %v2976_v3  ;;  %v6903_v3 = vld [vmem:[#allocation34_spill] sm:$0xff]  ;;  %v6921_v39 = vld [vmem:[#allocation13_spill] sm:$0xff] }
 0xc49   : > { %3638 = vmatpush1.msra.mxu0 %v3044_v59  ;;  %v6475_v62 = vpop.permute.xlu0 %3203  ;;  %3509 = vmatprep.subr.mxu1 %v2974_v9  ;;  %v6477_v58 = vpop.permute.xlu1 %3139  ;;  %v6902_v59 = vld [vmem:[#allocation14_spill] sm:$0xff]  ;;  %v6904_v9 = vld [vmem:[#allocation36_spill] sm:$0xff] }
 0xc4a   : > { %3639 = vmatprep.subr.mxu0 %v6342_v7  ;;  %3510 = vmatpush1.msra.mxu1 %v2973_v10  ;;  %v3035_v7 = vsel %vm654_vm3, %v6141_v40, %v6882_v13  ;;  %v2981_v40 = vsel %vm638_vm2, %v6314_v52, %v6354_v32  ;;  %v6892_v52 = vld [vmem:[#allocation49_spill] sm:$0xff]  ;;  %v3357_v33 = vsel %vm743_vm12, %v6902_v59, %v6900_v34  ;;  %v6922_v34 = vld [vmem:[#allocation66_spill] sm:$0xff] }
 0xc4b   : > { %3640 = vmatpush1.msra.mxu0 %v3041_v11  ;;  %3511 = vmatprep.subr.mxu1 %v5895_v31  ;;  %v3298_v10 = vsel %vm724_vm11, %v6904_v9, %v6415_v48  ;;  %v6905_v11 = vld [vmem:[#allocation26_spill] sm:$0xff] }
 0xc4c   : > { %3641 = vmatprep.subr.mxu0 %v6282_v55  ;;  %3512 = vmatpush1.msra.mxu1 %v5865_v15  ;;  %v6884_v55 = vld [vmem:[#allocation7_spill] sm:$0xff]  ;;  %v6885_v15 = vld [vmem:[#allocation6_spill] sm:$0xff] }
 0xc4d   : > { %3642 = vmatpush1.msra.mxu0 %v3038_v36  ;;  %v2972_v51 = vpop.permute.xlu0 %2971  ;;  %3513 = vmatprep.subr.mxu1 %v6881_v56  ;;  %v6493_v14 = vpop.permute.xlu1 %3137  ;;  %v6906_v36 = vld [vmem:[#allocation31_spill] sm:$0xff]  ;;  %v6907_v56 = vld [vmem:[#allocation22_spill] sm:$0xff] }
 0xc4e   : > { %v2984_v31 = vsel %vm638_vm2, %v6387_v53, %v2972_v51  ;;  %3643 = vmatprep.subr.mxu0 %v6882_v13  ;;  %3514 = vmatpush1.msra.mxu1 %v6883_v20  ;;  %v6887_v53 = vld [vmem:[#allocation4_spill] sm:$0xff]  ;;  %v6908_v13 = vld [vmem:[#allocation15_spill] sm:$0xff] }
 0xc4f   : > { %3644 = vmatpush1.msra.mxu0 %v3035_v7  ;;  %3515 = vmatprep.subr.mxu1 %v6884_v55  ;;  %v6910_v55 = vld [vmem:[#allocation11_spill] sm:$0xff] }
 0xc50   : > { %3645 = vmatprep.subr.mxu0 %v2972_v51  ;;  %3516 = vmatpush1.msra.mxu1 %v6885_v15  ;;  %v3297_v51 = vsel %vm724_vm11, %v6906_v36, %v6904_v9  ;;  %v6926_v9 = vld [vmem:[#allocation45_spill] sm:$0xff] }
 0xc51   : > { %3646 = vmatpush1.msra.mxu0 %v2984_v31  ;;  %v6504_v50 = vpop.permute.xlu0 %3141  ;;  %3517 = vmatprep.subr.mxu1 %v6886_v22  ;;  %v6507_v24 = vpop.permute.xlu1 %3131  ;;  %v6909_v31 = vld [vmem:[#allocation61_spill] sm:$0xff]  ;;  %v6911_v22 = vld [vmem:[#allocation51_spill] sm:$0xff] }
 0xc52   : > { %3647 = vmatprep.subr.mxu0 %v6354_v32  ;;  %3518 = vmatpush1.msra.mxu1 %v6887_v53  ;;  %v6891_v32 = vld [vmem:[#allocation57_spill] sm:$0xff] }
 0xc53   : > { %3648 = vmatpush1.msra.mxu0 %v2981_v40  ;;  %3519 = vmatprep.subr.mxu1 %v3370_v35  ;;  %v3366_v61 = vsel %vm743_vm12, %v6892_v52, %v6891_v32  ;;  %v6912_v40 = vld [vmem:[#allocation23_spill] sm:$0xff]  ;;  %v3367_v26 = vsel %vm743_vm12, %v6891_v32, %v6346_v25 }
 0xc54   : > { %3649 = vmatprep.subr.mxu0 %v6890_v0  ;;  %3520 = vmatpush2.msra.mxu1 %v3369_v27  ;;  %v3290_v53 = vsel %vm724_vm11, %v6912_v40, %v6340_v46  ;;  %v6915_v27 = vld [vmem:[#allocation16_spill] sm:$0xff] }
 0xc55   : > { %3650 = vmatpush1.msra.mxu0 %v2978_v60  ;;  %v6527_v38 = vpop.permute.xlu0 %3195  ;;  %3521 = vmatprep.subr.mxu1 %v3366_v61  ;;  %v6529_v28 = vpop.permute.xlu1 %3129  ;;  %v3289_v0 = vsel %vm724_vm11, %v6915_v27, %v6912_v40  ;;  %v6916_v60 = vld [vmem:[#allocation42_spill] sm:$0xff]  ;;  %v6933_v40 = vld [vmem:[#allocation43_spill] sm:$0xff] }
 0xc56   : > { %3651 = vmatprep.subr.mxu0 %v6893_v21  ;;  %3522 = vmatpush2.msra.mxu1 %v6894_v23  ;;  %v6918_v21 = vld [vmem:[#allocation55_spill] sm:$0xff] }
 0xc57   : > { %3652 = vmatpush1.msra.mxu0 %v2975_v4  ;;  %3523 = vmatprep.subr.mxu1 %v3362_v17  ;;  %v3368_v4 = vsel %vm743_vm12, %v6346_v25, %v6918_v21  ;;  %v3363_v25 = vsel %vm743_vm12, %v6895_v49, %v6922_v34  ;;  %v6929_v49 = vld [vmem:[#allocation24_spill] sm:$0xff]  ;;  %v6938_v21 = vld [vmem:[#allocation58_spill] sm:$0xff] }
 0xc58   : > { %3653 = vmatprep.subr.mxu0 %v6898_v16  ;;  %3524 = vmatpush2.msra.mxu1 %v3361_v6  ;;  %v6920_v6 = vld [vmem:[#allocation37_spill] sm:$0xff] }
 0xc59   : > { %3654 = vmatpush1.msra.mxu0 %v6901_v54  ;;  %v6547_v45 = vpop.permute.xlu0 %3133  ;;  %3525 = vmatprep.subr.mxu1 %v3358_v8  ;;  %v6549_v19 = vpop.permute.xlu1 %3123  ;;  %v3223_v16 = vsel %vm702_vm9, %v6920_v6, %v6435_v43  ;;  %v3364_v8 = vsel %vm743_vm12, %v6922_v34, %v6921_v39  ;;  %v6923_v54 = vld [vmem:[#allocation33_spill] sm:$0xff] }
 0xc5a   : > { %3655 = vmatprep.subr.mxu0 %v6903_v3  ;;  %3526 = vmatpush2.msra.mxu1 %v3357_v33  ;;  %v3222_v59 = vsel %vm702_vm9, %v6923_v54, %v6920_v6  ;;  %v6924_v33 = vld [vmem:[#allocation64_spill] sm:$0xff]  ;;  %v6925_v3 = vld [vmem:[#allocation38_spill] sm:$0xff] }
 0xc5b   : > { %3656 = vmatpush1.msra.mxu0 %v6905_v11  ;;  %3527 = vmatprep.subr.mxu1 %v3298_v10  ;;  %v3360_v10 = vsel %vm743_vm12, %v6926_v9, %v6925_v3  ;;  %v6941_v54 = vld [vmem:[#allocation48_spill] sm:$0xff] }
 0xc5c   : > { %3657 = vmatprep.subr.mxu0 %v6907_v56  ;;  %3528 = vmatpush2.msra.mxu1 %v3297_v51  ;;  %v6927_v51 = vld [vmem:[#allocation52_spill] sm:$0xff]  ;;  %v6928_v56 = vld [vmem:[#allocation65_spill] sm:$0xff] }
 0xc5d   : > { %3658 = vmatpush1.msra.mxu0 %v6908_v13  ;;  %v6564_v7 = vpop.permute.xlu0 %3187  ;;  %3529 = vmatprep.subr.mxu1 %v6909_v31  ;;  %v3354_v20 = vpop.permute.xlu1 %3353  ;;  %v3217_v13 = vsel %vm702_vm9, %v6929_v49, %v6928_v56  ;;  %v6930_v31 = vld [vmem:[#allocation32_spill] sm:$0xff] }
 0xc5e   : > { %3659 = vmatprep.subr.mxu0 %v6910_v55  ;;  %v3371_v15 = vsel %vm743_vm12, %v6389_v12, %v3354_v20  ;;  %3530 = vmatpush2.msra.mxu1 %v6911_v22  ;;  %v3372_v35 = vsel %vm743_vm12, %v3354_v20, %v6913_v37  ;;  %v6917_v12 = vld [vmem:[#allocation27_spill] sm:$0xff]  ;;  %v6931_v55 = vld [vmem:[#allocation46_spill] sm:$0xff] }
 0xc5f   : > { %3660 = vmatpush1.msra.mxu0 %v6914_v29  ;;  %3531 = vmatprep.subr.mxu1 %v3290_v53  ;;  %v3286_v52 = vsel %vm724_vm11, %v6917_v12, %v6916_v60  ;;  %v3285_v17 = vsel %vm724_vm11, %v6919_v30, %v6917_v12  ;;  %v6937_v12 = vld [vmem:[#allocation59_spill] sm:$0xff]  ;;  %v3162_v30 = vsel %vm686_vm7, %v6457_v44, %v6938_v21 }
 0xc60   : > { %3661 = vmatprep.subr.mxu0 %v3372_v35  ;;  %3532 = vmatpush2.msra.mxu1 %v3289_v0  ;;  %v6935_v35 = vld [vmem:[#allocation56_spill] sm:$0xff]  ;;  %v6936_v0 = vld [vmem:[#allocation19_spill] sm:$0xff]  ;;  %v3159_v44 = vsel %vm686_vm7, %v6493_v14, %v6477_v58 }
 0xc61   : > { %3662 = vmatpush2.msra.mxu0 %v3371_v15  ;;  %v6583_v61 = vpop.permute.xlu0 %3125  ;;  %3533 = vmatprep.subr.mxu1 %v3286_v52  ;;  %v6588_v23 = vpop.permute.xlu1 %3121  ;;  %v6932_v15 = vld [vmem:[#allocation20_spill] sm:$0xff]  ;;  %v3296_v29 = vsel %vm724_vm11, %v6350_v18, %v6935_v35  ;;  %v3295_v52 = vsel %vm724_vm11, %v6937_v12, %v6350_v18 }
 0xc62   : > { %3663 = vmatprep.subr.mxu0 %v3368_v4  ;;  %3534 = vmatpush2.msra.mxu1 %v3285_v17  ;;  %v3216_v22 = vsel %vm702_vm9, %v6932_v15, %v6929_v49  ;;  %v3163_v4 = vsel %vm686_vm7, %v6938_v21, %v6433_v57  ;;  %v6939_v17 = vld [vmem:[#allocation18_spill] sm:$0xff] }
 0xc63   : > { %3664 = vmatpush2.msra.mxu0 %v3367_v26  ;;  %3535 = vmatprep.subr.mxu1 %v3223_v16  ;;  %v6940_v26 = vld [vmem:[#allocation67_spill] sm:$0xff]  ;;  %v3160_v16 = vsel %vm686_vm7, %v6477_v58, %v6504_v50 }
 0xc64   : > { %3665 = vmatprep.subr.mxu0 %v3364_v8  ;;  %3536 = vmatpush2.msra.mxu1 %v3222_v59  ;;  %v3292_v6 = vsel %vm724_vm11, %v6940_v26, %v6939_v17  ;;  %v3291_v18 = vsel %vm724_vm11, %v6340_v46, %v6940_v26  ;;  %v3157_v46 = vsel %vm686_vm7, %v6507_v24, %v6547_v45  ;;  %v6943_v58 = vld [vmem:[#allocation3_spill] sm:$0xff] }
 0xc65   : > { %3666 = vmatpush2.msra.mxu0 %v3363_v25  ;;  %v6608_v32 = vpop.permute.xlu0 %3427  ;;  %3537 = vmatprep.subr.mxu1 %v6924_v33  ;;  %v3282_v11 = vpop.permute.xlu1 %3281  ;;  %v3156_v59 = vsel %vm686_vm7, %v6529_v28, %v6507_v24  ;;  %v6942_v25 = vld [vmem:[#allocation47_spill] sm:$0xff]  ;;  %v3474_v14 = vrot.slane %v6253_v1, %v6943_v58  ;;  %v3153_v33 = vsel %vm686_vm7, %v6588_v23, %v6549_v19  ;;  %v6944_v28 = vld [vmem:[#allocation62_spill] sm:$0xff] }
 0xc66   : > { %3667 = vmatprep.subr.mxu0 %v3360_v10  ;;  %v3299_v36 = vsel %vm724_vm11, %v6415_v48, %v3282_v11  ;;  %3538 = vmatpush2.msra.mxu1 %v6927_v51  ;;  %v3300_v20 = vsel %vm724_vm11, %v3282_v11, %v6930_v31  ;;  %v6934_v48 = vld [vmem:[#allocation29_spill] sm:$0xff]  ;;  %v3221_v9 = vsel %vm702_vm9, %v6944_v28, %v6475_v62  ;;  %v6946_v11 = vmov 0.0  }
 0xc67   : > { %3668 = vmatpush2.msra.mxu0 %v6931_v55  ;;  %3539 = vmatprep.subr.mxu1 %v3217_v13  ;;  %v3214_v53 = vsel %vm702_vm9, %v6934_v48, %v6933_v40  ;;  %v3213_v60 = vsel %vm702_vm9, %v6936_v0, %v6934_v48  ;;  %v3218_v1 = vsel %vm702_vm9, %v6928_v56, %v6527_v38 }
 0xc68   : > { %3669 = vmatprep.subr.mxu0 %v3300_v20  ;;  %3540 = vmatpush2.msra.mxu1 %v3216_v22 }
 0xc69   : > { %3670 = vmatpush2.msra.mxu0 %v3299_v36  ;;  %v3416_v37 = vpop.permute.xlu0 %3415  ;;  %3541 = vmatprep.subr.mxu1 %v3214_v53  ;;  %v6632_v27 = vpop.permute.xlu1 %3143 }
 0xc6a   : > { %3671 = vmatprep.subr.mxu0 %v3296_v29  ;;  %3542 = vmatpush2.msra.mxu1 %v3213_v60  ;;  %v3439_v49 = vsel %vm762_vm0, %v6296_v63, %v3416_v37 }
 0xc6b   : > { %3672 = vmatpush2.msra.mxu0 %v3295_v52  ;;  %3543 = vmatprep.subr.mxu1 %v3163_v4 }
 0xc6c   : > { %3673 = vmatprep.subr.mxu0 %v3292_v6  ;;  %3544 = vmatpush2.msra.mxu1 %v3162_v30 }
 0xc6d   : > { %3674 = vmatpush2.msra.mxu0 %v3291_v18  ;;  %v3212_v39 = vpop.permute.xlu0 %3211  ;;  %3545 = vmatprep.subr.mxu1 %v3160_v16  ;;  %v3418_v34 = vpop.permute.xlu1 %3417 }
 0xc6e   : > { %v3224_v8 = vsel %vm702_vm9, %v6435_v43, %v3212_v39  ;;  %3675 = vmatprep.subr.mxu0 %v6941_v54  ;;  %3546 = vmatpush2.msra.mxu1 %v3159_v44  ;;  %v3154_v43 = vsel %vm686_vm7, %v6549_v19, %v6583_v61  ;;  %v6945_v19 = vld [vmem:[#allocation53_spill] sm:$0xff]  ;;  %v3440_v56 = vsel %vm762_vm0, %v3416_v37, %v3418_v34 }
 0xc6f   : > { %3676 = vmatpush2.msra.mxu0 %v6942_v25  ;;  %3547 = vmatprep.subr.mxu1 %v3157_v46  ;;  %v4416_v46 = vmov 1966171168  }
 0xc70   : > { %3677 = vmatprep.subr.mxu0 %v3212_v39  ;;  %3548 = vmatpush2.msra.mxu1 %v3156_v59  ;;  %v3802_v59 = vunpack.c.l.s4 %v4416_v46 }
 0xc71   : > { %3678 = vmatpush2.msra.mxu0 %v3224_v8  ;;  %v3136_v3 = vpop.permute.xlu0 %3135  ;;  %3549 = vmatprep.subr.mxu1 %v3154_v43  ;;  %v3406_v24 = vpop.permute.xlu1 %3405 }
 0xc72   : > { %3679 = vmatprep.subr.mxu0 %v6475_v62  ;;  %3550 = vmatpush2.msra.mxu1 %v3153_v33  ;;  %v3215_v62 = vsel %vm702_vm9, %v6933_v40, %v6564_v7  ;;  %v3158_v63 = vsel %vm686_vm7, %v6547_v45, %v3136_v3  ;;  %v3803_v25 = vunpack.c.0.s8 %v3802_v59 }
 0xc73   : > { %3680 = vmatpush2.msra.mxu0 %v3221_v9  ;;  %3552 = vmatmul.mubr.f32.vlgmr.msra.gmra.mxu1 %v3474_v14 }
 0xc74   : > { %3681 = vmatprep.subr.mxu0 %v6527_v38  ;;  %3693 = vmatprep.mubr.f32.mxu0 %v6945_v19 }
 0xc75   : > { %3682 = vmatpush2.msra.mxu0 %v3218_v1  ;;  %v3152_v23 = vpop.permute.xlu0 %3151  ;;  %v3426_v10 = vpop.permute.xlu1 %3425  ;;  %3764 = vmatprep.mubr.f32.mxu1 %v6946_v11 }
 0xc76   : > { %v3164_v36 = vsel %vm686_vm7, %v6433_v57, %v3152_v23  ;;  %3683 = vmatprep.subr.mxu0 %v6564_v7  ;;  %v3443_v51 = vsel %vm762_vm0, %v6363_v47, %v3426_v10  ;;  %v3444_v38 = vsel %vm762_vm0, %v3426_v10, %v6608_v32  ;;  %v3161_v47 = vsel %vm686_vm7, %v6504_v50, %v6632_v27 }
 0xc77   : > { %3684 = vmatpush2.msra.mxu0 %v3215_v62  ;;  %3724 = vmatprep.subr.mxu1 %v3444_v38  ;;  %v3435_v32 = vsel %vm762_vm0, %v6227_v41, %v3406_v24 }
 0xc78   : > { %3685 = vmatprep.subr.mxu0 %v3152_v23  ;;  %3725 = vmatpush1.msra.mxu1 %v3443_v51  ;;  %v6947_v23 = vlaneseq }
 0xc79   : > { %3686 = vmatpush2.msra.mxu0 %v3164_v36  ;;  %v3408_v13 = vpop.permute.xlu0 %3407  ;;  %3726 = vmatprep.subr.mxu1 %v3440_v56  ;;  %v3128_v57 = vpop.permute.xlu1 %3127 }
 0xc7a   : > { %3687 = vmatprep.subr.mxu0 %v6632_v27  ;;  %3727 = vmatpush1.msra.mxu1 %v3439_v49  ;;  %v3436_v7 = vsel %vm762_vm0, %v3406_v24, %v3408_v13  ;;  %v3155_v50 = vsel %vm686_vm7, %v6583_v61, %v3128_v57 }
 0xc7b   : > { %3688 = vmatpush2.msra.mxu0 %v3161_v47  ;;  %3728 = vmatprep.subr.mxu1 %v3436_v7 }
 0xc7c   : > { %3689 = vmatprep.subr.mxu0 %v3136_v3  ;;  %3729 = vmatpush1.msra.mxu1 %v3435_v32  ;;  %v3806_v3 = vsub.s32 %v3803_v25, %v4511_v2 }
 0xc7d   : > { %3690 = vmatpush2.msra.mxu0 %v3158_v63  ;;  %v3396_v31 = vpop.permute.xlu0 %3395  ;;  %v3398_v20 = vpop.permute.xlu1 %3397 }
 0xc7e   : > { %v3431_v55 = vsel %vm762_vm0, %v6127_v5, %v3396_v31  ;;  %3691 = vmatprep.subr.mxu0 %v3128_v57  ;;  %v3432_v15 = vsel %vm762_vm0, %v3396_v31, %v3398_v20  ;;  %vm3826_vm0 = vcmp.lt.s32.totalorder %v6947_v23, 484 }
 0xc7f   : > { %3692 = vmatpush2.msra.mxu0 %v3155_v50  ;;  %3730 = vmatprep.subr.mxu1 %v3432_v15 }
 0xc80   : > { %3694 = vmatmul.mubr.f32.vlgmr.msra.gmra.mxu0 %v3474_v14  ;;  %3731 = vmatpush1.msra.mxu1 %v3431_v55 }
 0xc81   : > { %3935 = vmatmul.mubr.msk.f32.vlgmr.msra.gmra.mxu1 %vm1974_vm15, %v6413_v42 }
 0xc8a   : > { %v3464_v41 = vpop.permute.xlu0 %3463 }
 0xc8b   : > { %v3469_v22 = vrot.slane %v3464_v41, %v6943_v58 }
 0xd00   : > { %v3624_v40 = vpop.f32.mrf.mxu0 }
 0xd02   : > { %v3626_v37 = vpop.f32.mrf.mxu0 }
 0xd33   : > { %v3553_v45 = vpop.f32.mrf.mxu1 }
 0xd34   : > { %v3554_v53 = vadd.f32 %v3553_v45, %v3469_v22 }
 0xd35   : > { %v3555_v48 = vpop.f32.mrf.mxu1 }
 0xd36   : > { %v3556_v61 = vadd.f32 %v3555_v48, %v3469_v22  ;;  %v3625_v35 = vadd.f32 %v3624_v40, %v3554_v53 }
 0xd38   : > { %v3627_v5 = vadd.f32 %v3626_v37, %v3556_v61  ;;  %v3936_v27 = vmul.f32 -1.442695, %v3625_v35 }
 0xd3a   : > { %v3937_v29 = vmul.f32 -1.442695, %v3627_v5 }
 0xd3c   : > { %4369 = vpow2.f32 %v3937_v29 }
 0xd3d   : > { %4371 = vpow2.f32 %v3936_v27 }
 0xd40   : > { %v3695_v0 = vpop.f32.mrf.mxu0 }
 0xd41   : > { %v3696_v60 = vadd.f32 %v3695_v0, %v3469_v22  ;;  %v3766_v12 = vpop.f32.mrf.mxu1 }
 0xd42   : > { %v3697_v52 = vpop.f32.mrf.mxu0 }
 0xd43   : > { %v3698_v42 = vadd.f32 %v3697_v52, %v3469_v22  ;;  %v3767_v21 = vadd.f32 %v3766_v12, %v3696_v60  ;;  %v3768_v4 = vpop.f32.mrf.mxu1 }
 0xd45   : > { %v3938_v30 = vmul.f32 -1.442695, %v3767_v21  ;;  %v3769_v17 = vadd.f32 %v3768_v4, %v3698_v42 }
 0xd47   : > { %4373 = vpow2.f32 %v3938_v30  ;;  %v3939_v26 = vmul.f32 -1.442695, %v3769_v17 }
 0xd49   : > { %4375 = vpow2.f32 %v3939_v26  ;;  %v4370_v6 = vpop.eup %4369 }
 0xd4a   : > { %v4372_v18 = vpop.eup %4371  ;;  %v3784_v16 = vadd.f32 1.0, %v4370_v6 }
 0xd4b   : > { %v3783_v44 = vadd.f32 1.0, %v4372_v18 }
 0xd4c   : > { %4377 = vrcp.f32 %v3784_v16 }
 0xd4d   : > { %4379 = vrcp.f32 %v3783_v44 }
 0xd54   : > { %v4374_v39 = vpop.eup %4373 }
 0xd55   : > { %v3785_v34 = vadd.f32 1.0, %v4374_v39 }
 0xd56   : > { %v4376_v8 = vpop.eup %4375 }
 0xd57   : > { %v3786_v54 = vadd.f32 1.0, %v4376_v8  ;;  %4381 = vrcp.f32 %v3785_v34 }
 0xd59   : > { %4383 = vrcp.f32 %v3786_v54  ;;  %v4378_v58 = vpop.eup %4377 }
 0xd5a   : > { %v4380_v14 = vpop.eup %4379 }
 0xd5b   : > { %v3799_v33 = vcombine.low %v4380_v14, %v4378_v58 }
 0xd5d   : > { %v3807_v9 = vrot.slane %v3799_v33, %v3806_v3 }
 0xd64   : > { %v4382_v43 = vpop.eup %4381 }
 0xd66   : > { %v4384_v24 = vpop.eup %4383 }
 0xd67   : > { %v3800_v28 = vcombine.low %v4382_v43, %v4384_v24 }
 0xd69   : > { %v3814_v1 = vrot.slane %v3800_v28, %v3806_v3 }
 0xd6b   : > { %v3815_v19 = vcombine.low %v3807_v9, %v3814_v1 }
 0xd6d   : > { %v3822_v10 = vrot.slane %v3815_v19, %v3806_v3 }
 0xd6f   : > { %3828 = vst.msk [vmem:[%s491_s25] sm:$0xf] %vm3826_vm0, %v3822_v10 }
 0xd70 PF: > { %s27_s20 = sadd.s32 1, %s4391_s20  }
 0xd71   : > { %p24_p4 = scmp.ge.s32.totalorder %s27_s20, 4  }
 0xd73   :  { %26 = sbr.rel (!%p24_p4) target bundleno = 3 (0x3), region = 110 }

</bundles_post_ra>
